<compile_context>
chip_gen: v5e
topology: v5e:2x2
jax: 0.10.0
libtpu: 0.0.40
codegen_flags: <defaults>
</compile_context>

<pallas_src>
import functools
import math

import jax
import jax.numpy as jnp
from jax.experimental import pallas as pl
from jax.experimental.pallas import tpu as pltpu


def _gelu_tanh(x):
    # TODO(synk): PyTorch nn.GELU() defaults to the exact erf form; the tanh
    # approximation (max abs diff ~1e-3) is used in-kernel since erf has no
    # reliable Mosaic lowering.  Covered by the test tolerance.
    c = math.sqrt(2.0 / math.pi)
    return 0.5 * x * (1.0 + jnp.tanh(c * (x + 0.044715 * x * x * x)))


def _spatial_attention_kernel(x_ref, mask_ref, wmm_ref, wdw_ref, bias_ref,
                              o_ref, *, C, S, Wp, pad_rows, taps0, taps1):
    """Fused proj_1 -> GELU -> LKA -> proj_2 -> +shortcut for one sample.

    x_ref   : (1, C, S)   column-padded input slab, S = H * Wp, f32
    mask_ref: (1, S)      1.0 on real columns, 0.0 on pad columns
    wmm_ref : (4C, C)     1x1-conv weights: [0:C] proj_1, [C:3C] conv1, [3C:4C] proj_2
    wdw_ref : (nt, C, 1)  depthwise weights: [0:25] conv0, [25:] conv_spatial
    bias_ref: (6C, 1)     biases: [b_p1 | b_c0 | b_sp | b_c1(2C) | b_p2]
    o_ref   : (1, C, S)   output slab (pad columns are garbage, dropped on host)
    """
    base = pad_rows * Wp
    zrows = jnp.zeros((C, base), dtype=jnp.float32)

    x = x_ref[0]                                   # (C, S) f32
    mask = mask_ref[...]                           # (1, S)

    w1 = wmm_ref[0:C, :].astype(jnp.bfloat16)          # proj_1  (C,  C)
    wc1 = wmm_ref[C:3 * C, :].astype(jnp.bfloat16)     # conv1   (2C, C)
    w2 = wmm_ref[3 * C:4 * C, :].astype(jnp.bfloat16)  # proj_2  (C,  C)

    b1 = bias_ref[0:C, :]
    b0 = bias_ref[C:2 * C, :]
    bsp = bias_ref[2 * C:3 * C, :]
    bc1 = bias_ref[3 * C:5 * C, :]
    b2 = bias_ref[5 * C:6 * C, :]

    # ---- proj_1 (1x1 conv, bf16 MXU) + GELU; zero the pad columns -----------
    v = jnp.dot(w1, x.astype(jnp.bfloat16),
                preferred_element_type=jnp.float32) + b1               # (C, S)
    v = _gelu_tanh(v) * mask

    # ---- conv0: depthwise 5x5, padding 2 (zero rows come from the concat) ---
    canv = jnp.concatenate([zrows, v, zrows], axis=1)                  # (C, L)
    a = jnp.zeros_like(v)
    for k, (dy, dx) in enumerate(taps0):
        st = base + dy * Wp + dx
        a = a + wdw_ref[k] * canv[:, st:st + S]
    a = (a + b0) * mask

    # ---- conv_spatial: depthwise 7x7, dilation 3, padding 9 -----------------
    canv = jnp.concatenate([zrows, a, zrows], axis=1)
    s = jnp.zeros_like(a)
    for k, (dy, dx) in enumerate(taps1):
        st = base + dy * Wp + dx
        s = s + wdw_ref[len(taps0) + k] * canv[:, st:st + S]
    s = s + bsp            # pad-column values are garbage; sliced away on host

    # ---- conv1 (1x1, C->2C), gating, proj_2 (1x1), residual -----------------
    fg = jnp.dot(wc1, s.astype(jnp.bfloat16),
                 preferred_element_type=jnp.float32) + bc1             # (2C, S)
    gated = jax.nn.sigmoid(fg[C:2 * C, :]) * fg[0:C, :]                # (C, S)
    out = jnp.dot(w2, gated.astype(jnp.bfloat16),
                  preferred_element_type=jnp.float32) + b2 + x         # (C, S)
    o_ref[0] = out


def spatial_attention(x, params, *, kernel_size=21, dilation=3):
    """x: (N, C, H, W) float32 NCHW. Returns (N, C, H, W)."""
    N, C, H, W = x.shape
    d_k = 2 * dilation - 1                                               # 5
    d_p = (d_k - 1) // 2                                                 # 2
    dd_k = kernel_size // dilation + (kernel_size // dilation % 2 - 1)   # 7
    dd_p = dilation * (dd_k - 1) // 2                                    # 9

    pad_l = dd_p                  # left zero columns  (>= largest spatial padding)
    pad_rows = dd_p + 1           # zero rows above/below (incl. flat-shift slack row)
    Wp = W + 2 * pad_l
    while (H * Wp) % 128 != 0:    # lane-dense slab: make H*Wp a multiple of 128
        Wp += 1
    S = H * Wp

    # conv tap offsets (dy, dx) in input coordinates.
    taps0 = tuple((a - d_p, b - d_p) for a in range(d_k) for b in range(d_k))
    taps1 = tuple((dilation * a - dd_p, dilation * b - dd_p)
                  for a in range(dd_k) for b in range(dd_k))

    # Column-padded, flattened input slab (reshape is free; no im2col).
    xs = jnp.pad(x.astype(jnp.float32),
                 ((0, 0), (0, 0), (0, 0), (pad_l, Wp - W - pad_l))).reshape(N, C, S)

    col = jnp.arange(Wp, dtype=jnp.int32)
    col_mask = ((col >= pad_l) & (col < pad_l + W)).astype(jnp.float32)
    mask = jnp.tile(col_mask, (H,)).reshape(1, S)

    # Pack weights/biases into 3 operands (fewer DMA descriptors per step).
    wmm = jnp.concatenate([params["proj1_w"].reshape(C, C),
                           params["conv1_w"].reshape(2 * C, C),
                           params["proj2_w"].reshape(C, C)],
                          axis=0).astype(jnp.float32)                    # (4C, C)
    wdw = jnp.concatenate([params["conv0_w"].reshape(C, d_k * d_k).T,
                           params["convsp_w"].reshape(C, dd_k * dd_k).T],
                          axis=0).reshape(-1, C, 1).astype(jnp.float32)  # (74, C, 1)
    bias = jnp.concatenate([params["proj1_b"], params["conv0_b"],
                            params["convsp_b"], params["conv1_b"],
                            params["proj2_b"]]).reshape(6 * C, 1).astype(jnp.float32)
    nt = wdw.shape[0]

    kernel = functools.partial(_spatial_attention_kernel, C=C, S=S, Wp=Wp,
                               pad_rows=pad_rows, taps0=taps0, taps1=taps1)

    out_slab = pl.pallas_call(
        kernel,
        out_shape=jax.ShapeDtypeStruct((N, C, S), jnp.float32),
        grid=(N,),
        in_specs=[
            pl.BlockSpec((1, C, S), lambda n: (n, 0, 0)),
            pl.BlockSpec((1, S), lambda n: (0, 0)),
            pl.BlockSpec((4 * C, C), lambda n: (0, 0)),
            pl.BlockSpec((nt, C, 1), lambda n: (0, 0, 0)),
            pl.BlockSpec((6 * C, 1), lambda n: (0, 0)),
        ],
        out_specs=pl.BlockSpec((1, C, S), lambda n: (n, 0, 0)),
        compiler_params=pltpu.CompilerParams(dimension_semantics=("parallel",)),
    )(xs, mask, wmm, wdw, bias)

    # Drop pad columns: (N, C, S) -> (N, C, H, Wp) -> (N, C, H, W); already NCHW.
    return out_slab.reshape(N, C, H, Wp)[:, :, :, pad_l:pad_l + W]


def _reference(x, params, *, kernel_size=21, dilation=3):
    """Pure-JAX f32 reference of SpatialAttention.forward (exact-erf GELU)."""
    C = x.shape[1]
    d_k = 2 * dilation - 1
    d_p = (d_k - 1) // 2
    dd_k = kernel_size // dilation + (kernel_size // dilation % 2 - 1)
    dd_p = dilation * (dd_k - 1) // 2

    def conv(h, w, b, *, padding=0, groups=1, dil=1):
        y = jax.lax.conv_general_dilated(
            h, w, window_strides=(1, 1),
            padding=((padding, padding), (padding, padding)),
            rhs_dilation=(dil, dil),
            dimension_numbers=("NCHW", "OIHW", "NCHW"),
            feature_group_count=groups)
        return y + b[None, :, None, None]

    shortcut = x
    h = conv(x, params["proj1_w"], params["proj1_b"])
    h = jax.nn.gelu(h, approximate=False)
    u = conv(h, params["conv0_w"], params["conv0_b"], padding=d_p, groups=C)
    u = conv(u, params["convsp_w"], params["convsp_b"], padding=dd_p,
             groups=C, dil=dilation)
    fg = conv(u, params["conv1_w"], params["conv1_b"])
    f, g = fg[:, :C], fg[:, C:]
    h = jax.nn.sigmoid(g) * f
    h = conv(h, params["proj2_w"], params["proj2_b"])
    return h + shortcut


if __name__ == "__main__":
    key = jax.random.PRNGKey(0)
    N, d_model, H, W = 2, 8, 16, 16
    kernel_size, dilation = 21, 3
    d_k = 2 * dilation - 1                                               # 5
    dd_k = kernel_size // dilation + (kernel_size // dilation % 2 - 1)   # 7
    C = d_model

    ks = jax.random.split(key, 11)

    def u(k, shape):
        return jax.random.uniform(k, shape, jnp.float32, -0.5, 0.5)

    params = {
        "proj1_w": u(ks[0], (C, C, 1, 1)),
        "proj1_b": u(ks[1], (C,)),
        "conv0_w": u(ks[2], (C, 1, d_k, d_k)),
        "conv0_b": u(ks[3], (C,)),
        "convsp_w": u(ks[4], (C, 1, dd_k, dd_k)),
        "convsp_b": u(ks[5], (C,)),
        "conv1_w": u(ks[6], (2 * C, C, 1, 1)),
        "conv1_b": u(ks[7], (2 * C,)),
        "proj2_w": u(ks[8], (C, C, 1, 1)),
        "proj2_b": u(ks[9], (C,)),
    }
    x = jax.random.normal(ks[10], (N, C, H, W), dtype=jnp.float32)

    out = spatial_attention(x, params, kernel_size=kernel_size, dilation=dilation)
    out = jax.block_until_ready(out)

    ref = _reference(x, params, kernel_size=kernel_size, dilation=dilation)
    assert out.shape == ref.shape == (N, C, H, W)
    err = float(jnp.max(jnp.abs(out - ref)))
    # bf16 matmul operands + tanh-GELU in the kernel vs f32/erf reference.
    assert jnp.allclose(out, ref, atol=3e-2, rtol=1e-2), f"max abs err {err}"
    print("KERNEL_OK")
</pallas_src>

<mosaic_0001>
module attributes {stable_mosaic.version = 11 : i64} {
  func.func @_spatial_attention_kernel(%arg0: i32, %arg1: memref<1x8x640xf32, #tpu.memory_space<vmem>>, %arg2: memref<1x640xf32, #tpu.memory_space<vmem>>, %arg3: memref<32x8xf32, #tpu.memory_space<vmem>>, %arg4: memref<74x8x1xf32, #tpu.memory_space<vmem>>, %arg5: memref<48x1xf32, #tpu.memory_space<vmem>>, %arg6: memref<1x8x640xf32, #tpu.memory_space<vmem>>) attributes {dimension_semantics = [#tpu.dimension_semantics<parallel>], iteration_bounds = array<i64: 2>, scalar_prefetch = 0 : i64, scratch_operands = 0 : i64, tpu.core_type = #tpu.core_type<tc>, window_params = [{transform_indices = @transform_0, window_bounds = array<i64: 1, 8, 640>}, {pipeline_mode = #tpu.pipeline_mode<synchronous>, transform_indices = @transform_1, window_bounds = array<i64: 1, 640>}, {pipeline_mode = #tpu.pipeline_mode<synchronous>, transform_indices = @transform_2, window_bounds = array<i64: 32, 8>}, {pipeline_mode = #tpu.pipeline_mode<synchronous>, transform_indices = @transform_3, window_bounds = array<i64: 74, 8, 1>}, {pipeline_mode = #tpu.pipeline_mode<synchronous>, transform_indices = @transform_4, window_bounds = array<i64: 48, 1>}, {transform_indices = @transform_5, window_bounds = array<i64: 1, 8, 640>}]} {
    %cst = arith.constant 0.000000e+00 : f32
    %0 = vector.broadcast %cst : f32 to vector<8x400xf32>
    %c0 = arith.constant 0 : index
    %c0_0 = arith.constant 0 : index
    %c0_1 = arith.constant 0 : index
    %1 = vector.load %arg1[%c0, %c0_0, %c0_1] : memref<1x8x640xf32, #tpu.memory_space<vmem>>, vector<1x8x640xf32>
    %2 = vector.shape_cast %1 : vector<1x8x640xf32> to vector<8x640xf32>
    %c0_2 = arith.constant 0 : index
    %c0_3 = arith.constant 0 : index
    %3 = vector.load %arg2[%c0_2, %c0_3] : memref<1x640xf32, #tpu.memory_space<vmem>>, vector<1x640xf32>
    %c0_4 = arith.constant 0 : index
    %c0_5 = arith.constant 0 : index
    %4 = vector.load %arg3[%c0_4, %c0_5] : memref<32x8xf32, #tpu.memory_space<vmem>>, vector<8x8xf32>
    %5 = arith.truncf %4 : vector<8x8xf32> to vector<8x8xbf16>
    %c8 = arith.constant 8 : index
    %c0_6 = arith.constant 0 : index
    %6 = vector.load %arg3[%c8, %c0_6] : memref<32x8xf32, #tpu.memory_space<vmem>>, vector<16x8xf32>
    %7 = arith.truncf %6 : vector<16x8xf32> to vector<16x8xbf16>
    %c24 = arith.constant 24 : index
    %c0_7 = arith.constant 0 : index
    %8 = vector.load %arg3[%c24, %c0_7] : memref<32x8xf32, #tpu.memory_space<vmem>>, vector<8x8xf32>
    %9 = arith.truncf %8 : vector<8x8xf32> to vector<8x8xbf16>
    %c0_8 = arith.constant 0 : index
    %c0_9 = arith.constant 0 : index
    %10 = vector.load %arg5[%c0_8, %c0_9] : memref<48x1xf32, #tpu.memory_space<vmem>>, vector<8x1xf32>
    %c8_10 = arith.constant 8 : index
    %c0_11 = arith.constant 0 : index
    %11 = vector.load %arg5[%c8_10, %c0_11] : memref<48x1xf32, #tpu.memory_space<vmem>>, vector<8x1xf32>
    %c16 = arith.constant 16 : index
    %c0_12 = arith.constant 0 : index
    %12 = vector.load %arg5[%c16, %c0_12] : memref<48x1xf32, #tpu.memory_space<vmem>>, vector<8x1xf32>
    %c24_13 = arith.constant 24 : index
    %c0_14 = arith.constant 0 : index
    %13 = vector.load %arg5[%c24_13, %c0_14] : memref<48x1xf32, #tpu.memory_space<vmem>>, vector<16x1xf32>
    %c40 = arith.constant 40 : index
    %c0_15 = arith.constant 0 : index
    %14 = vector.load %arg5[%c40, %c0_15] : memref<48x1xf32, #tpu.memory_space<vmem>>, vector<8x1xf32>
    %15 = arith.truncf %2 : vector<8x640xf32> to vector<8x640xbf16>
    %cst_16 = arith.constant dense<0.000000e+00> : vector<8x640xf32>
    %16 = tpu.matmul %5, %15, %cst_16 {dimension_numbers = #tpu.dot_dimension_numbers<[1], [0], [0], [1], [0, 0, 1, 1], [], []>} : vector<8x8xbf16>, vector<8x640xbf16>, vector<8x640xf32> -> vector<8x640xf32>
    %17 = vector.broadcast %10 : vector<8x1xf32> to vector<8x640xf32>
    %18 = arith.addf %16, %17 : vector<8x640xf32>
    %cst_17 = arith.constant 5.000000e-01 : f32
    %19 = vector.broadcast %cst_17 : f32 to vector<8x640xf32>
    %20 = arith.mulf %19, %18 : vector<8x640xf32>
    %cst_18 = arith.constant 4.471500e-02 : f32
    %21 = vector.broadcast %cst_18 : f32 to vector<8x640xf32>
    %22 = arith.mulf %21, %18 : vector<8x640xf32>
    %23 = arith.mulf %22, %18 : vector<8x640xf32>
    %24 = arith.mulf %23, %18 : vector<8x640xf32>
    %25 = arith.addf %18, %24 : vector<8x640xf32>
    %cst_19 = arith.constant 0.797884583 : f32
    %26 = vector.broadcast %cst_19 : f32 to vector<8x640xf32>
    %27 = arith.mulf %26, %25 : vector<8x640xf32>
    %28 = math.tanh %27 : vector<8x640xf32>
    %cst_20 = arith.constant 1.000000e+00 : f32
    %29 = vector.broadcast %cst_20 : f32 to vector<8x640xf32>
    %30 = arith.addf %29, %28 : vector<8x640xf32>
    %31 = arith.mulf %20, %30 : vector<8x640xf32>
    %32 = vector.broadcast %3 : vector<1x640xf32> to vector<8x640xf32>
    %33 = arith.mulf %31, %32 : vector<8x640xf32>
    %34 = tpu.concatenate %0, %33, %0 in 1 : vector<8x400xf32>, vector<8x640xf32>, vector<8x400xf32> -> vector<8x1440xf32>
    %cst_21 = arith.constant 0.000000e+00 : f32
    %35 = vector.broadcast %cst_21 : f32 to vector<8x640xf32>
    %c0_22 = arith.constant 0 : index
    %c0_23 = arith.constant 0 : index
    %c0_24 = arith.constant 0 : index
    %36 = vector.load %arg4[%c0_22, %c0_23, %c0_24] : memref<74x8x1xf32, #tpu.memory_space<vmem>>, vector<1x8x1xf32>
    %37 = vector.shape_cast %36 : vector<1x8x1xf32> to vector<8x1xf32>
    %38 = vector.extract_strided_slice %34 {offsets = [0, 318], sizes = [8, 640], strides = [1, 1]} : vector<8x1440xf32> to vector<8x640xf32>
    %39 = vector.broadcast %37 : vector<8x1xf32> to vector<8x640xf32>
    %40 = arith.mulf %39, %38 : vector<8x640xf32>
    %41 = arith.addf %35, %40 : vector<8x640xf32>
    %c1 = arith.constant 1 : index
    %c0_25 = arith.constant 0 : index
    %c0_26 = arith.constant 0 : index
    %42 = vector.load %arg4[%c1, %c0_25, %c0_26] : memref<74x8x1xf32, #tpu.memory_space<vmem>>, vector<1x8x1xf32>
    %43 = vector.shape_cast %42 : vector<1x8x1xf32> to vector<8x1xf32>
    %44 = vector.extract_strided_slice %34 {offsets = [0, 319], sizes = [8, 640], strides = [1, 1]} : vector<8x1440xf32> to vector<8x640xf32>
    %45 = vector.broadcast %43 : vector<8x1xf32> to vector<8x640xf32>
    %46 = arith.mulf %45, %44 : vector<8x640xf32>
    %47 = arith.addf %41, %46 : vector<8x640xf32>
    %c2 = arith.constant 2 : index
    %c0_27 = arith.constant 0 : index
    %c0_28 = arith.constant 0 : index
    %48 = vector.load %arg4[%c2, %c0_27, %c0_28] : memref<74x8x1xf32, #tpu.memory_space<vmem>>, vector<1x8x1xf32>
    %49 = vector.shape_cast %48 : vector<1x8x1xf32> to vector<8x1xf32>
    %50 = vector.extract_strided_slice %34 {offsets = [0, 320], sizes = [8, 640], strides = [1, 1]} : vector<8x1440xf32> to vector<8x640xf32>
    %51 = vector.broadcast %49 : vector<8x1xf32> to vector<8x640xf32>
    %52 = arith.mulf %51, %50 : vector<8x640xf32>
    %53 = arith.addf %47, %52 : vector<8x640xf32>
    %c3 = arith.constant 3 : index
    %c0_29 = arith.constant 0 : index
    %c0_30 = arith.constant 0 : index
    %54 = vector.load %arg4[%c3, %c0_29, %c0_30] : memref<74x8x1xf32, #tpu.memory_space<vmem>>, vector<1x8x1xf32>
    %55 = vector.shape_cast %54 : vector<1x8x1xf32> to vector<8x1xf32>
    %56 = vector.extract_strided_slice %34 {offsets = [0, 321], sizes = [8, 640], strides = [1, 1]} : vector<8x1440xf32> to vector<8x640xf32>
    %57 = vector.broadcast %55 : vector<8x1xf32> to vector<8x640xf32>
    %58 = arith.mulf %57, %56 : vector<8x640xf32>
    %59 = arith.addf %53, %58 : vector<8x640xf32>
    %c4 = arith.constant 4 : index
    %c0_31 = arith.constant 0 : index
    %c0_32 = arith.constant 0 : index
    %60 = vector.load %arg4[%c4, %c0_31, %c0_32] : memref<74x8x1xf32, #tpu.memory_space<vmem>>, vector<1x8x1xf32>
    %61 = vector.shape_cast %60 : vector<1x8x1xf32> to vector<8x1xf32>
    %62 = vector.extract_strided_slice %34 {offsets = [0, 322], sizes = [8, 640], strides = [1, 1]} : vector<8x1440xf32> to vector<8x640xf32>
    %63 = vector.broadcast %61 : vector<8x1xf32> to vector<8x640xf32>
    %64 = arith.mulf %63, %62 : vector<8x640xf32>
    %65 = arith.addf %59, %64 : vector<8x640xf32>
    %c5 = arith.constant 5 : index
    %c0_33 = arith.constant 0 : index
    %c0_34 = arith.constant 0 : index
    %66 = vector.load %arg4[%c5, %c0_33, %c0_34] : memref<74x8x1xf32, #tpu.memory_space<vmem>>, vector<1x8x1xf32>
    %67 = vector.shape_cast %66 : vector<1x8x1xf32> to vector<8x1xf32>
    %68 = vector.extract_strided_slice %34 {offsets = [0, 358], sizes = [8, 640], strides = [1, 1]} : vector<8x1440xf32> to vector<8x640xf32>
    %69 = vector.broadcast %67 : vector<8x1xf32> to vector<8x640xf32>
    %70 = arith.mulf %69, %68 : vector<8x640xf32>
    %71 = arith.addf %65, %70 : vector<8x640xf32>
    %c6 = arith.constant 6 : index
    %c0_35 = arith.constant 0 : index
    %c0_36 = arith.constant 0 : index
    %72 = vector.load %arg4[%c6, %c0_35, %c0_36] : memref<74x8x1xf32, #tpu.memory_space<vmem>>, vector<1x8x1xf32>
    %73 = vector.shape_cast %72 : vector<1x8x1xf32> to vector<8x1xf32>
    %74 = vector.extract_strided_slice %34 {offsets = [0, 359], sizes = [8, 640], strides = [1, 1]} : vector<8x1440xf32> to vector<8x640xf32>
    %75 = vector.broadcast %73 : vector<8x1xf32> to vector<8x640xf32>
    %76 = arith.mulf %75, %74 : vector<8x640xf32>
    %77 = arith.addf %71, %76 : vector<8x640xf32>
    %c7 = arith.constant 7 : index
    %c0_37 = arith.constant 0 : index
    %c0_38 = arith.constant 0 : index
    %78 = vector.load %arg4[%c7, %c0_37, %c0_38] : memref<74x8x1xf32, #tpu.memory_space<vmem>>, vector<1x8x1xf32>
    %79 = vector.shape_cast %78 : vector<1x8x1xf32> to vector<8x1xf32>
    %80 = vector.extract_strided_slice %34 {offsets = [0, 360], sizes = [8, 640], strides = [1, 1]} : vector<8x1440xf32> to vector<8x640xf32>
    %81 = vector.broadcast %79 : vector<8x1xf32> to vector<8x640xf32>
    %82 = arith.mulf %81, %80 : vector<8x640xf32>
    %83 = arith.addf %77, %82 : vector<8x640xf32>
    %c8_39 = arith.constant 8 : index
    %c0_40 = arith.constant 0 : index
    %c0_41 = arith.constant 0 : index
    %84 = vector.load %arg4[%c8_39, %c0_40, %c0_41] : memref<74x8x1xf32, #tpu.memory_space<vmem>>, vector<1x8x1xf32>
    %85 = vector.shape_cast %84 : vector<1x8x1xf32> to vector<8x1xf32>
    %86 = vector.extract_strided_slice %34 {offsets = [0, 361], sizes = [8, 640], strides = [1, 1]} : vector<8x1440xf32> to vector<8x640xf32>
    %87 = vector.broadcast %85 : vector<8x1xf32> to vector<8x640xf32>
    %88 = arith.mulf %87, %86 : vector<8x640xf32>
    %89 = arith.addf %83, %88 : vector<8x640xf32>
    %c9 = arith.constant 9 : index
    %c0_42 = arith.constant 0 : index
    %c0_43 = arith.constant 0 : index
    %90 = vector.load %arg4[%c9, %c0_42, %c0_43] : memref<74x8x1xf32, #tpu.memory_space<vmem>>, vector<1x8x1xf32>
    %91 = vector.shape_cast %90 : vector<1x8x1xf32> to vector<8x1xf32>
    %92 = vector.extract_strided_slice %34 {offsets = [0, 362], sizes = [8, 640], strides = [1, 1]} : vector<8x1440xf32> to vector<8x640xf32>
    %93 = vector.broadcast %91 : vector<8x1xf32> to vector<8x640xf32>
    %94 = arith.mulf %93, %92 : vector<8x640xf32>
    %95 = arith.addf %89, %94 : vector<8x640xf32>
    %c10 = arith.constant 10 : index
    %c0_44 = arith.constant 0 : index
    %c0_45 = arith.constant 0 : index
    %96 = vector.load %arg4[%c10, %c0_44, %c0_45] : memref<74x8x1xf32, #tpu.memory_space<vmem>>, vector<1x8x1xf32>
    %97 = vector.shape_cast %96 : vector<1x8x1xf32> to vector<8x1xf32>
    %98 = vector.extract_strided_slice %34 {offsets = [0, 398], sizes = [8, 640], strides = [1, 1]} : vector<8x1440xf32> to vector<8x640xf32>
    %99 = vector.broadcast %97 : vector<8x1xf32> to vector<8x640xf32>
    %100 = arith.mulf %99, %98 : vector<8x640xf32>
    %101 = arith.addf %95, %100 : vector<8x640xf32>
    %c11 = arith.constant 11 : index
    %c0_46 = arith.constant 0 : index
    %c0_47 = arith.constant 0 : index
    %102 = vector.load %arg4[%c11, %c0_46, %c0_47] : memref<74x8x1xf32, #tpu.memory_space<vmem>>, vector<1x8x1xf32>
    %103 = vector.shape_cast %102 : vector<1x8x1xf32> to vector<8x1xf32>
    %104 = vector.extract_strided_slice %34 {offsets = [0, 399], sizes = [8, 640], strides = [1, 1]} : vector<8x1440xf32> to vector<8x640xf32>
    %105 = vector.broadcast %103 : vector<8x1xf32> to vector<8x640xf32>
    %106 = arith.mulf %105, %104 : vector<8x640xf32>
    %107 = arith.addf %101, %106 : vector<8x640xf32>
    %c12 = arith.constant 12 : index
    %c0_48 = arith.constant 0 : index
    %c0_49 = arith.constant 0 : index
    %108 = vector.load %arg4[%c12, %c0_48, %c0_49] : memref<74x8x1xf32, #tpu.memory_space<vmem>>, vector<1x8x1xf32>
    %109 = vector.shape_cast %108 : vector<1x8x1xf32> to vector<8x1xf32>
    %110 = vector.extract_strided_slice %34 {offsets = [0, 400], sizes = [8, 640], strides = [1, 1]} : vector<8x1440xf32> to vector<8x640xf32>
    %111 = vector.broadcast %109 : vector<8x1xf32> to vector<8x640xf32>
    %112 = arith.mulf %111, %110 : vector<8x640xf32>
    %113 = arith.addf %107, %112 : vector<8x640xf32>
    %c13 = arith.constant 13 : index
    %c0_50 = arith.constant 0 : index
    %c0_51 = arith.constant 0 : index
    %114 = vector.load %arg4[%c13, %c0_50, %c0_51] : memref<74x8x1xf32, #tpu.memory_space<vmem>>, vector<1x8x1xf32>
    %115 = vector.shape_cast %114 : vector<1x8x1xf32> to vector<8x1xf32>
    %116 = vector.extract_strided_slice %34 {offsets = [0, 401], sizes = [8, 640], strides = [1, 1]} : vector<8x1440xf32> to vector<8x640xf32>
    %117 = vector.broadcast %115 : vector<8x1xf32> to vector<8x640xf32>
    %118 = arith.mulf %117, %116 : vector<8x640xf32>
    %119 = arith.addf %113, %118 : vector<8x640xf32>
    %c14 = arith.constant 14 : index
    %c0_52 = arith.constant 0 : index
    %c0_53 = arith.constant 0 : index
    %120 = vector.load %arg4[%c14, %c0_52, %c0_53] : memref<74x8x1xf32, #tpu.memory_space<vmem>>, vector<1x8x1xf32>
    %121 = vector.shape_cast %120 : vector<1x8x1xf32> to vector<8x1xf32>
    %122 = vector.extract_strided_slice %34 {offsets = [0, 402], sizes = [8, 640], strides = [1, 1]} : vector<8x1440xf32> to vector<8x640xf32>
    %123 = vector.broadcast %121 : vector<8x1xf32> to vector<8x640xf32>
    %124 = arith.mulf %123, %122 : vector<8x640xf32>
    %125 = arith.addf %119, %124 : vector<8x640xf32>
    %c15 = arith.constant 15 : index
    %c0_54 = arith.constant 0 : index
    %c0_55 = arith.constant 0 : index
    %126 = vector.load %arg4[%c15, %c0_54, %c0_55] : memref<74x8x1xf32, #tpu.memory_space<vmem>>, vector<1x8x1xf32>
    %127 = vector.shape_cast %126 : vector<1x8x1xf32> to vector<8x1xf32>
    %128 = vector.extract_strided_slice %34 {offsets = [0, 438], sizes = [8, 640], strides = [1, 1]} : vector<8x1440xf32> to vector<8x640xf32>
    %129 = vector.broadcast %127 : vector<8x1xf32> to vector<8x640xf32>
    %130 = arith.mulf %129, %128 : vector<8x640xf32>
    %131 = arith.addf %125, %130 : vector<8x640xf32>
    %c16_56 = arith.constant 16 : index
    %c0_57 = arith.constant 0 : index
    %c0_58 = arith.constant 0 : index
    %132 = vector.load %arg4[%c16_56, %c0_57, %c0_58] : memref<74x8x1xf32, #tpu.memory_space<vmem>>, vector<1x8x1xf32>
    %133 = vector.shape_cast %132 : vector<1x8x1xf32> to vector<8x1xf32>
    %134 = vector.extract_strided_slice %34 {offsets = [0, 439], sizes = [8, 640], strides = [1, 1]} : vector<8x1440xf32> to vector<8x640xf32>
    %135 = vector.broadcast %133 : vector<8x1xf32> to vector<8x640xf32>
    %136 = arith.mulf %135, %134 : vector<8x640xf32>
    %137 = arith.addf %131, %136 : vector<8x640xf32>
    %c17 = arith.constant 17 : index
    %c0_59 = arith.constant 0 : index
    %c0_60 = arith.constant 0 : index
    %138 = vector.load %arg4[%c17, %c0_59, %c0_60] : memref<74x8x1xf32, #tpu.memory_space<vmem>>, vector<1x8x1xf32>
    %139 = vector.shape_cast %138 : vector<1x8x1xf32> to vector<8x1xf32>
    %140 = vector.extract_strided_slice %34 {offsets = [0, 440], sizes = [8, 640], strides = [1, 1]} : vector<8x1440xf32> to vector<8x640xf32>
    %141 = vector.broadcast %139 : vector<8x1xf32> to vector<8x640xf32>
    %142 = arith.mulf %141, %140 : vector<8x640xf32>
    %143 = arith.addf %137, %142 : vector<8x640xf32>
    %c18 = arith.constant 18 : index
    %c0_61 = arith.constant 0 : index
    %c0_62 = arith.constant 0 : index
    %144 = vector.load %arg4[%c18, %c0_61, %c0_62] : memref<74x8x1xf32, #tpu.memory_space<vmem>>, vector<1x8x1xf32>
    %145 = vector.shape_cast %144 : vector<1x8x1xf32> to vector<8x1xf32>
    %146 = vector.extract_strided_slice %34 {offsets = [0, 441], sizes = [8, 640], strides = [1, 1]} : vector<8x1440xf32> to vector<8x640xf32>
    %147 = vector.broadcast %145 : vector<8x1xf32> to vector<8x640xf32>
    %148 = arith.mulf %147, %146 : vector<8x640xf32>
    %149 = arith.addf %143, %148 : vector<8x640xf32>
    %c19 = arith.constant 19 : index
    %c0_63 = arith.constant 0 : index
    %c0_64 = arith.constant 0 : index
    %150 = vector.load %arg4[%c19, %c0_63, %c0_64] : memref<74x8x1xf32, #tpu.memory_space<vmem>>, vector<1x8x1xf32>
    %151 = vector.shape_cast %150 : vector<1x8x1xf32> to vector<8x1xf32>
    %152 = vector.extract_strided_slice %34 {offsets = [0, 442], sizes = [8, 640], strides = [1, 1]} : vector<8x1440xf32> to vector<8x640xf32>
    %153 = vector.broadcast %151 : vector<8x1xf32> to vector<8x640xf32>
    %154 = arith.mulf %153, %152 : vector<8x640xf32>
    %155 = arith.addf %149, %154 : vector<8x640xf32>
    %c20 = arith.constant 20 : index
    %c0_65 = arith.constant 0 : index
    %c0_66 = arith.constant 0 : index
    %156 = vector.load %arg4[%c20, %c0_65, %c0_66] : memref<74x8x1xf32, #tpu.memory_space<vmem>>, vector<1x8x1xf32>
    %157 = vector.shape_cast %156 : vector<1x8x1xf32> to vector<8x1xf32>
    %158 = vector.extract_strided_slice %34 {offsets = [0, 478], sizes = [8, 640], strides = [1, 1]} : vector<8x1440xf32> to vector<8x640xf32>
    %159 = vector.broadcast %157 : vector<8x1xf32> to vector<8x640xf32>
    %160 = arith.mulf %159, %158 : vector<8x640xf32>
    %161 = arith.addf %155, %160 : vector<8x640xf32>
    %c21 = arith.constant 21 : index
    %c0_67 = arith.constant 0 : index
    %c0_68 = arith.constant 0 : index
    %162 = vector.load %arg4[%c21, %c0_67, %c0_68] : memref<74x8x1xf32, #tpu.memory_space<vmem>>, vector<1x8x1xf32>
    %163 = vector.shape_cast %162 : vector<1x8x1xf32> to vector<8x1xf32>
    %164 = vector.extract_strided_slice %34 {offsets = [0, 479], sizes = [8, 640], strides = [1, 1]} : vector<8x1440xf32> to vector<8x640xf32>
    %165 = vector.broadcast %163 : vector<8x1xf32> to vector<8x640xf32>
    %166 = arith.mulf %165, %164 : vector<8x640xf32>
    %167 = arith.addf %161, %166 : vector<8x640xf32>
    %c22 = arith.constant 22 : index
    %c0_69 = arith.constant 0 : index
    %c0_70 = arith.constant 0 : index
    %168 = vector.load %arg4[%c22, %c0_69, %c0_70] : memref<74x8x1xf32, #tpu.memory_space<vmem>>, vector<1x8x1xf32>
    %169 = vector.shape_cast %168 : vector<1x8x1xf32> to vector<8x1xf32>
    %170 = vector.extract_strided_slice %34 {offsets = [0, 480], sizes = [8, 640], strides = [1, 1]} : vector<8x1440xf32> to vector<8x640xf32>
    %171 = vector.broadcast %169 : vector<8x1xf32> to vector<8x640xf32>
    %172 = arith.mulf %171, %170 : vector<8x640xf32>
    %173 = arith.addf %167, %172 : vector<8x640xf32>
    %c23 = arith.constant 23 : index
    %c0_71 = arith.constant 0 : index
    %c0_72 = arith.constant 0 : index
    %174 = vector.load %arg4[%c23, %c0_71, %c0_72] : memref<74x8x1xf32, #tpu.memory_space<vmem>>, vector<1x8x1xf32>
    %175 = vector.shape_cast %174 : vector<1x8x1xf32> to vector<8x1xf32>
    %176 = vector.extract_strided_slice %34 {offsets = [0, 481], sizes = [8, 640], strides = [1, 1]} : vector<8x1440xf32> to vector<8x640xf32>
    %177 = vector.broadcast %175 : vector<8x1xf32> to vector<8x640xf32>
    %178 = arith.mulf %177, %176 : vector<8x640xf32>
    %179 = arith.addf %173, %178 : vector<8x640xf32>
    %c24_73 = arith.constant 24 : index
    %c0_74 = arith.constant 0 : index
    %c0_75 = arith.constant 0 : index
    %180 = vector.load %arg4[%c24_73, %c0_74, %c0_75] : memref<74x8x1xf32, #tpu.memory_space<vmem>>, vector<1x8x1xf32>
    %181 = vector.shape_cast %180 : vector<1x8x1xf32> to vector<8x1xf32>
    %182 = vector.extract_strided_slice %34 {offsets = [0, 482], sizes = [8, 640], strides = [1, 1]} : vector<8x1440xf32> to vector<8x640xf32>
    %183 = vector.broadcast %181 : vector<8x1xf32> to vector<8x640xf32>
    %184 = arith.mulf %183, %182 : vector<8x640xf32>
    %185 = arith.addf %179, %184 : vector<8x640xf32>
    %186 = vector.broadcast %11 : vector<8x1xf32> to vector<8x640xf32>
    %187 = arith.addf %185, %186 : vector<8x640xf32>
    %188 = vector.broadcast %3 : vector<1x640xf32> to vector<8x640xf32>
    %189 = arith.mulf %187, %188 : vector<8x640xf32>
    %190 = tpu.concatenate %0, %189, %0 in 1 : vector<8x400xf32>, vector<8x640xf32>, vector<8x400xf32> -> vector<8x1440xf32>
    %cst_76 = arith.constant 0.000000e+00 : f32
    %191 = vector.broadcast %cst_76 : f32 to vector<8x640xf32>
    %c25 = arith.constant 25 : index
    %c0_77 = arith.constant 0 : index
    %c0_78 = arith.constant 0 : index
    %192 = vector.load %arg4[%c25, %c0_77, %c0_78] : memref<74x8x1xf32, #tpu.memory_space<vmem>>, vector<1x8x1xf32>
    %193 = vector.shape_cast %192 : vector<1x8x1xf32> to vector<8x1xf32>
    %194 = vector.extract_strided_slice %190 {offsets = [0, 31], sizes = [8, 640], strides = [1, 1]} : vector<8x1440xf32> to vector<8x640xf32>
    %195 = vector.broadcast %193 : vector<8x1xf32> to vector<8x640xf32>
    %196 = arith.mulf %195, %194 : vector<8x640xf32>
    %197 = arith.addf %191, %196 : vector<8x640xf32>
    %c26 = arith.constant 26 : index
    %c0_79 = arith.constant 0 : index
    %c0_80 = arith.constant 0 : index
    %198 = vector.load %arg4[%c26, %c0_79, %c0_80] : memref<74x8x1xf32, #tpu.memory_space<vmem>>, vector<1x8x1xf32>
    %199 = vector.shape_cast %198 : vector<1x8x1xf32> to vector<8x1xf32>
    %200 = vector.extract_strided_slice %190 {offsets = [0, 34], sizes = [8, 640], strides = [1, 1]} : vector<8x1440xf32> to vector<8x640xf32>
    %201 = vector.broadcast %199 : vector<8x1xf32> to vector<8x640xf32>
    %202 = arith.mulf %201, %200 : vector<8x640xf32>
    %203 = arith.addf %197, %202 : vector<8x640xf32>
    %c27 = arith.constant 27 : index
    %c0_81 = arith.constant 0 : index
    %c0_82 = arith.constant 0 : index
    %204 = vector.load %arg4[%c27, %c0_81, %c0_82] : memref<74x8x1xf32, #tpu.memory_space<vmem>>, vector<1x8x1xf32>
    %205 = vector.shape_cast %204 : vector<1x8x1xf32> to vector<8x1xf32>
    %206 = vector.extract_strided_slice %190 {offsets = [0, 37], sizes = [8, 640], strides = [1, 1]} : vector<8x1440xf32> to vector<8x640xf32>
    %207 = vector.broadcast %205 : vector<8x1xf32> to vector<8x640xf32>
    %208 = arith.mulf %207, %206 : vector<8x640xf32>
    %209 = arith.addf %203, %208 : vector<8x640xf32>
    %c28 = arith.constant 28 : index
    %c0_83 = arith.constant 0 : index
    %c0_84 = arith.constant 0 : index
    %210 = vector.load %arg4[%c28, %c0_83, %c0_84] : memref<74x8x1xf32, #tpu.memory_space<vmem>>, vector<1x8x1xf32>
    %211 = vector.shape_cast %210 : vector<1x8x1xf32> to vector<8x1xf32>
    %212 = vector.extract_strided_slice %190 {offsets = [0, 40], sizes = [8, 640], strides = [1, 1]} : vector<8x1440xf32> to vector<8x640xf32>
    %213 = vector.broadcast %211 : vector<8x1xf32> to vector<8x640xf32>
    %214 = arith.mulf %213, %212 : vector<8x640xf32>
    %215 = arith.addf %209, %214 : vector<8x640xf32>
    %c29 = arith.constant 29 : index
    %c0_85 = arith.constant 0 : index
    %c0_86 = arith.constant 0 : index
    %216 = vector.load %arg4[%c29, %c0_85, %c0_86] : memref<74x8x1xf32, #tpu.memory_space<vmem>>, vector<1x8x1xf32>
    %217 = vector.shape_cast %216 : vector<1x8x1xf32> to vector<8x1xf32>
    %218 = vector.extract_strided_slice %190 {offsets = [0, 43], sizes = [8, 640], strides = [1, 1]} : vector<8x1440xf32> to vector<8x640xf32>
    %219 = vector.broadcast %217 : vector<8x1xf32> to vector<8x640xf32>
    %220 = arith.mulf %219, %218 : vector<8x640xf32>
    %221 = arith.addf %215, %220 : vector<8x640xf32>
    %c30 = arith.constant 30 : index
    %c0_87 = arith.constant 0 : index
    %c0_88 = arith.constant 0 : index
    %222 = vector.load %arg4[%c30, %c0_87, %c0_88] : memref<74x8x1xf32, #tpu.memory_space<vmem>>, vector<1x8x1xf32>
    %223 = vector.shape_cast %222 : vector<1x8x1xf32> to vector<8x1xf32>
    %224 = vector.extract_strided_slice %190 {offsets = [0, 46], sizes = [8, 640], strides = [1, 1]} : vector<8x1440xf32> to vector<8x640xf32>
    %225 = vector.broadcast %223 : vector<8x1xf32> to vector<8x640xf32>
    %226 = arith.mulf %225, %224 : vector<8x640xf32>
    %227 = arith.addf %221, %226 : vector<8x640xf32>
    %c31 = arith.constant 31 : index
    %c0_89 = arith.constant 0 : index
    %c0_90 = arith.constant 0 : index
    %228 = vector.load %arg4[%c31, %c0_89, %c0_90] : memref<74x8x1xf32, #tpu.memory_space<vmem>>, vector<1x8x1xf32>
    %229 = vector.shape_cast %228 : vector<1x8x1xf32> to vector<8x1xf32>
    %230 = vector.extract_strided_slice %190 {offsets = [0, 49], sizes = [8, 640], strides = [1, 1]} : vector<8x1440xf32> to vector<8x640xf32>
    %231 = vector.broadcast %229 : vector<8x1xf32> to vector<8x640xf32>
    %232 = arith.mulf %231, %230 : vector<8x640xf32>
    %233 = arith.addf %227, %232 : vector<8x640xf32>
    %c32 = arith.constant 32 : index
    %c0_91 = arith.constant 0 : index
    %c0_92 = arith.constant 0 : index
    %234 = vector.load %arg4[%c32, %c0_91, %c0_92] : memref<74x8x1xf32, #tpu.memory_space<vmem>>, vector<1x8x1xf32>
    %235 = vector.shape_cast %234 : vector<1x8x1xf32> to vector<8x1xf32>
    %236 = vector.extract_strided_slice %190 {offsets = [0, 151], sizes = [8, 640], strides = [1, 1]} : vector<8x1440xf32> to vector<8x640xf32>
    %237 = vector.broadcast %235 : vector<8x1xf32> to vector<8x640xf32>
    %238 = arith.mulf %237, %236 : vector<8x640xf32>
    %239 = arith.addf %233, %238 : vector<8x640xf32>
    %c33 = arith.constant 33 : index
    %c0_93 = arith.constant 0 : index
    %c0_94 = arith.constant 0 : index
    %240 = vector.load %arg4[%c33, %c0_93, %c0_94] : memref<74x8x1xf32, #tpu.memory_space<vmem>>, vector<1x8x1xf32>
    %241 = vector.shape_cast %240 : vector<1x8x1xf32> to vector<8x1xf32>
    %242 = vector.extract_strided_slice %190 {offsets = [0, 154], sizes = [8, 640], strides = [1, 1]} : vector<8x1440xf32> to vector<8x640xf32>
    %243 = vector.broadcast %241 : vector<8x1xf32> to vector<8x640xf32>
    %244 = arith.mulf %243, %242 : vector<8x640xf32>
    %245 = arith.addf %239, %244 : vector<8x640xf32>
    %c34 = arith.constant 34 : index
    %c0_95 = arith.constant 0 : index
    %c0_96 = arith.constant 0 : index
    %246 = vector.load %arg4[%c34, %c0_95, %c0_96] : memref<74x8x1xf32, #tpu.memory_space<vmem>>, vector<1x8x1xf32>
    %247 = vector.shape_cast %246 : vector<1x8x1xf32> to vector<8x1xf32>
    %248 = vector.extract_strided_slice %190 {offsets = [0, 157], sizes = [8, 640], strides = [1, 1]} : vector<8x1440xf32> to vector<8x640xf32>
    %249 = vector.broadcast %247 : vector<8x1xf32> to vector<8x640xf32>
    %250 = arith.mulf %249, %248 : vector<8x640xf32>
    %251 = arith.addf %245, %250 : vector<8x640xf32>
    %c35 = arith.constant 35 : index
    %c0_97 = arith.constant 0 : index
    %c0_98 = arith.constant 0 : index
    %252 = vector.load %arg4[%c35, %c0_97, %c0_98] : memref<74x8x1xf32, #tpu.memory_space<vmem>>, vector<1x8x1xf32>
    %253 = vector.shape_cast %252 : vector<1x8x1xf32> to vector<8x1xf32>
    %254 = vector.extract_strided_slice %190 {offsets = [0, 160], sizes = [8, 640], strides = [1, 1]} : vector<8x1440xf32> to vector<8x640xf32>
    %255 = vector.broadcast %253 : vector<8x1xf32> to vector<8x640xf32>
    %256 = arith.mulf %255, %254 : vector<8x640xf32>
    %257 = arith.addf %251, %256 : vector<8x640xf32>
    %c36 = arith.constant 36 : index
    %c0_99 = arith.constant 0 : index
    %c0_100 = arith.constant 0 : index
    %258 = vector.load %arg4[%c36, %c0_99, %c0_100] : memref<74x8x1xf32, #tpu.memory_space<vmem>>, vector<1x8x1xf32>
    %259 = vector.shape_cast %258 : vector<1x8x1xf32> to vector<8x1xf32>
    %260 = vector.extract_strided_slice %190 {offsets = [0, 163], sizes = [8, 640], strides = [1, 1]} : vector<8x1440xf32> to vector<8x640xf32>
    %261 = vector.broadcast %259 : vector<8x1xf32> to vector<8x640xf32>
    %262 = arith.mulf %261, %260 : vector<8x640xf32>
    %263 = arith.addf %257, %262 : vector<8x640xf32>
    %c37 = arith.constant 37 : index
    %c0_101 = arith.constant 0 : index
    %c0_102 = arith.constant 0 : index
    %264 = vector.load %arg4[%c37, %c0_101, %c0_102] : memref<74x8x1xf32, #tpu.memory_space<vmem>>, vector<1x8x1xf32>
    %265 = vector.shape_cast %264 : vector<1x8x1xf32> to vector<8x1xf32>
    %266 = vector.extract_strided_slice %190 {offsets = [0, 166], sizes = [8, 640], strides = [1, 1]} : vector<8x1440xf32> to vector<8x640xf32>
    %267 = vector.broadcast %265 : vector<8x1xf32> to vector<8x640xf32>
    %268 = arith.mulf %267, %266 : vector<8x640xf32>
    %269 = arith.addf %263, %268 : vector<8x640xf32>
    %c38 = arith.constant 38 : index
    %c0_103 = arith.constant 0 : index
    %c0_104 = arith.constant 0 : index
    %270 = vector.load %arg4[%c38, %c0_103, %c0_104] : memref<74x8x1xf32, #tpu.memory_space<vmem>>, vector<1x8x1xf32>
    %271 = vector.shape_cast %270 : vector<1x8x1xf32> to vector<8x1xf32>
    %272 = vector.extract_strided_slice %190 {offsets = [0, 169], sizes = [8, 640], strides = [1, 1]} : vector<8x1440xf32> to vector<8x640xf32>
    %273 = vector.broadcast %271 : vector<8x1xf32> to vector<8x640xf32>
    %274 = arith.mulf %273, %272 : vector<8x640xf32>
    %275 = arith.addf %269, %274 : vector<8x640xf32>
    %c39 = arith.constant 39 : index
    %c0_105 = arith.constant 0 : index
    %c0_106 = arith.constant 0 : index
    %276 = vector.load %arg4[%c39, %c0_105, %c0_106] : memref<74x8x1xf32, #tpu.memory_space<vmem>>, vector<1x8x1xf32>
    %277 = vector.shape_cast %276 : vector<1x8x1xf32> to vector<8x1xf32>
    %278 = vector.extract_strided_slice %190 {offsets = [0, 271], sizes = [8, 640], strides = [1, 1]} : vector<8x1440xf32> to vector<8x640xf32>
    %279 = vector.broadcast %277 : vector<8x1xf32> to vector<8x640xf32>
    %280 = arith.mulf %279, %278 : vector<8x640xf32>
    %281 = arith.addf %275, %280 : vector<8x640xf32>
    %c40_107 = arith.constant 40 : index
    %c0_108 = arith.constant 0 : index
    %c0_109 = arith.constant 0 : index
    %282 = vector.load %arg4[%c40_107, %c0_108, %c0_109] : memref<74x8x1xf32, #tpu.memory_space<vmem>>, vector<1x8x1xf32>
    %283 = vector.shape_cast %282 : vector<1x8x1xf32> to vector<8x1xf32>
    %284 = vector.extract_strided_slice %190 {offsets = [0, 274], sizes = [8, 640], strides = [1, 1]} : vector<8x1440xf32> to vector<8x640xf32>
    %285 = vector.broadcast %283 : vector<8x1xf32> to vector<8x640xf32>
    %286 = arith.mulf %285, %284 : vector<8x640xf32>
    %287 = arith.addf %281, %286 : vector<8x640xf32>
    %c41 = arith.constant 41 : index
    %c0_110 = arith.constant 0 : index
    %c0_111 = arith.constant 0 : index
    %288 = vector.load %arg4[%c41, %c0_110, %c0_111] : memref<74x8x1xf32, #tpu.memory_space<vmem>>, vector<1x8x1xf32>
    %289 = vector.shape_cast %288 : vector<1x8x1xf32> to vector<8x1xf32>
    %290 = vector.extract_strided_slice %190 {offsets = [0, 277], sizes = [8, 640], strides = [1, 1]} : vector<8x1440xf32> to vector<8x640xf32>
    %291 = vector.broadcast %289 : vector<8x1xf32> to vector<8x640xf32>
    %292 = arith.mulf %291, %290 : vector<8x640xf32>
    %293 = arith.addf %287, %292 : vector<8x640xf32>
    %c42 = arith.constant 42 : index
    %c0_112 = arith.constant 0 : index
    %c0_113 = arith.constant 0 : index
    %294 = vector.load %arg4[%c42, %c0_112, %c0_113] : memref<74x8x1xf32, #tpu.memory_space<vmem>>, vector<1x8x1xf32>
    %295 = vector.shape_cast %294 : vector<1x8x1xf32> to vector<8x1xf32>
    %296 = vector.extract_strided_slice %190 {offsets = [0, 280], sizes = [8, 640], strides = [1, 1]} : vector<8x1440xf32> to vector<8x640xf32>
    %297 = vector.broadcast %295 : vector<8x1xf32> to vector<8x640xf32>
    %298 = arith.mulf %297, %296 : vector<8x640xf32>
    %299 = arith.addf %293, %298 : vector<8x640xf32>
    %c43 = arith.constant 43 : index
    %c0_114 = arith.constant 0 : index
    %c0_115 = arith.constant 0 : index
    %300 = vector.load %arg4[%c43, %c0_114, %c0_115] : memref<74x8x1xf32, #tpu.memory_space<vmem>>, vector<1x8x1xf32>
    %301 = vector.shape_cast %300 : vector<1x8x1xf32> to vector<8x1xf32>
    %302 = vector.extract_strided_slice %190 {offsets = [0, 283], sizes = [8, 640], strides = [1, 1]} : vector<8x1440xf32> to vector<8x640xf32>
    %303 = vector.broadcast %301 : vector<8x1xf32> to vector<8x640xf32>
    %304 = arith.mulf %303, %302 : vector<8x640xf32>
    %305 = arith.addf %299, %304 : vector<8x640xf32>
    %c44 = arith.constant 44 : index
    %c0_116 = arith.constant 0 : index
    %c0_117 = arith.constant 0 : index
    %306 = vector.load %arg4[%c44, %c0_116, %c0_117] : memref<74x8x1xf32, #tpu.memory_space<vmem>>, vector<1x8x1xf32>
    %307 = vector.shape_cast %306 : vector<1x8x1xf32> to vector<8x1xf32>
    %308 = vector.extract_strided_slice %190 {offsets = [0, 286], sizes = [8, 640], strides = [1, 1]} : vector<8x1440xf32> to vector<8x640xf32>
    %309 = vector.broadcast %307 : vector<8x1xf32> to vector<8x640xf32>
    %310 = arith.mulf %309, %308 : vector<8x640xf32>
    %311 = arith.addf %305, %310 : vector<8x640xf32>
    %c45 = arith.constant 45 : index
    %c0_118 = arith.constant 0 : index
    %c0_119 = arith.constant 0 : index
    %312 = vector.load %arg4[%c45, %c0_118, %c0_119] : memref<74x8x1xf32, #tpu.memory_space<vmem>>, vector<1x8x1xf32>
    %313 = vector.shape_cast %312 : vector<1x8x1xf32> to vector<8x1xf32>
    %314 = vector.extract_strided_slice %190 {offsets = [0, 289], sizes = [8, 640], strides = [1, 1]} : vector<8x1440xf32> to vector<8x640xf32>
    %315 = vector.broadcast %313 : vector<8x1xf32> to vector<8x640xf32>
    %316 = arith.mulf %315, %314 : vector<8x640xf32>
    %317 = arith.addf %311, %316 : vector<8x640xf32>
    %c46 = arith.constant 46 : index
    %c0_120 = arith.constant 0 : index
    %c0_121 = arith.constant 0 : index
    %318 = vector.load %arg4[%c46, %c0_120, %c0_121] : memref<74x8x1xf32, #tpu.memory_space<vmem>>, vector<1x8x1xf32>
    %319 = vector.shape_cast %318 : vector<1x8x1xf32> to vector<8x1xf32>
    %320 = vector.extract_strided_slice %190 {offsets = [0, 391], sizes = [8, 640], strides = [1, 1]} : vector<8x1440xf32> to vector<8x640xf32>
    %321 = vector.broadcast %319 : vector<8x1xf32> to vector<8x640xf32>
    %322 = arith.mulf %321, %320 : vector<8x640xf32>
    %323 = arith.addf %317, %322 : vector<8x640xf32>
    %c47 = arith.constant 47 : index
    %c0_122 = arith.constant 0 : index
    %c0_123 = arith.constant 0 : index
    %324 = vector.load %arg4[%c47, %c0_122, %c0_123] : memref<74x8x1xf32, #tpu.memory_space<vmem>>, vector<1x8x1xf32>
    %325 = vector.shape_cast %324 : vector<1x8x1xf32> to vector<8x1xf32>
    %326 = vector.extract_strided_slice %190 {offsets = [0, 394], sizes = [8, 640], strides = [1, 1]} : vector<8x1440xf32> to vector<8x640xf32>
    %327 = vector.broadcast %325 : vector<8x1xf32> to vector<8x640xf32>
    %328 = arith.mulf %327, %326 : vector<8x640xf32>
    %329 = arith.addf %323, %328 : vector<8x640xf32>
    %c48 = arith.constant 48 : index
    %c0_124 = arith.constant 0 : index
    %c0_125 = arith.constant 0 : index
    %330 = vector.load %arg4[%c48, %c0_124, %c0_125] : memref<74x8x1xf32, #tpu.memory_space<vmem>>, vector<1x8x1xf32>
    %331 = vector.shape_cast %330 : vector<1x8x1xf32> to vector<8x1xf32>
    %332 = vector.extract_strided_slice %190 {offsets = [0, 397], sizes = [8, 640], strides = [1, 1]} : vector<8x1440xf32> to vector<8x640xf32>
    %333 = vector.broadcast %331 : vector<8x1xf32> to vector<8x640xf32>
    %334 = arith.mulf %333, %332 : vector<8x640xf32>
    %335 = arith.addf %329, %334 : vector<8x640xf32>
    %c49 = arith.constant 49 : index
    %c0_126 = arith.constant 0 : index
    %c0_127 = arith.constant 0 : index
    %336 = vector.load %arg4[%c49, %c0_126, %c0_127] : memref<74x8x1xf32, #tpu.memory_space<vmem>>, vector<1x8x1xf32>
    %337 = vector.shape_cast %336 : vector<1x8x1xf32> to vector<8x1xf32>
    %338 = vector.extract_strided_slice %190 {offsets = [0, 400], sizes = [8, 640], strides = [1, 1]} : vector<8x1440xf32> to vector<8x640xf32>
    %339 = vector.broadcast %337 : vector<8x1xf32> to vector<8x640xf32>
    %340 = arith.mulf %339, %338 : vector<8x640xf32>
    %341 = arith.addf %335, %340 : vector<8x640xf32>
    %c50 = arith.constant 50 : index
    %c0_128 = arith.constant 0 : index
    %c0_129 = arith.constant 0 : index
    %342 = vector.load %arg4[%c50, %c0_128, %c0_129] : memref<74x8x1xf32, #tpu.memory_space<vmem>>, vector<1x8x1xf32>
    %343 = vector.shape_cast %342 : vector<1x8x1xf32> to vector<8x1xf32>
    %344 = vector.extract_strided_slice %190 {offsets = [0, 403], sizes = [8, 640], strides = [1, 1]} : vector<8x1440xf32> to vector<8x640xf32>
    %345 = vector.broadcast %343 : vector<8x1xf32> to vector<8x640xf32>
    %346 = arith.mulf %345, %344 : vector<8x640xf32>
    %347 = arith.addf %341, %346 : vector<8x640xf32>
    %c51 = arith.constant 51 : index
    %c0_130 = arith.constant 0 : index
    %c0_131 = arith.constant 0 : index
    %348 = vector.load %arg4[%c51, %c0_130, %c0_131] : memref<74x8x1xf32, #tpu.memory_space<vmem>>, vector<1x8x1xf32>
    %349 = vector.shape_cast %348 : vector<1x8x1xf32> to vector<8x1xf32>
    %350 = vector.extract_strided_slice %190 {offsets = [0, 406], sizes = [8, 640], strides = [1, 1]} : vector<8x1440xf32> to vector<8x640xf32>
    %351 = vector.broadcast %349 : vector<8x1xf32> to vector<8x640xf32>
    %352 = arith.mulf %351, %350 : vector<8x640xf32>
    %353 = arith.addf %347, %352 : vector<8x640xf32>
    %c52 = arith.constant 52 : index
    %c0_132 = arith.constant 0 : index
    %c0_133 = arith.constant 0 : index
    %354 = vector.load %arg4[%c52, %c0_132, %c0_133] : memref<74x8x1xf32, #tpu.memory_space<vmem>>, vector<1x8x1xf32>
    %355 = vector.shape_cast %354 : vector<1x8x1xf32> to vector<8x1xf32>
    %356 = vector.extract_strided_slice %190 {offsets = [0, 409], sizes = [8, 640], strides = [1, 1]} : vector<8x1440xf32> to vector<8x640xf32>
    %357 = vector.broadcast %355 : vector<8x1xf32> to vector<8x640xf32>
    %358 = arith.mulf %357, %356 : vector<8x640xf32>
    %359 = arith.addf %353, %358 : vector<8x640xf32>
    %c53 = arith.constant 53 : index
    %c0_134 = arith.constant 0 : index
    %c0_135 = arith.constant 0 : index
    %360 = vector.load %arg4[%c53, %c0_134, %c0_135] : memref<74x8x1xf32, #tpu.memory_space<vmem>>, vector<1x8x1xf32>
    %361 = vector.shape_cast %360 : vector<1x8x1xf32> to vector<8x1xf32>
    %362 = vector.extract_strided_slice %190 {offsets = [0, 511], sizes = [8, 640], strides = [1, 1]} : vector<8x1440xf32> to vector<8x640xf32>
    %363 = vector.broadcast %361 : vector<8x1xf32> to vector<8x640xf32>
    %364 = arith.mulf %363, %362 : vector<8x640xf32>
    %365 = arith.addf %359, %364 : vector<8x640xf32>
    %c54 = arith.constant 54 : index
    %c0_136 = arith.constant 0 : index
    %c0_137 = arith.constant 0 : index
    %366 = vector.load %arg4[%c54, %c0_136, %c0_137] : memref<74x8x1xf32, #tpu.memory_space<vmem>>, vector<1x8x1xf32>
    %367 = vector.shape_cast %366 : vector<1x8x1xf32> to vector<8x1xf32>
    %368 = vector.extract_strided_slice %190 {offsets = [0, 514], sizes = [8, 640], strides = [1, 1]} : vector<8x1440xf32> to vector<8x640xf32>
    %369 = vector.broadcast %367 : vector<8x1xf32> to vector<8x640xf32>
    %370 = arith.mulf %369, %368 : vector<8x640xf32>
    %371 = arith.addf %365, %370 : vector<8x640xf32>
    %c55 = arith.constant 55 : index
    %c0_138 = arith.constant 0 : index
    %c0_139 = arith.constant 0 : index
    %372 = vector.load %arg4[%c55, %c0_138, %c0_139] : memref<74x8x1xf32, #tpu.memory_space<vmem>>, vector<1x8x1xf32>
    %373 = vector.shape_cast %372 : vector<1x8x1xf32> to vector<8x1xf32>
    %374 = vector.extract_strided_slice %190 {offsets = [0, 517], sizes = [8, 640], strides = [1, 1]} : vector<8x1440xf32> to vector<8x640xf32>
    %375 = vector.broadcast %373 : vector<8x1xf32> to vector<8x640xf32>
    %376 = arith.mulf %375, %374 : vector<8x640xf32>
    %377 = arith.addf %371, %376 : vector<8x640xf32>
    %c56 = arith.constant 56 : index
    %c0_140 = arith.constant 0 : index
    %c0_141 = arith.constant 0 : index
    %378 = vector.load %arg4[%c56, %c0_140, %c0_141] : memref<74x8x1xf32, #tpu.memory_space<vmem>>, vector<1x8x1xf32>
    %379 = vector.shape_cast %378 : vector<1x8x1xf32> to vector<8x1xf32>
    %380 = vector.extract_strided_slice %190 {offsets = [0, 520], sizes = [8, 640], strides = [1, 1]} : vector<8x1440xf32> to vector<8x640xf32>
    %381 = vector.broadcast %379 : vector<8x1xf32> to vector<8x640xf32>
    %382 = arith.mulf %381, %380 : vector<8x640xf32>
    %383 = arith.addf %377, %382 : vector<8x640xf32>
    %c57 = arith.constant 57 : index
    %c0_142 = arith.constant 0 : index
    %c0_143 = arith.constant 0 : index
    %384 = vector.load %arg4[%c57, %c0_142, %c0_143] : memref<74x8x1xf32, #tpu.memory_space<vmem>>, vector<1x8x1xf32>
    %385 = vector.shape_cast %384 : vector<1x8x1xf32> to vector<8x1xf32>
    %386 = vector.extract_strided_slice %190 {offsets = [0, 523], sizes = [8, 640], strides = [1, 1]} : vector<8x1440xf32> to vector<8x640xf32>
    %387 = vector.broadcast %385 : vector<8x1xf32> to vector<8x640xf32>
    %388 = arith.mulf %387, %386 : vector<8x640xf32>
    %389 = arith.addf %383, %388 : vector<8x640xf32>
    %c58 = arith.constant 58 : index
    %c0_144 = arith.constant 0 : index
    %c0_145 = arith.constant 0 : index
    %390 = vector.load %arg4[%c58, %c0_144, %c0_145] : memref<74x8x1xf32, #tpu.memory_space<vmem>>, vector<1x8x1xf32>
    %391 = vector.shape_cast %390 : vector<1x8x1xf32> to vector<8x1xf32>
    %392 = vector.extract_strided_slice %190 {offsets = [0, 526], sizes = [8, 640], strides = [1, 1]} : vector<8x1440xf32> to vector<8x640xf32>
    %393 = vector.broadcast %391 : vector<8x1xf32> to vector<8x640xf32>
    %394 = arith.mulf %393, %392 : vector<8x640xf32>
    %395 = arith.addf %389, %394 : vector<8x640xf32>
    %c59 = arith.constant 59 : index
    %c0_146 = arith.constant 0 : index
    %c0_147 = arith.constant 0 : index
    %396 = vector.load %arg4[%c59, %c0_146, %c0_147] : memref<74x8x1xf32, #tpu.memory_space<vmem>>, vector<1x8x1xf32>
    %397 = vector.shape_cast %396 : vector<1x8x1xf32> to vector<8x1xf32>
    %398 = vector.extract_strided_slice %190 {offsets = [0, 529], sizes = [8, 640], strides = [1, 1]} : vector<8x1440xf32> to vector<8x640xf32>
    %399 = vector.broadcast %397 : vector<8x1xf32> to vector<8x640xf32>
    %400 = arith.mulf %399, %398 : vector<8x640xf32>
    %401 = arith.addf %395, %400 : vector<8x640xf32>
    %c60 = arith.constant 60 : index
    %c0_148 = arith.constant 0 : index
    %c0_149 = arith.constant 0 : index
    %402 = vector.load %arg4[%c60, %c0_148, %c0_149] : memref<74x8x1xf32, #tpu.memory_space<vmem>>, vector<1x8x1xf32>
    %403 = vector.shape_cast %402 : vector<1x8x1xf32> to vector<8x1xf32>
    %404 = vector.extract_strided_slice %190 {offsets = [0, 631], sizes = [8, 640], strides = [1, 1]} : vector<8x1440xf32> to vector<8x640xf32>
    %405 = vector.broadcast %403 : vector<8x1xf32> to vector<8x640xf32>
    %406 = arith.mulf %405, %404 : vector<8x640xf32>
    %407 = arith.addf %401, %406 : vector<8x640xf32>
    %c61 = arith.constant 61 : index
    %c0_150 = arith.constant 0 : index
    %c0_151 = arith.constant 0 : index
    %408 = vector.load %arg4[%c61, %c0_150, %c0_151] : memref<74x8x1xf32, #tpu.memory_space<vmem>>, vector<1x8x1xf32>
    %409 = vector.shape_cast %408 : vector<1x8x1xf32> to vector<8x1xf32>
    %410 = vector.extract_strided_slice %190 {offsets = [0, 634], sizes = [8, 640], strides = [1, 1]} : vector<8x1440xf32> to vector<8x640xf32>
    %411 = vector.broadcast %409 : vector<8x1xf32> to vector<8x640xf32>
    %412 = arith.mulf %411, %410 : vector<8x640xf32>
    %413 = arith.addf %407, %412 : vector<8x640xf32>
    %c62 = arith.constant 62 : index
    %c0_152 = arith.constant 0 : index
    %c0_153 = arith.constant 0 : index
    %414 = vector.load %arg4[%c62, %c0_152, %c0_153] : memref<74x8x1xf32, #tpu.memory_space<vmem>>, vector<1x8x1xf32>
    %415 = vector.shape_cast %414 : vector<1x8x1xf32> to vector<8x1xf32>
    %416 = vector.extract_strided_slice %190 {offsets = [0, 637], sizes = [8, 640], strides = [1, 1]} : vector<8x1440xf32> to vector<8x640xf32>
    %417 = vector.broadcast %415 : vector<8x1xf32> to vector<8x640xf32>
    %418 = arith.mulf %417, %416 : vector<8x640xf32>
    %419 = arith.addf %413, %418 : vector<8x640xf32>
    %c63 = arith.constant 63 : index
    %c0_154 = arith.constant 0 : index
    %c0_155 = arith.constant 0 : index
    %420 = vector.load %arg4[%c63, %c0_154, %c0_155] : memref<74x8x1xf32, #tpu.memory_space<vmem>>, vector<1x8x1xf32>
    %421 = vector.shape_cast %420 : vector<1x8x1xf32> to vector<8x1xf32>
    %422 = vector.extract_strided_slice %190 {offsets = [0, 640], sizes = [8, 640], strides = [1, 1]} : vector<8x1440xf32> to vector<8x640xf32>
    %423 = vector.broadcast %421 : vector<8x1xf32> to vector<8x640xf32>
    %424 = arith.mulf %423, %422 : vector<8x640xf32>
    %425 = arith.addf %419, %424 : vector<8x640xf32>
    %c64 = arith.constant 64 : index
    %c0_156 = arith.constant 0 : index
    %c0_157 = arith.constant 0 : index
    %426 = vector.load %arg4[%c64, %c0_156, %c0_157] : memref<74x8x1xf32, #tpu.memory_space<vmem>>, vector<1x8x1xf32>
    %427 = vector.shape_cast %426 : vector<1x8x1xf32> to vector<8x1xf32>
    %428 = vector.extract_strided_slice %190 {offsets = [0, 643], sizes = [8, 640], strides = [1, 1]} : vector<8x1440xf32> to vector<8x640xf32>
    %429 = vector.broadcast %427 : vector<8x1xf32> to vector<8x640xf32>
    %430 = arith.mulf %429, %428 : vector<8x640xf32>
    %431 = arith.addf %425, %430 : vector<8x640xf32>
    %c65 = arith.constant 65 : index
    %c0_158 = arith.constant 0 : index
    %c0_159 = arith.constant 0 : index
    %432 = vector.load %arg4[%c65, %c0_158, %c0_159] : memref<74x8x1xf32, #tpu.memory_space<vmem>>, vector<1x8x1xf32>
    %433 = vector.shape_cast %432 : vector<1x8x1xf32> to vector<8x1xf32>
    %434 = vector.extract_strided_slice %190 {offsets = [0, 646], sizes = [8, 640], strides = [1, 1]} : vector<8x1440xf32> to vector<8x640xf32>
    %435 = vector.broadcast %433 : vector<8x1xf32> to vector<8x640xf32>
    %436 = arith.mulf %435, %434 : vector<8x640xf32>
    %437 = arith.addf %431, %436 : vector<8x640xf32>
    %c66 = arith.constant 66 : index
    %c0_160 = arith.constant 0 : index
    %c0_161 = arith.constant 0 : index
    %438 = vector.load %arg4[%c66, %c0_160, %c0_161] : memref<74x8x1xf32, #tpu.memory_space<vmem>>, vector<1x8x1xf32>
    %439 = vector.shape_cast %438 : vector<1x8x1xf32> to vector<8x1xf32>
    %440 = vector.extract_strided_slice %190 {offsets = [0, 649], sizes = [8, 640], strides = [1, 1]} : vector<8x1440xf32> to vector<8x640xf32>
    %441 = vector.broadcast %439 : vector<8x1xf32> to vector<8x640xf32>
    %442 = arith.mulf %441, %440 : vector<8x640xf32>
    %443 = arith.addf %437, %442 : vector<8x640xf32>
    %c67 = arith.constant 67 : index
    %c0_162 = arith.constant 0 : index
    %c0_163 = arith.constant 0 : index
    %444 = vector.load %arg4[%c67, %c0_162, %c0_163] : memref<74x8x1xf32, #tpu.memory_space<vmem>>, vector<1x8x1xf32>
    %445 = vector.shape_cast %444 : vector<1x8x1xf32> to vector<8x1xf32>
    %446 = vector.extract_strided_slice %190 {offsets = [0, 751], sizes = [8, 640], strides = [1, 1]} : vector<8x1440xf32> to vector<8x640xf32>
    %447 = vector.broadcast %445 : vector<8x1xf32> to vector<8x640xf32>
    %448 = arith.mulf %447, %446 : vector<8x640xf32>
    %449 = arith.addf %443, %448 : vector<8x640xf32>
    %c68 = arith.constant 68 : index
    %c0_164 = arith.constant 0 : index
    %c0_165 = arith.constant 0 : index
    %450 = vector.load %arg4[%c68, %c0_164, %c0_165] : memref<74x8x1xf32, #tpu.memory_space<vmem>>, vector<1x8x1xf32>
    %451 = vector.shape_cast %450 : vector<1x8x1xf32> to vector<8x1xf32>
    %452 = vector.extract_strided_slice %190 {offsets = [0, 754], sizes = [8, 640], strides = [1, 1]} : vector<8x1440xf32> to vector<8x640xf32>
    %453 = vector.broadcast %451 : vector<8x1xf32> to vector<8x640xf32>
    %454 = arith.mulf %453, %452 : vector<8x640xf32>
    %455 = arith.addf %449, %454 : vector<8x640xf32>
    %c69 = arith.constant 69 : index
    %c0_166 = arith.constant 0 : index
    %c0_167 = arith.constant 0 : index
    %456 = vector.load %arg4[%c69, %c0_166, %c0_167] : memref<74x8x1xf32, #tpu.memory_space<vmem>>, vector<1x8x1xf32>
    %457 = vector.shape_cast %456 : vector<1x8x1xf32> to vector<8x1xf32>
    %458 = vector.extract_strided_slice %190 {offsets = [0, 757], sizes = [8, 640], strides = [1, 1]} : vector<8x1440xf32> to vector<8x640xf32>
    %459 = vector.broadcast %457 : vector<8x1xf32> to vector<8x640xf32>
    %460 = arith.mulf %459, %458 : vector<8x640xf32>
    %461 = arith.addf %455, %460 : vector<8x640xf32>
    %c70 = arith.constant 70 : index
    %c0_168 = arith.constant 0 : index
    %c0_169 = arith.constant 0 : index
    %462 = vector.load %arg4[%c70, %c0_168, %c0_169] : memref<74x8x1xf32, #tpu.memory_space<vmem>>, vector<1x8x1xf32>
    %463 = vector.shape_cast %462 : vector<1x8x1xf32> to vector<8x1xf32>
    %464 = vector.extract_strided_slice %190 {offsets = [0, 760], sizes = [8, 640], strides = [1, 1]} : vector<8x1440xf32> to vector<8x640xf32>
    %465 = vector.broadcast %463 : vector<8x1xf32> to vector<8x640xf32>
    %466 = arith.mulf %465, %464 : vector<8x640xf32>
    %467 = arith.addf %461, %466 : vector<8x640xf32>
    %c71 = arith.constant 71 : index
    %c0_170 = arith.constant 0 : index
    %c0_171 = arith.constant 0 : index
    %468 = vector.load %arg4[%c71, %c0_170, %c0_171] : memref<74x8x1xf32, #tpu.memory_space<vmem>>, vector<1x8x1xf32>
    %469 = vector.shape_cast %468 : vector<1x8x1xf32> to vector<8x1xf32>
    %470 = vector.extract_strided_slice %190 {offsets = [0, 763], sizes = [8, 640], strides = [1, 1]} : vector<8x1440xf32> to vector<8x640xf32>
    %471 = vector.broadcast %469 : vector<8x1xf32> to vector<8x640xf32>
    %472 = arith.mulf %471, %470 : vector<8x640xf32>
    %473 = arith.addf %467, %472 : vector<8x640xf32>
    %c72 = arith.constant 72 : index
    %c0_172 = arith.constant 0 : index
    %c0_173 = arith.constant 0 : index
    %474 = vector.load %arg4[%c72, %c0_172, %c0_173] : memref<74x8x1xf32, #tpu.memory_space<vmem>>, vector<1x8x1xf32>
    %475 = vector.shape_cast %474 : vector<1x8x1xf32> to vector<8x1xf32>
    %476 = vector.extract_strided_slice %190 {offsets = [0, 766], sizes = [8, 640], strides = [1, 1]} : vector<8x1440xf32> to vector<8x640xf32>
    %477 = vector.broadcast %475 : vector<8x1xf32> to vector<8x640xf32>
    %478 = arith.mulf %477, %476 : vector<8x640xf32>
    %479 = arith.addf %473, %478 : vector<8x640xf32>
    %c73 = arith.constant 73 : index
    %c0_174 = arith.constant 0 : index
    %c0_175 = arith.constant 0 : index
    %480 = vector.load %arg4[%c73, %c0_174, %c0_175] : memref<74x8x1xf32, #tpu.memory_space<vmem>>, vector<1x8x1xf32>
    %481 = vector.shape_cast %480 : vector<1x8x1xf32> to vector<8x1xf32>
    %482 = vector.extract_strided_slice %190 {offsets = [0, 769], sizes = [8, 640], strides = [1, 1]} : vector<8x1440xf32> to vector<8x640xf32>
    %483 = vector.broadcast %481 : vector<8x1xf32> to vector<8x640xf32>
    %484 = arith.mulf %483, %482 : vector<8x640xf32>
    %485 = arith.addf %479, %484 : vector<8x640xf32>
    %486 = vector.broadcast %12 : vector<8x1xf32> to vector<8x640xf32>
    %487 = arith.addf %485, %486 : vector<8x640xf32>
    %488 = arith.truncf %487 : vector<8x640xf32> to vector<8x640xbf16>
    %cst_176 = arith.constant dense<0.000000e+00> : vector<16x640xf32>
    %489 = tpu.matmul %7, %488, %cst_176 {dimension_numbers = #tpu.dot_dimension_numbers<[1], [0], [0], [1], [0, 0, 1, 1], [], []>} : vector<16x8xbf16>, vector<8x640xbf16>, vector<16x640xf32> -> vector<16x640xf32>
    %490 = vector.broadcast %13 : vector<16x1xf32> to vector<16x640xf32>
    %491 = arith.addf %489, %490 : vector<16x640xf32>
    %492 = vector.extract_strided_slice %491 {offsets = [8, 0], sizes = [8, 640], strides = [1, 1]} : vector<16x640xf32> to vector<8x640xf32>
    %493 = arith.negf %492 : vector<8x640xf32>
    %494 = math.exp %493 : vector<8x640xf32>
    %cst_177 = arith.constant 1.000000e+00 : f32
    %495 = vector.broadcast %cst_177 : f32 to vector<8x640xf32>
    %496 = arith.addf %495, %494 : vector<8x640xf32>
    %497 = arith.divf %495, %496 : vector<8x640xf32>
    %498 = vector.extract_strided_slice %491 {offsets = [0, 0], sizes = [8, 640], strides = [1, 1]} : vector<16x640xf32> to vector<8x640xf32>
    %499 = arith.mulf %497, %498 : vector<8x640xf32>
    %500 = arith.truncf %499 : vector<8x640xf32> to vector<8x640xbf16>
    %cst_178 = arith.constant dense<0.000000e+00> : vector<8x640xf32>
    %501 = tpu.matmul %9, %500, %cst_178 {dimension_numbers = #tpu.dot_dimension_numbers<[1], [0], [0], [1], [0, 0, 1, 1], [], []>} : vector<8x8xbf16>, vector<8x640xbf16>, vector<8x640xf32> -> vector<8x640xf32>
    %502 = vector.broadcast %14 : vector<8x1xf32> to vector<8x640xf32>
    %503 = arith.addf %501, %502 : vector<8x640xf32>
    %504 = arith.addf %503, %2 : vector<8x640xf32>
    %c0_179 = arith.constant 0 : index
    %c0_180 = arith.constant 0 : index
    %c0_181 = arith.constant 0 : index
    %505 = vector.load %arg6[%c0_179, %c0_180, %c0_181] : memref<1x8x640xf32, #tpu.memory_space<vmem>>, vector<1x8x640xf32>
    %506 = vector.shape_cast %505 : vector<1x8x640xf32> to vector<8x640xf32>
    %507 = vector.shape_cast %504 : vector<8x640xf32> to vector<1x8x640xf32>
    tpu.vector_store %arg6[%c0_179, %c0_180, %c0_181], %507 {strides = array<i32>} : memref<1x8x640xf32, #tpu.memory_space<vmem>>, vector<1x8x640xf32>,
    return
  }
  func.func @transform_0(%arg0: i32) -> (i32, i32, i32) {
    %c0_i32 = arith.constant 0 : i32
    %c0_i32_0 = arith.constant 0 : i32
    %c0_i32_1 = arith.constant 0 : i32
    return %arg0, %c0_i32, %c0_i32_0 : i32, i32, i32
  }
  func.func @transform_1(%arg0: i32) -> (i32, i32) {
    %c0_i32 = arith.constant 0 : i32
    %c0_i32_0 = arith.constant 0 : i32
    %c0_i32_1 = arith.constant 0 : i32
    return %c0_i32, %c0_i32_0 : i32, i32
  }
  func.func @transform_2(%arg0: i32) -> (i32, i32) {
    %c0_i32 = arith.constant 0 : i32
    %c0_i32_0 = arith.constant 0 : i32
    %c0_i32_1 = arith.constant 0 : i32
    return %c0_i32, %c0_i32_0 : i32, i32
  }
  func.func @transform_3(%arg0: i32) -> (i32, i32, i32) {
    %c0_i32 = arith.constant 0 : i32
    %c0_i32_0 = arith.constant 0 : i32
    %c0_i32_1 = arith.constant 0 : i32
    %c0_i32_2 = arith.constant 0 : i32
    return %c0_i32, %c0_i32_0, %c0_i32_1 : i32, i32, i32
  }
  func.func @transform_4(%arg0: i32) -> (i32, i32) {
    %c0_i32 = arith.constant 0 : i32
    %c0_i32_0 = arith.constant 0 : i32
    %c0_i32_1 = arith.constant 0 : i32
    return %c0_i32, %c0_i32_0 : i32, i32
  }
  func.func @transform_5(%arg0: i32) -> (i32, i32, i32) {
    %c0_i32 = arith.constant 0 : i32
    %c0_i32_0 = arith.constant 0 : i32
    %c0_i32_1 = arith.constant 0 : i32
    return %arg0, %c0_i32, %c0_i32_0 : i32, i32, i32
  }
}

</mosaic_0001>

<bundles_post_ra>
// kernel: tpu_custom_call.1
= control target key start
LH: loop header
LB: loop body
LE: loop exit
PB: predicated region body
PF: predicated region fallthrough
CT: control target
= control target key end

     0   :  { %10 = vsyncpa [#allocation3], 0  ;;  %s7843_s0 = inlined_call_operand.vmem [shape: f32[2,8,640], index: 0, kind: input, shape index: {}]   ;;  %s7844_s1 = inlined_call_operand.vmem [shape: f32[1,640], index: 1, kind: input, shape index: {}]   ;;  %s7845_s2 = inlined_call_operand.vmem [shape: f32[32,8], index: 2, kind: input, shape index: {}]   ;;  %s7846_s3 = inlined_call_operand.vmem [shape: f32[74,8,1], index: 3, kind: input, shape index: {}]   ;;  %s7847_s4 = inlined_call_operand.vmem [shape: f32[48,1], index: 4, kind: input, shape index: {}]   ;;  %s7848_s5 = inlined_call_operand.hbm [shape: f32[2,8,640], index: 5, kind: output, shape index: {}]  }
   0x1   :  { %12 = vsyncpa [#allocation3 + $0x1], 0  ;;  %s4688_s18 = smov 0   ;;  %s4690_s19 = smov 0  }
   0x2   :  { %s4692_s20 = smov 0   ;;  %s4694_s21 = smov 0  }
   0x3 LB: > { %s4709_s22 = sadd.s32 4294967295, %s4591_s21   ;;  %s4283_s23 = sadd.s32 4294967294, %s4591_s21   ;;  %s4591_s21 = sphi %s4694_s21, %s8552_s21   ;;  %s4587_s20 = sphi %s4692_s20, %s8551_s20   ;;  %s4583_s19 = sphi %s4690_s19, %s8550_s19   ;;  %s4579_s18 = sphi %s4688_s18, %s8549_s18  }
   0x4   : > { %s4713_s24 = sadd.s32 1, %s4591_s21   ;;  %s135_s25 = sadd.s32 1, %s4587_s20 }
   0x5   : > { %s132_s26 = ssub.s32 %s4591_s21, %s4713_s24  ;;  %p145_p0 = scmp.ne.s32.totalorder %s4587_s20, %s4583_s19 }
   0x6   : > { %p133_p1 = scmp.eq.s32.totalorder %s132_s26, 0  ;;  %p146_p2 = scmp.eq.s32.totalorder %s4709_s22, 1 }
   0x7   : > { %p151_p3 = scmp.ne.s32.totalorder %s4583_s19, %s4579_s18  ;;  %p152_p4 = scmp.eq.s32.totalorder %s4283_s23, 1 }
   0x8   : > { %s4724_s27 = scalar_select %p133_p1, %s4587_s20, %s135_s25  }
   0x9   : > { %p4726_p5 = por %p146_p2, %p145_p0  ;;  %p4730_p6 = por %p152_p4, %p151_p3 }
   0xa   : > { %p4286_p7 = scmp.ge.s32.totalorder %s4591_s21, 1  ;;  %p190_p8 = scmp.lt.s32.totalorder %s4591_s21, 3 }
   0xc   : > { %p191_p9 = pnand %p4286_p7, %p190_p8 }
   0xe   : > { %194 = sbr.rel (%p191_p9) target bundleno = 5613 (0x15ed), region = 40 }
  0x13   : > { %v237_v0 = vld [vmem:[%s7847_s4] sm:$0xff]  ;;  %p218_p10 = scmp.lt.s32.totalorder %s4709_s22, 1  ;;  %v4593_v1 = vmov 0   ;;  %v4294_v2 = vld [vmem:[%s7846_s3 + $0x10] sm:$0xff]  ;;  %v4293_v3 = vld [vmem:[%s7846_s3 + $0x8] sm:$0xff]  ;;  %vm7931_vm0 = vcmask 1043456  }
  0x14   : > { %4491 = vset.pattern.permute.xlu0 %v4593_v1  ;;  %4493 = vset.pattern.permute.xlu2 %v4593_v1  ;;  %v427_v4 = vld [vmem:[%s7846_s3] sm:$0xff]  ;;  %v4297_v6 = vld [vmem:[%s7846_s3 + $0x28] sm:$0xff]  ;;  %vm253_vm1 = vcmask 64512   ;;  %v4295_v24 = vld [vmem:[%s7846_s3 + $0x18] sm:$0xff]  ;;  %s7937_s23 = smov 126   ;;  %s4595_s25 = smov 88  }
  0x15   : > { %250 = vperm.xlu0 %4491, %v237_v0   ;;  %s219_s9 = scalar_select %p218_p10, %s4709_s22, 1  ;;  %498 = vperm.xlu2 %4493, %v4294_v2   ;;  %v230_v5 = vld [vmem:[%s7845_s2] sm:$0xff]  ;;  %v4299_v26 = vld [vmem:[%s7846_s3 + $0x38] sm:$0xff]  ;;  %v4298_v27 = vld [vmem:[%s7846_s3 + $0x30] sm:$0xff]  ;;  %vm414_vm2 = vcmask 130048   ;;  %vm476_vm3 = vcmask 1039360  }
  0x16   : > { %4492 = vset.pattern.permute.xlu1 %v4593_v1  ;;  %v231_v20 = vpack.c.bf16 %v230_v5, %v230_v5  ;;  %v4296_v21 = vld [vmem:[%s7846_s3 + $0x20] sm:$0xff]  ;;  %v4303_v28 = vld [vmem:[%s7846_s3 + $0x58] sm:$0xff]  ;;  %v4302_v29 = vld [vmem:[%s7846_s3 + $0x50] sm:$0xff]  ;;  %s4596_s26 = smov 85   ;;  %s4597_s30 = smov 127   ;;  %vm8042_vm4 = vcmask 1031168  }
  0x17   : > { %s4385_s12 = smul.u32 40, %s219_s9  ;;  %449 = vperm.xlu1 %4492, %v4293_v3   ;;  %v4300_v25 = vld [vmem:[%s7846_s3 + $0x40] sm:$0xff]  ;;  %v4301_v30 = vld [vmem:[%s7846_s3 + $0x48] sm:$0xff]  ;;  %v4306_v31 = vld [vmem:[%s7846_s3 + $0x70] sm:$0xff]  ;;  %s4598_s6 = smov 124   ;;  %vm574_vm5 = vcmask 1022976  }
  0x18   : > { %v4305_v32 = vld [vmem:[%s7846_s3 + $0x68] sm:$0xff]  ;;  %v4304_v33 = vld [vmem:[%s7846_s3 + $0x60] sm:$0xff]  ;;  %v4307_v35 = vld [vmem:[%s7846_s3 + $0x78] sm:$0xff]  ;;  %s4599_s7 = smov 125   ;;  %s4600_s8 = smov 86   ;;  %vm623_vm6 = vcmask 1014784  }
  0x19   : > { %s4753_s17 = scalar_lea.vmem %s7843_s0, %s4385_s12  ;;  %v4308_v34 = vld [vmem:[%s7846_s3 + $0x80] sm:$0xff]  ;;  %s4601_s9 = smov 87   ;;  %vm672_vm7 = vcmask 719872   ;;  %vm721_vm8 = vcmask 711680   ;;  %vm770_vm9 = vcmask 703488   ;;  %vm819_vm10 = vcmask 695296  }
  0x1a   : > { %v224_v7 = vld [vmem:[%s4753_s17] sm:$0xff]  ;;  %v225_v8 = vld [vmem:[%s4753_s17 + $0x8] sm:$0xff]  ;;  %v226_v9 = vld [vmem:[%s4753_s17 + $0x10] sm:$0xff]  ;;  %s4602_s10 = smov 84   ;;  %s7849_s13 = smov 16   ;;  %vm868_vm11 = vcmask 687104  }
  0x1b   : > { %v243_v10 = vpack.c.bf16 %v224_v7, %v224_v7  ;;  %v244_v11 = vpack.c.bf16 %v225_v8, %v225_v8  ;;  %v245_v12 = vpack.c.bf16 %v226_v9, %v226_v9  ;;  %v227_v13 = vld [vmem:[%s4753_s17 + $0x18] sm:$0xff]  ;;  %v228_v14 = vld [vmem:[%s4753_s17 + $0x20] sm:$0xff]  ;;  %s7933_s14 = smov 48   ;;  %s4605_s15 = smov 47   ;;  %vm8038_vm12 = vcmask 392192  }
  0x1c   : > { %v246_v15 = vpack.c.bf16 %v227_v13, %v227_v13  ;;  %v247_v16 = vpack.c.bf16 %v228_v14, %v228_v14  ;;  %s4606_s16 = smov 46   ;;  %s7851_s11 = smov 45   ;;  %vm966_vm13 = vcmask 384000   ;;  %vm1015_vm14 = vcmask 375808  }
  0x1d   : > { %430 = vperm.xlu0 %4491, %v427_v4   ;;  %v259_v17 = vsel %vm7931_vm0, %v243_v10, 0  ;;  %v262_v18 = vsel %vm7931_vm0, %v244_v11, 0  ;;  %v265_v19 = vsel %vm7931_vm0, %v245_v12, 0  ;;  %645 = vperm.xlu2 %4493, %v4297_v6   ;;  %s4608_s12 = smov 44   ;;  %vm7932_vm15 = vcmask 367616  }
  0x1e   : > { %280 = vmatpush.bf16.msra.mxu0 %v259_v17  ;;  %293 = vmatpush.bf16.msra.mxu1 %v262_v18  ;;  %v268_v22 = vsel %vm7931_vm0, %v246_v15, 0  ;;  %v271_v23 = vsel %vm7931_vm0, %v247_v16, 0  ;;  %vm1553_vm0 = vcmask 760832  }
  0x1f   : > { %306 = vmatpush.bf16.msra.mxu2 %v265_v19  ;;  %319 = vmatpush.bf16.msra.mxu3 %v268_v22 }
  0x20   : > { %596 = vperm.xlu1 %4492, %v4296_v21   ;;  %v4856_v21 = vld [vmem:[%s7844_s1] sm:$0x1f] }
  0x21   : > { %4288 = vmatmul.msk.bf16.vlgmr.msra.gmra.mxu0 %vm253_vm1, %v231_v20  ;;  %4289 = vmatmul.msk.bf16.vlgmr.msra.gmra.mxu1 %vm253_vm1, %v231_v20 }
  0x22   : > { %332 = vmatpush.bf16.msrb.mxu0 %v271_v23  ;;  %4290 = vmatmul.msk.bf16.vlgmr.msra.gmra.mxu2 %vm253_vm1, %v231_v20 }
  0x23   : > { %4291 = vmatmul.msk.bf16.vlgmr.msra.gmra.mxu3 %vm253_vm1, %v231_v20 }
  0x25   : > { %547 = vperm.xlu0 %4491, %v4295_v24   ;;  %792 = vperm.xlu2 %4493, %v4300_v25  }
  0x28   : > { %743 = vperm.xlu1 %4492, %v4299_v26  }
  0x2d   : > { %694 = vperm.xlu0 %4491, %v4298_v27   ;;  %939 = vperm.xlu2 %4493, %v4303_v28  }
  0x30   : > { %890 = vperm.xlu1 %4492, %v4302_v29   ;;  %v7859_v29 = vperm.slane %v4856_v21, 1 }
  0x31   : > { %4292 = vmatmul.msk.bf16.vlgmr.msrb.gmra.mxu0 %vm253_vm1, %v231_v20 }
  0x35   : > { %841 = vperm.xlu0 %4491, %v4301_v30   ;;  %1086 = vperm.xlu2 %4493, %v4306_v31  }
  0x38   : > { %1037 = vperm.xlu1 %4492, %v4305_v32  }
  0x3d   : > { %988 = vperm.xlu0 %4491, %v4304_v33   ;;  %v7858_v33 = vperm.slane %v4856_v21, 0 }
  0x40   : > { %1183 = vperm.xlu1 %4492, %v4308_v34  }
  0x45   : > { %1135 = vperm.xlu0 %4491, %v4307_v35  }
  0x6f   : > { %v4815_v36 = vpop.permute.xlu2 %498 }
  0x70   : > { %v501_v37 = vmul.f32 0.0, %v4815_v36 }
  0x72   : > { %513 = vrot.lane.b32.xlu0 %v501_v37, %s7937_s23 }
  0x77   : > { %v4819_v38 = vpop.permute.xlu2 %645 }
  0x78   : > { %v648_v39 = vmul.f32 0.0, %v4819_v38 }
  0x7a   : > { %660 = vrot.lane.b32.xlu0 %v648_v39, %s4595_s25 }
  0x7f   : > { %v4823_v40 = vpop.permute.xlu2 %792 }
  0x80   : > { %v795_v41 = vmul.f32 0.0, %v4823_v40 }
  0x82   : > { %807 = vrot.lane.b32.xlu0 %v795_v41, %s4596_s26 }
  0x87   : > { %v251_v42 = vpop.permute.xlu0 %250 }
  0x89   : > { %v4827_v43 = vpop.permute.xlu1 %449 }
  0x8a   : > { %v452_v44 = vmul.f32 0.0, %v4827_v43 }
  0x8c   : > { %464 = vrot.lane.b32.xlu2 %v452_v44, %s4597_s30 }
  0x8f   : > { %v4831_v45 = vpop.permute.xlu0 %430 }
  0x92   : > { %v4833_v46 = vpop.permute.xlu1 %596 }
  0x93   : > { %v599_v47 = vmul.f32 0.0, %v4833_v46 }
  0x95   : > { %611 = vrot.lane.b32.xlu2 %v599_v47, %s4598_s6 }
  0x97   : > { %v4837_v48 = vpop.permute.xlu0 %547 }
  0x98   : > { %v550_v49 = vmul.f32 0.0, %v4837_v48 }
  0x9a   : > { %562 = vrot.lane.b32.xlu1 %v550_v49, %s4599_s7  ;;  %v4841_v50 = vpop.permute.xlu1 %743 }
  0x9b   : > { %v746_v51 = vmul.f32 0.0, %v4841_v50 }
  0x9d   : > { %758 = vrot.lane.b32.xlu2 %v746_v51, %s4600_s8 }
  0x9e   : > { %v282_v52 = vpop.f32.mrf.mxu0  ;;  %v295_v53 = vpop.f32.mrf.mxu1 }
  0x9f   : > { %v283_v54 = vadd.f32 %v282_v52, %v251_v42  ;;  %v296_v55 = vadd.f32 %v295_v53, %v251_v42  ;;  %v4845_v56 = vpop.permute.xlu0 %694 }
  0xa0   : > { %v697_v57 = vmul.f32 0.0, %v4845_v56 }
  0xa1   : > { %v343_v58 = vmul.f32 0.044715, %v283_v54  ;;  %v344_v59 = vmul.f32 0.044715, %v296_v55  ;;  %v339_v31 = vmul.f32 0.5, %v296_v55  ;;  %v338_v35 = vmul.f32 0.5, %v283_v54 }
  0xa2   : > { %709 = vrot.lane.b32.xlu1 %v697_v57, %s4601_s9  ;;  %v7856_v57 = vperm.slane %v4856_v21, 3 }
  0xa3   : > { %v348_v60 = vmul.f32 %v343_v58, %v283_v54  ;;  %v349_v61 = vmul.f32 %v344_v59, %v296_v55 }
  0xa5   : > { %v308_v62 = vpop.f32.mrf.mxu2  ;;  %v354_v0 = vmul.f32 %v349_v61, %v296_v55  ;;  %v353_v1 = vmul.f32 %v348_v60, %v283_v54  ;;  %v7855_v61 = vperm.slane %v4856_v21, 2 }
  0xa6   : > { %v321_v63 = vpop.f32.mrf.mxu3  ;;  %v309_v2 = vadd.f32 %v308_v62, %v251_v42  ;;  %v284_v4 = vpop.f32.mrf.mxu0 }
  0xa7   : > { %v322_v3 = vadd.f32 %v321_v63, %v251_v42  ;;  %v297_v5 = vpop.f32.mrf.mxu1  ;;  %v4849_v6 = vpop.permute.xlu0 %841  ;;  %v359_v7 = vadd.f32 %v354_v0, %v296_v55  ;;  %v358_v8 = vadd.f32 %v353_v1, %v283_v54 }
  0xa8   : > { %v345_v9 = vmul.f32 0.044715, %v309_v2  ;;  %v844_v11 = vmul.f32 0.0, %v4849_v6  ;;  %v340_v59 = vmul.f32 0.5, %v309_v2 }
  0xa9   : > { %v346_v10 = vmul.f32 0.044715, %v322_v3  ;;  %v364_v12 = vmul.f32 0.7978846, %v359_v7  ;;  %v363_v13 = vmul.f32 0.7978846, %v358_v8 }
  0xaa   : > { %v350_v14 = vmul.f32 %v345_v9, %v309_v2  ;;  %856 = vrot.lane.b32.xlu1 %v844_v11, %s4602_s10  ;;  %v341_v54 = vmul.f32 0.5, %v322_v3  ;;  %v4878_v9 = vpop.permute.xlu1 %890 }
  0xab   : > { %v351_v15 = vmul.f32 %v346_v10, %v322_v3  ;;  %4494 = vtanh.f32 %v364_v12 }
  0xac   : > { %4496 = vtanh.f32 %v363_v13  ;;  %v355_v17 = vmul.f32 %v350_v14, %v309_v2 }
  0xad   : > { %v356_v16 = vmul.f32 %v351_v15, %v322_v3  ;;  %v310_v18 = vpop.f32.mrf.mxu2 }
  0xae   : > { %v323_v19 = vpop.f32.mrf.mxu3  ;;  %v334_v20 = vpop.f32.mrf.mxu0  ;;  %v360_v23 = vadd.f32 %v355_v17, %v309_v2  ;;  %v7857_v2 = vperm.slane %v4856_v21, 4 }
  0xaf   : > { %v361_v22 = vadd.f32 %v356_v16, %v322_v3  ;;  %v335_v24 = vadd.f32 %v334_v20, %v251_v42  ;;  %v4882_v11 = vpop.permute.xlu0 %988 }
  0xb0   : > { %v365_v26 = vmul.f32 0.7978846, %v360_v23 }
  0xb1   : > { %v366_v25 = vmul.f32 0.7978846, %v361_v22  ;;  %v4495_v27 = vpop.eup %4494  ;;  %v347_v28 = vmul.f32 0.044715, %v335_v24  ;;  %v342_v4 = vmul.f32 0.5, %v335_v24 }
  0xb2   : > { %v4497_v30 = vpop.eup %4496  ;;  %v374_v32 = vadd.f32 1.0, %v4495_v27  ;;  %v4880_v10 = vpop.permute.xlu1 %1037 }
  0xb3   : > { %4498 = vtanh.f32 %v366_v25  ;;  %v352_v34 = vmul.f32 %v347_v28, %v335_v24  ;;  %v373_v37 = vadd.f32 1.0, %v4497_v30 }
  0xb4   : > { %4500 = vtanh.f32 %v365_v26  ;;  %v379_v39 = vmul.f32 %v374_v32, %v339_v31 }
  0xb5   : > { %v378_v41 = vmul.f32 %v373_v37, %v338_v35  ;;  %v357_v44 = vmul.f32 %v352_v34, %v335_v24 }
  0xb6   : > { %v395_v42 = vmul.f32 %v7859_v29, %v379_v39  ;;  %v336_v47 = vpop.f32.mrf.mxu0 }
  0xb7   : > { %v394_v49 = vmul.f32 %v7858_v33, %v378_v41  ;;  %v362_v51 = vadd.f32 %v357_v44, %v335_v24  ;;  %v4886_v13 = vpop.permute.xlu0 %1135  ;;  %v4945_v44 = vpop.permute.xlu2 %939 }
  0xb8   : > { %406 = vrot.lane.b32.xlu1 %v395_v42, %s7849_s13 }
  0xb9   : > { %v4499_v52 = vpop.eup %4498  ;;  %404 = vrot.lane.b32.xlu0 %v394_v49, %s7849_s13  ;;  %v367_v58 = vmul.f32 0.7978846, %v362_v51 }
  0xba   : > { %v4501_v53 = vpop.eup %4500  ;;  %v376_v55 = vadd.f32 1.0, %v4499_v52  ;;  %v4884_v12 = vpop.permute.xlu1 %1183 }
  0xbb   : > { %v375_v60 = vadd.f32 1.0, %v4501_v53  ;;  %4502 = vtanh.f32 %v367_v58 }
  0xbc   : > { %v381_v62 = vmul.f32 %v376_v55, %v341_v54 }
  0xbd   : > { %v380_v63 = vmul.f32 %v375_v60, %v340_v59 }
  0xbe   : > { %v397_v0 = vmul.f32 %v7856_v57, %v381_v62 }
  0xbf   : > { %v396_v1 = vmul.f32 %v7855_v61, %v380_v63  ;;  %v4956_v51 = vpop.permute.xlu2 %1086 }
  0xc0   : > { %410 = vrot.lane.b32.xlu2 %v397_v0, %s7849_s13 }
  0xc1   : > { %408 = vrot.lane.b32.xlu1 %v396_v1, %s7849_s13  ;;  %v4503_v3 = vpop.eup %4502 }
  0xc2   : > { %v377_v5 = vadd.f32 1.0, %v4503_v3 }
  0xc4   : > { %v382_v7 = vmul.f32 %v377_v5, %v342_v4 }
  0xc6   : > { %v398_v8 = vmul.f32 %v7857_v2, %v382_v7 }
  0xc8   : > { %412 = vrot.lane.b32.xlu2 %v398_v8, %s7849_s13  ;;  %s4609_s13 = smov 8  }
  0xe4   : > { %v4890_v15 = vpop.permute.xlu0 %513 }
  0xe6   : > { %v4967_v55 = vpop.permute.xlu2 %464 }
  0xec   : > { %v4894_v17 = vpop.permute.xlu0 %660 }
  0xef   : > { %v4978_v62 = vpop.permute.xlu2 %611 }
  0xf4   : > { %v4898_v19 = vpop.permute.xlu0 %807 }
  0xf7   : > { %v4995_v7 = vpop.permute.xlu2 %758 }
 0x10c   : > { %v4888_v14 = vpop.permute.xlu1 %562 }
 0x114   : > { %v4892_v16 = vpop.permute.xlu1 %709 }
 0x11c   : > { %v4896_v18 = vpop.permute.xlu1 %856 }
 0x12a   : > { %v4900_v20 = vpop.permute.xlu1 %406 }
 0x12b   : > { %v405_v22 = vpop.permute.xlu0 %404 }
 0x12c   : > { %v4904_v23 = vsel %vm414_vm2, %v405_v22, %v4900_v20  ;;  %v4907_v24 = vsel %vm414_vm2, 0.0, %v405_v22 }
 0x12d   : > { %v453_v25 = vmul.f32 %v4827_v43, %v4907_v24  ;;  %v503_v26 = vmul.f32 %v4815_v36, %v4904_v23  ;;  %v454_v27 = vmul.f32 %v4827_v43, %v4904_v23  ;;  %v552_v28 = vmul.f32 %v4837_v48, %v4904_v23 }
 0x12e   : > { %v551_v30 = vmul.f32 %v4837_v48, %v4907_v24  ;;  %v502_v31 = vmul.f32 %v4815_v36, %v4907_v24  ;;  %v600_v32 = vmul.f32 %v4833_v46, %v4907_v24  ;;  %v650_v34 = vmul.f32 %v4819_v38, %v4904_v23 }
 0x12f   : > { %466 = vrot.lane.b32.xlu0 %v453_v25, %s4597_s30  ;;  %517 = vrot.lane.b32.xlu2 %v503_v26, %s7937_s23  ;;  %v601_v35 = vmul.f32 %v4833_v46, %v4904_v23  ;;  %v699_v37 = vmul.f32 %v4845_v56, %v4904_v23  ;;  %v698_v39 = vmul.f32 %v4845_v56, %v4907_v24 }
 0x130   : > { %468 = vrot.lane.b32.xlu1 %v454_v27, %s4597_s30  ;;  %v649_v41 = vmul.f32 %v4819_v38, %v4907_v24  ;;  %v747_v42 = vmul.f32 %v4841_v50, %v4907_v24  ;;  %v797_v47 = vmul.f32 %v4823_v40, %v4904_v23  ;;  %v748_v49 = vmul.f32 %v4841_v50, %v4904_v23  ;;  %v5009_v27 = vpop.permute.xlu2 %410 }
 0x131   : > { %v846_v52 = vmul.f32 %v4849_v6, %v4904_v23  ;;  %v845_v53 = vmul.f32 %v4849_v6, %v4907_v24  ;;  %v796_v54 = vmul.f32 %v4823_v40, %v4907_v24  ;;  %v894_v58 = vmul.f32 %v4878_v9, %v4904_v23 }
 0x132   : > { %v893_v59 = vmul.f32 %v4878_v9, %v4907_v24  ;;  %v943_v60 = vmul.f32 %v4945_v44, %v4904_v23  ;;  %v942_v63 = vmul.f32 %v4945_v44, %v4907_v24  ;;  %v992_v0 = vmul.f32 %v4882_v11, %v4904_v23 }
 0x133   : > { %v991_v1 = vmul.f32 %v4882_v11, %v4907_v24  ;;  %v1041_v3 = vmul.f32 %v4880_v10, %v4904_v23  ;;  %v1040_v4 = vmul.f32 %v4880_v10, %v4907_v24  ;;  %v1090_v5 = vmul.f32 %v4956_v51, %v4904_v23  ;;  %v409_v26 = vpop.permute.xlu1 %408 }
 0x134   : > { %v1089_v8 = vmul.f32 %v4956_v51, %v4907_v24  ;;  %v1139_v22 = vmul.f32 %v4886_v13, %v4904_v23  ;;  %v1138_v25 = vmul.f32 %v4886_v13, %v4907_v24 }
 0x137   : > { %566 = vrot.lane.b32.xlu0 %v552_v28, %s4599_s7  ;;  %564 = vrot.lane.b32.xlu2 %v551_v30, %s4599_s7  ;;  %v5013_v28 = vsel %vm414_vm2, %v409_v26, %v5009_v27 }
 0x138   : > { %515 = vrot.lane.b32.xlu1 %v502_v31, %s7937_s23  ;;  %v456_v30 = vmul.f32 %v4827_v43, %v5013_v28  ;;  %v1186_v31 = vmul.f32 %v4884_v12, %v4907_v24 }
 0x13f   : > { %613 = vrot.lane.b32.xlu0 %v600_v32, %s4598_s6  ;;  %664 = vrot.lane.b32.xlu2 %v650_v34, %s4595_s25  ;;  %v505_v32 = vmul.f32 %v4815_v36, %v5013_v28  ;;  %v5024_v34 = vpop.permute.xlu2 %412 }
 0x140   : > { %615 = vrot.lane.b32.xlu1 %v601_v35, %s4598_s6  ;;  %v5028_v35 = vsel %vm414_vm2, %v4900_v20, %v409_v26  ;;  %v603_v20 = vmul.f32 %v4833_v46, %v5013_v28 }
 0x141   : > { %v895_v26 = vmul.f32 %v4878_v9, %v5028_v35 }
 0x147   : > { %713 = vrot.lane.b32.xlu0 %v699_v37, %s4601_s9  ;;  %711 = vrot.lane.b32.xlu2 %v698_v39, %s4601_s9  ;;  %v504_v37 = vmul.f32 %v4815_v36, %v5028_v35  ;;  %v455_v39 = vmul.f32 %v4827_v43, %v5028_v35 }
 0x148   : > { %662 = vrot.lane.b32.xlu1 %v649_v41, %s4595_s25  ;;  %v553_v41 = vmul.f32 %v4837_v48, %v5028_v35 }
 0x14f   : > { %760 = vrot.lane.b32.xlu0 %v747_v42, %s4600_s8  ;;  %811 = vrot.lane.b32.xlu2 %v797_v47, %s4596_s26  ;;  %v554_v47 = vmul.f32 %v4837_v48, %v5013_v28 }
 0x150   : > { %762 = vrot.lane.b32.xlu1 %v748_v49, %s4600_s8  ;;  %v652_v49 = vmul.f32 %v4819_v38, %v5013_v28 }
 0x157   : > { %860 = vrot.lane.b32.xlu0 %v846_v52, %s4602_s10  ;;  %858 = vrot.lane.b32.xlu2 %v845_v53, %s4602_s10  ;;  %v651_v53 = vmul.f32 %v4819_v38, %v5028_v35 }
 0x158   : > { %809 = vrot.lane.b32.xlu1 %v796_v54, %s4596_s26  ;;  %v602_v54 = vmul.f32 %v4833_v46, %v5028_v35 }
 0x15f   : > { %907 = vrot.lane.b32.xlu0 %v894_v58, %s7933_s14  ;;  %905 = vrot.lane.b32.xlu2 %v893_v59, %s7933_s14  ;;  %v700_v58 = vmul.f32 %v4845_v56, %v5028_v35 }
 0x160   : > { %956 = vrot.lane.b32.xlu1 %v943_v60, %s4605_s15  ;;  %v750_v60 = vmul.f32 %v4841_v50, %v5013_v28 }
 0x167   : > { %954 = vrot.lane.b32.xlu0 %v942_v63, %s4605_s15  ;;  %1005 = vrot.lane.b32.xlu2 %v992_v0, %s4606_s16  ;;  %v701_v63 = vmul.f32 %v4845_v56, %v5013_v28  ;;  %v799_v0 = vmul.f32 %v4823_v40, %v5013_v28 }
 0x168   : > { %1003 = vrot.lane.b32.xlu1 %v991_v1, %s4606_s16 }
 0x16f   : > { %1054 = vrot.lane.b32.xlu0 %v1041_v3, %s7851_s11  ;;  %1052 = vrot.lane.b32.xlu2 %v1040_v4, %s7851_s11  ;;  %s7853_s11 = smov 7   ;;  %v798_v3 = vmul.f32 %v4823_v40, %v5028_v35  ;;  %v749_v4 = vmul.f32 %v4841_v50, %v5028_v35 }
 0x170   : > { %1103 = vrot.lane.b32.xlu1 %v1090_v5, %s4608_s12  ;;  %v847_v5 = vmul.f32 %v4849_v6, %v5028_v35 }
 0x177   : > { %1101 = vrot.lane.b32.xlu0 %v1089_v8, %s4608_s12  ;;  %1152 = vrot.lane.b32.xlu2 %v1139_v22, %s4609_s13  ;;  %v945_v22 = vmul.f32 %v4945_v44, %v5013_v28 }
 0x178   : > { %1150 = vrot.lane.b32.xlu1 %v1138_v25, %s4609_s13  ;;  %v848_v25 = vmul.f32 %v4849_v6, %v5013_v28 }
 0x17f   : > { %472 = vrot.lane.b32.xlu0 %v456_v30, %s4597_s30  ;;  %1198 = vrot.lane.b32.xlu2 %v1186_v31, %s7853_s11  ;;  %v993_v31 = vmul.f32 %v4882_v11, %v5028_v35  ;;  %s8063_s11 = smov 45  }
 0x180   : > { %521 = vrot.lane.b32.xlu1 %v505_v32, %s7937_s23  ;;  %v896_v32 = vmul.f32 %v4878_v9, %v5013_v28 }
 0x187   : > { %519 = vrot.lane.b32.xlu0 %v504_v37, %s7937_s23  ;;  %470 = vrot.lane.b32.xlu2 %v455_v39, %s4597_s30  ;;  %v994_v37 = vmul.f32 %v4882_v11, %v5013_v28 }
 0x188   : > { %568 = vrot.lane.b32.xlu1 %v553_v41, %s4599_s7  ;;  %v1092_v41 = vmul.f32 %v4956_v51, %v5013_v28 }
 0x189   : > { %v5039_v42 = vpop.permute.xlu2 %517 }
 0x18f   : > { %619 = vrot.lane.b32.xlu0 %v603_v20, %s4598_s6  ;;  %570 = vrot.lane.b32.xlu2 %v554_v47, %s4599_s7  ;;  %v944_v20 = vmul.f32 %v4945_v44, %v5028_v35  ;;  %v1042_v47 = vmul.f32 %v4880_v10, %v5028_v35 }
 0x190   : > { %668 = vrot.lane.b32.xlu1 %v652_v49, %s4595_s25 }
 0x191   : > { %v5050_v52 = vpop.permute.xlu2 %564 }
 0x197   : > { %666 = vrot.lane.b32.xlu0 %v651_v53, %s4595_s25  ;;  %617 = vrot.lane.b32.xlu2 %v602_v54, %s4598_s6  ;;  %v1140_v53 = vmul.f32 %v4886_v13, %v5028_v35  ;;  %v1043_v54 = vmul.f32 %v4880_v10, %v5013_v28 }
 0x198   : > { %715 = vrot.lane.b32.xlu1 %v700_v58, %s4601_s9 }
 0x199   : > { %v5061_v59 = vpop.permute.xlu2 %664 }
 0x19f   : > { %766 = vrot.lane.b32.xlu0 %v750_v60, %s4600_s8  ;;  %717 = vrot.lane.b32.xlu2 %v701_v63, %s4601_s9  ;;  %v1141_v60 = vmul.f32 %v4886_v13, %v5013_v28 }
 0x1a0   : > { %815 = vrot.lane.b32.xlu1 %v799_v0, %s4596_s26  ;;  %v5134_v0 = vsel %vm414_vm2, %v5009_v27, %v5024_v34 }
 0x1a1   : > { %v5072_v1 = vpop.permute.xlu2 %711  ;;  %v5122_v58 = vpop.permute.xlu0 %466  ;;  %v702_v27 = vmul.f32 %v4845_v56, %v5134_v0  ;;  %v653_v56 = vmul.f32 %v4819_v38, %v5134_v0  ;;  %v897_v38 = vmul.f32 %v4878_v9, %v5134_v0 }
 0x1a7   : > { %813 = vrot.lane.b32.xlu0 %v798_v3, %s4596_s26  ;;  %764 = vrot.lane.b32.xlu2 %v749_v4, %s4600_s8  ;;  %v555_v3 = vmul.f32 %v4837_v48, %v5134_v0  ;;  %v1091_v4 = vmul.f32 %v4956_v51, %v5028_v35  ;;  %v506_v48 = vmul.f32 %v4815_v36, %v5134_v0 }
 0x1a8   : > { %862 = vrot.lane.b32.xlu1 %v847_v5, %s4602_s10  ;;  %v457_v5 = vmul.f32 %v4827_v43, %v5134_v0  ;;  %v751_v36 = vmul.f32 %v4841_v50, %v5134_v0  ;;  %v800_v50 = vmul.f32 %v4823_v40, %v5134_v0  ;;  %v946_v40 = vmul.f32 %v4945_v44, %v5134_v0 }
 0x1a9   : > { %v5083_v8 = vpop.permute.xlu2 %811 }
 0x1af   : > { %960 = vrot.lane.b32.xlu0 %v945_v22, %s4605_s15  ;;  %864 = vrot.lane.b32.xlu2 %v848_v25, %s4602_s10  ;;  %v5144_v22 = vpop.permute.xlu0 %566 }
 0x1b0   : > { %909 = vrot.lane.b32.xlu1 %v895_v26, %s7933_s14  ;;  %v604_v26 = vmul.f32 %v4833_v46, %v5134_v0 }
 0x1b1   : > { %v5094_v30 = vpop.permute.xlu2 %858 }
 0x1b7   : > { %1007 = vrot.lane.b32.xlu0 %v993_v31, %s4606_s16  ;;  %911 = vrot.lane.b32.xlu2 %v896_v32, %s7933_s14  ;;  %v5160_v31 = vpop.permute.xlu0 %613  ;;  %v849_v32 = vmul.f32 %v4849_v6, %v5134_v0 }
 0x1b8   : > { %1009 = vrot.lane.b32.xlu1 %v994_v37, %s4606_s16  ;;  %v5175_v37 = vsel %vm414_vm2, %v5024_v34, 0.0 }
 0x1b9   : > { %v5105_v39 = vpop.permute.xlu2 %905  ;;  %v898_v6 = vmul.f32 %v4878_v9, %v5175_v37  ;;  %v996_v34 = vmul.f32 %v4882_v11, %v5175_v37 }
 0x1ba   : > { %8062 = vst [vmem:[#allocation5_spill] sm:$0xff] %v5105_v39 }
 0x1bf   : > { %1107 = vrot.lane.b32.xlu0 %v1092_v41, %s4608_s12  ;;  %958 = vrot.lane.b32.xlu2 %v944_v20, %s4605_s15  ;;  %v5177_v41 = vpop.permute.xlu0 %713 }
 0x1c0   : > { %1056 = vrot.lane.b32.xlu1 %v1042_v47, %s8063_s11  ;;  %v947_v47 = vmul.f32 %v4945_v44, %v5175_v37 }
 0x1c1   : > { %v5116_v49 = vpop.permute.xlu2 %1005 }
 0x1c2   : > { %8064 = vst [vmem:[#allocation6_spill] sm:$0xff] %v5116_v49 }
 0x1c7   : > { %1154 = vrot.lane.b32.xlu0 %v1140_v53, %s4609_s13  ;;  %1058 = vrot.lane.b32.xlu2 %v1043_v54, %s8063_s11  ;;  %v5194_v53 = vpop.permute.xlu0 %760  ;;  %v1044_v54 = vmul.f32 %v4880_v10, %v5134_v0 }
 0x1c8   : > { %1156 = vrot.lane.b32.xlu1 %v1141_v60, %s4609_s13  ;;  %v995_v60 = vmul.f32 %v4882_v11, %v5134_v0  ;;  %v1093_v11 = vmul.f32 %v4956_v51, %v5134_v0 }
 0x1c9   : > { %v5129_v63 = vpop.permute.xlu2 %1052 }
 0x1ca   : > { %8065 = vst [vmem:[#allocation7_spill] sm:$0xff] %v5129_v63 }
 0x1cf   : > { %572 = vrot.lane.b32.xlu0 %v555_v3, %s4599_s7  ;;  %1105 = vrot.lane.b32.xlu2 %v1091_v4, %s4608_s12  ;;  %v1045_v3 = vmul.f32 %v4880_v10, %v5175_v37  ;;  %v5211_v44 = vpop.permute.xlu0 %860 }
 0x1d0   : > { %474 = vrot.lane.b32.xlu1 %v457_v5, %s4597_s30  ;;  %8068 = vst [vmem:[#allocation10_spill] sm:$0xff] %v5211_v44  ;;  %v1143_v5 = vmul.f32 %v4886_v13, %v5175_v37 }
 0x1d1   : > { %v5147_v25 = vpop.permute.xlu2 %1152 }
 0x1d2   : > { %8066 = vst [vmem:[#allocation8_spill] sm:$0xff] %v5147_v25 }
 0x1d7   : > { %719 = vrot.lane.b32.xlu0 %v702_v27, %s4601_s9  ;;  %523 = vrot.lane.b32.xlu2 %v506_v48, %s7937_s23  ;;  %v1094_v27 = vmul.f32 %v4956_v51, %v5175_v37  ;;  %v5227_v48 = vpop.permute.xlu0 %907  ;;  %s7935_s9 = smov 6   ;;  %s4621_s23 = smov 122  }
 0x1d8   : > { %621 = vrot.lane.b32.xlu1 %v604_v26, %s4598_s6  ;;  %8070 = vst [vmem:[#allocation12_spill] sm:$0xff] %v5227_v48  ;;  %v1187_v26 = vmul.f32 %v4884_v12, %v4904_v23 }
 0x1d9   : > { %v5158_v43 = vpop.permute.xlu2 %1198 }
 0x1da   : > { %8067 = vst [vmem:[#allocation9_spill] sm:$0xff] %v5158_v43 }
 0x1df   : > { %866 = vrot.lane.b32.xlu0 %v849_v32, %s4602_s10  ;;  %670 = vrot.lane.b32.xlu2 %v653_v56, %s4595_s25  ;;  %v1142_v32 = vmul.f32 %v4886_v13, %v5134_v0  ;;  %v1188_v56 = vmul.f32 %v4884_v12, %v5028_v35  ;;  %s8071_s25 = smov 7   ;;  %v1191_v13 = vmul.f32 %v4884_v12, %v5175_v37  ;;  %s4616_s10 = smov 94  }
 0x1e0   : > { %768 = vrot.lane.b32.xlu1 %v751_v36, %s4600_s8  ;;  %v5240_v36 = vpop.permute.xlu0 %954  ;;  %s4613_s8 = smov 4  }
 0x1e1   : > { %v5171_v46 = vpop.permute.xlu2 %470  ;;  %8073 = vst [vmem:[#allocation14_spill] sm:$0xff] %v5240_v36 }
 0x1e7   : > { %913 = vrot.lane.b32.xlu0 %v897_v38, %s7933_s14  ;;  %817 = vrot.lane.b32.xlu2 %v800_v50, %s4596_s26  ;;  %v1190_v38 = vmul.f32 %v4884_v12, %v5134_v0  ;;  %v1189_v50 = vmul.f32 %v4884_v12, %v5013_v28  ;;  %s4617_s26 = smov 93  }
 0x1e8   : > { %915 = vrot.lane.b32.xlu1 %v898_v6, %s7933_s14  ;;  %s4643_s14 = smov 17  }
 0x1e9   : > { %v5188_v20 = vpop.permute.xlu2 %570 }
 0x1ef   : > { %1013 = vrot.lane.b32.xlu0 %v996_v34, %s4606_s16  ;;  %964 = vrot.lane.b32.xlu2 %v947_v47, %s4605_s15  ;;  %v4309_v34 = vld [vmem:[%s7846_s3 + $0x88] sm:$0xff]  ;;  %v5256_v47 = vpop.permute.xlu0 %1054 }
 0x1f0   : > { %962 = vrot.lane.b32.xlu1 %v946_v40, %s4605_s15  ;;  %8075 = vst [vmem:[#allocation16_spill] sm:$0xff] %v5256_v47  ;;  %s4615_s15 = smov 95  }
 0x1f1   : > { %v5201_v9 = vpop.permute.xlu2 %617 }
 0x1f7   : > { %1060 = vrot.lane.b32.xlu0 %v1044_v54, %s8063_s11  ;;  %1011 = vrot.lane.b32.xlu2 %v995_v60, %s4606_s16  ;;  %v5260_v54 = vpop.permute.xlu0 %1101  ;;  %s4612_s16 = smov 5  }
 0x1f8   : > { %1062 = vrot.lane.b32.xlu1 %v1045_v3, %s8063_s11  ;;  %8077 = vst [vmem:[#allocation18_spill] sm:$0xff] %v5260_v54 }
 0x1f9   : > { %v5214_v4 = vpop.permute.xlu2 %717 }
 0x1ff   : > { %1160 = vrot.lane.b32.xlu0 %v1143_v5, %s4609_s13  ;;  %1111 = vrot.lane.b32.xlu2 %v1094_v27, %s4608_s12  ;;  %v5266_v3 = vpop.permute.xlu0 %472 }
 0x200   : > { %1109 = vrot.lane.b32.xlu1 %v1093_v11, %s4608_s12  ;;  %s4614_s12 = smov 96  }
 0x201   : > { %v5225_v10 = vpop.permute.xlu2 %764 }
 0x202   : > { %8069 = vst [vmem:[#allocation11_spill] sm:$0xff] %v5225_v10 }
 0x207   : > { %1200 = vrot.lane.b32.xlu0 %v1187_v26, %s8071_s25  ;;  %1158 = vrot.lane.b32.xlu2 %v1142_v32, %s4609_s13  ;;  %v5270_v27 = vpop.permute.xlu0 %519  ;;  %v5274_v26 = vpop.permute.xlu1 %468 }
 0x208   : > { %1202 = vrot.lane.b32.xlu1 %v1188_v56, %s8071_s25 }
 0x209   : > { %v5238_v51 = vpop.permute.xlu2 %864 }
 0x20a   : > { %8072 = vst [vmem:[#allocation13_spill] sm:$0xff] %v5238_v51 }
 0x20f   : > { %1206 = vrot.lane.b32.xlu0 %v1190_v38, %s8071_s25  ;;  %1204 = vrot.lane.b32.xlu2 %v1189_v50, %s8071_s25  ;;  %v5276_v32 = vpop.permute.xlu0 %619  ;;  %v5280_v38 = vpop.permute.xlu1 %515 }
 0x210   : > { %1208 = vrot.lane.b32.xlu1 %v1191_v13, %s8071_s25 }
 0x211   : > { %v5251_v6 = vpop.permute.xlu2 %911 }
 0x212   : > { %8074 = vst [vmem:[#allocation15_spill] sm:$0xff] %v5251_v6 }
 0x217   : > { %1232 = vperm.xlu2 %4493, %v4309_v34   ;;  %v5282_v50 = vpop.permute.xlu0 %666  ;;  %v5286_v34 = vpop.permute.xlu1 %615 }
 0x219   : > { %v5258_v40 = vpop.permute.xlu2 %958 }
 0x21a   : > { %8076 = vst [vmem:[#allocation17_spill] sm:$0xff] %v5258_v40 }
 0x21f   : > { %v5290_v57 = vpop.permute.xlu0 %766  ;;  %v5292_v2 = vpop.permute.xlu1 %662 }
 0x220   : > { %8083 = vst [vmem:[#allocation24_spill] sm:$0xff] %v5290_v57 }
 0x221   : > { %v5262_v12 = vpop.permute.xlu2 %1058 }
 0x222   : > { %8078 = vst [vmem:[#allocation19_spill] sm:$0xff] %v5262_v12 }
 0x227   : > { %v5296_v29 = vpop.permute.xlu0 %813 }
 0x228   : > { %8085 = vst [vmem:[#allocation26_spill] sm:$0xff] %v5296_v29 }
 0x229   : > { %v5264_v60 = vpop.permute.xlu2 %1105 }
 0x22a   : > { %8079 = vst [vmem:[#allocation20_spill] sm:$0xff] %v5264_v60  ;;  %v5300_v60 = vpop.permute.xlu1 %762 }
 0x22f   : > { %v5302_v25 = vpop.permute.xlu0 %960 }
 0x230   : > { %8087 = vst [vmem:[#allocation28_spill] sm:$0xff] %v5302_v25 }
 0x231   : > { %v5268_v5 = vpop.permute.xlu2 %523 }
 0x232   : > { %v5306_v54 = vpop.permute.xlu1 %809 }
 0x237   : > { %v5308_v40 = vpop.permute.xlu0 %1007 }
 0x238   : > { %8089 = vst [vmem:[#allocation30_spill] sm:$0xff] %v5308_v40 }
 0x239   : > { %v5272_v11 = vpop.permute.xlu2 %670 }
 0x241   : > { %v5278_v56 = vpop.permute.xlu2 %817 }
 0x242   : > { %8080 = vst [vmem:[#allocation21_spill] sm:$0xff] %v5278_v56 }
 0x249   : > { %v5284_v13 = vpop.permute.xlu2 %964 }
 0x24a   : > { %8081 = vst [vmem:[#allocation22_spill] sm:$0xff] %v5284_v13 }
 0x251   : > { %v5288_v61 = vpop.permute.xlu2 %1011 }
 0x252   : > { %8082 = vst [vmem:[#allocation23_spill] sm:$0xff] %v5288_v61 }
 0x259   : > { %v5294_v33 = vpop.permute.xlu2 %1111 }
 0x25a   : > { %8084 = vst [vmem:[#allocation25_spill] sm:$0xff] %v5294_v33 }
 0x261   : > { %v5298_v43 = vpop.permute.xlu2 %1158 }
 0x262   : > { %8086 = vst [vmem:[#allocation27_spill] sm:$0xff] %v5298_v43  ;;  %v5316_v43 = vpop.permute.xlu1 %956 }
 0x263   : > { %8090 = vst [vmem:[#allocation31_spill] sm:$0xff] %v5316_v43 }
 0x269   : > { %v5304_v12 = vpop.permute.xlu2 %1204 }
 0x26a   : > { %8088 = vst [vmem:[#allocation29_spill] sm:$0xff] %v5304_v12  ;;  %v5318_v12 = vpop.permute.xlu0 %1107 }
 0x26b   : > { %8091 = vst [vmem:[#allocation32_spill] sm:$0xff] %v5318_v12 }
 0x271   : > { %v1233_v61 = vpop.permute.xlu2 %1232 }
 0x272   : > { %v1237_v47 = vmul.f32 %v1233_v61, %v5028_v35  ;;  %v1235_v13 = vmul.f32 %v1233_v61, %v4907_v24  ;;  %v1236_v33 = vmul.f32 %v1233_v61, %v4904_v23  ;;  %v1240_v40 = vmul.f32 %v1233_v61, %v5175_v37 }
 0x273   : > { %v1238_v63 = vmul.f32 %v1233_v61, %v5013_v28  ;;  %v1239_v49 = vmul.f32 %v1233_v61, %v5134_v0 }
 0x274   : > { %1251 = vrot.lane.b32.xlu2 %v1237_v47, %s7935_s9  ;;  %1247 = vrot.lane.b32.xlu0 %v1235_v13, %s7935_s9  ;;  %v5326_v47 = vpop.permute.xlu1 %1003  ;;  %v5331_v13 = vpop.permute.xlu0 %1154 }
 0x275   : > { %1249 = vrot.lane.b32.xlu1 %v1236_v33, %s7935_s9  ;;  %8092 = vst [vmem:[#allocation33_spill] sm:$0xff] %v5326_v47  ;;  %v4310_v33 = vld [vmem:[%s7846_s3 + $0x90] sm:$0xff] }
 0x276   : > { %8093 = vst [vmem:[#allocation34_spill] sm:$0xff] %v5331_v13 }
 0x27c   : > { %1257 = vrot.lane.b32.xlu2 %v1240_v40, %s7935_s9  ;;  %1253 = vrot.lane.b32.xlu0 %v1238_v63, %s7935_s9  ;;  %v5333_v12 = vpop.permute.xlu1 %1103  ;;  %v5335_v25 = vpop.permute.xlu0 %572 }
 0x27d   : > { %1255 = vrot.lane.b32.xlu1 %v1239_v49, %s7935_s9  ;;  %8094 = vst [vmem:[#allocation35_spill] sm:$0xff] %v5333_v12  ;;  %s4650_s9 = smov 25  }
 0x284   : > { %1281 = vperm.xlu0 %4491, %v4310_v33   ;;  %v5337_v61 = vpop.permute.xlu1 %1150  ;;  %v5339_v40 = vpop.permute.xlu0 %719 }
 0x285   : > { %8095 = vst [vmem:[#allocation36_spill] sm:$0xff] %v5337_v61 }
 0x28c   : > { %v5341_v63 = vpop.permute.xlu1 %521  ;;  %v5343_v49 = vpop.permute.xlu0 %866 }
 0x28d   : > { %8096 = vst [vmem:[#allocation37_spill] sm:$0xff] %v5343_v49 }
 0x294   : > { %v5345_v6 = vpop.permute.xlu1 %568  ;;  %v5347_v51 = vpop.permute.xlu0 %913 }
 0x295   : > { %8097 = vst [vmem:[#allocation38_spill] sm:$0xff] %v5347_v51 }
 0x29c   : > { %v5349_v47 = vpop.permute.xlu1 %668  ;;  %v5351_v13 = vpop.permute.xlu0 %1013 }
 0x29d   : > { %8098 = vst [vmem:[#allocation39_spill] sm:$0xff] %v5351_v13 }
 0x2a4   : > { %v5353_v33 = vpop.permute.xlu1 %715  ;;  %v5355_v12 = vpop.permute.xlu0 %1060 }
 0x2a5   : > { %8099 = vst [vmem:[#allocation40_spill] sm:$0xff] %v5355_v12 }
 0x2ac   : > { %v5357_v43 = vpop.permute.xlu1 %815  ;;  %v5359_v61 = vpop.permute.xlu0 %1160 }
 0x2ad   : > { %8100 = vst [vmem:[#allocation41_spill] sm:$0xff] %v5357_v43 }
 0x2ae   : > { %8101 = vst [vmem:[#allocation42_spill] sm:$0xff] %v5359_v61 }
 0x2b4   : > { %v5361_v48 = vpop.permute.xlu1 %862  ;;  %v5363_v56 = vpop.permute.xlu0 %1200 }
 0x2b5   : > { %8102 = vst [vmem:[#allocation43_spill] sm:$0xff] %v5361_v48 }
 0x2b6   : > { %8103 = vst [vmem:[#allocation44_spill] sm:$0xff] %v5363_v56 }
 0x2bc   : > { %v5365_v49 = vpop.permute.xlu1 %909  ;;  %v5367_v44 = vpop.permute.xlu0 %1206 }
 0x2bd   : > { %8104 = vst [vmem:[#allocation45_spill] sm:$0xff] %v5365_v49 }
 0x2be   : > { %8105 = vst [vmem:[#allocation46_spill] sm:$0xff] %v5367_v44 }
 0x2c4   : > { %v5369_v51 = vpop.permute.xlu1 %1009 }
 0x2c5   : > { %8106 = vst [vmem:[#allocation47_spill] sm:$0xff] %v5369_v51 }
 0x2cc   : > { %v5373_v13 = vpop.permute.xlu1 %1056 }
 0x2cd   : > { %8108 = vst [vmem:[#allocation49_spill] sm:$0xff] %v5373_v13 }
 0x2d4   : > { %v5380_v56 = vpop.permute.xlu1 %1156 }
 0x2d5   : > { %8110 = vst [vmem:[#allocation51_spill] sm:$0xff] %v5380_v56 }
 0x2dc   : > { %v5390_v13 = vpop.permute.xlu1 %474 }
 0x2e6   : > { %v5371_v36 = vpop.permute.xlu0 %1247 }
 0x2e7   : > { %8107 = vst [vmem:[#allocation48_spill] sm:$0xff] %v5371_v36 }
 0x2ee   : > { %v5375_v39 = vpop.permute.xlu0 %1253 }
 0x2ef   : > { %8109 = vst [vmem:[#allocation50_spill] sm:$0xff] %v5375_v39 }
 0x2f6   : > { %v1282_v12 = vpop.permute.xlu0 %1281 }
 0x2f7   : > { %v1286_v43 = vmul.f32 %v1282_v12, %v5028_v35  ;;  %v1285_v61 = vmul.f32 %v1282_v12, %v4904_v23  ;;  %v1284_v48 = vmul.f32 %v1282_v12, %v4907_v24  ;;  %v1289_v36 = vmul.f32 %v1282_v12, %v5175_v37 }
 0x2f8   : > { %v1288_v39 = vmul.f32 %v1282_v12, %v5134_v0  ;;  %v1287_v44 = vmul.f32 %v1282_v12, %v5013_v28 }
 0x2f9   : > { %1300 = vrot.lane.b32.xlu0 %v1286_v43, %s4612_s16  ;;  %1298 = vrot.lane.b32.xlu2 %v1285_v61, %s4612_s16  ;;  %v4311_v43 = vld [vmem:[%s7846_s3 + $0x98] sm:$0xff] }
 0x2fa   : > { %1296 = vrot.lane.b32.xlu1 %v1284_v48, %s4612_s16  ;;  %v5396_v48 = vpop.permute.xlu1 %621 }
 0x301   : > { %1306 = vrot.lane.b32.xlu0 %v1289_v36, %s4612_s16  ;;  %1304 = vrot.lane.b32.xlu2 %v1288_v39, %s4612_s16 }
 0x302   : > { %1302 = vrot.lane.b32.xlu1 %v1287_v44, %s4612_s16  ;;  %v5398_v61 = vpop.permute.xlu1 %768 }
 0x30a   : > { %1330 = vperm.xlu1 %4492, %v4311_v43   ;;  %v5400_v56 = vpop.permute.xlu1 %915 }
 0x30b   : > { %8111 = vst [vmem:[#allocation52_spill] sm:$0xff] %v5400_v56 }
 0x312   : > { %v5402_v12 = vpop.permute.xlu1 %962 }
 0x313   : > { %8112 = vst [vmem:[#allocation53_spill] sm:$0xff] %v5402_v12 }
 0x31a   : > { %v5404_v36 = vpop.permute.xlu1 %1062 }
 0x31b   : > { %8113 = vst [vmem:[#allocation54_spill] sm:$0xff] %v5404_v36 }
 0x322   : > { %v5406_v39 = vpop.permute.xlu1 %1109 }
 0x323   : > { %8114 = vst [vmem:[#allocation55_spill] sm:$0xff] %v5406_v39 }
 0x32a   : > { %v5408_v51 = vpop.permute.xlu1 %1202 }
 0x32b   : > { %8115 = vst [vmem:[#allocation56_spill] sm:$0xff] %v5408_v51 }
 0x332   : > { %v5410_v44 = vpop.permute.xlu1 %1208 }
 0x333   : > { %8116 = vst [vmem:[#allocation57_spill] sm:$0xff] %v5410_v44 }
 0x33a   : > { %v5412_v49 = vpop.permute.xlu1 %1249 }
 0x33b   : > { %8117 = vst [vmem:[#allocation58_spill] sm:$0xff] %v5412_v49 }
 0x342   : > { %v5414_v29 = vpop.permute.xlu1 %1255 }
 0x343   : > { %8118 = vst [vmem:[#allocation59_spill] sm:$0xff] %v5414_v29 }
 0x36c   : > { %v5416_v43 = vpop.permute.xlu1 %1296 }
 0x36d   : > { %8119 = vst [vmem:[#allocation60_spill] sm:$0xff] %v5416_v43 }
 0x374   : > { %v5418_v10 = vpop.permute.xlu1 %1302 }
 0x375   : > { %8120 = vst [vmem:[#allocation61_spill] sm:$0xff] %v5418_v10 }
 0x37c   : > { %v1331_v57 = vpop.permute.xlu1 %1330 }
 0x37d   : > { %v1335_v56 = vmul.f32 %v1331_v57, %v5028_v35  ;;  %v1334_v12 = vmul.f32 %v1331_v57, %v4904_v23  ;;  %v1333_v36 = vmul.f32 %v1331_v57, %v4907_v24  ;;  %v1338_v29 = vmul.f32 %v1331_v57, %v5175_v37 }
 0x37e   : > { %v1337_v43 = vmul.f32 %v1331_v57, %v5134_v0  ;;  %v1336_v10 = vmul.f32 %v1331_v57, %v5013_v28 }
 0x37f   : > { %1349 = vrot.lane.b32.xlu1 %v1335_v56, %s4613_s8  ;;  %1347 = vrot.lane.b32.xlu0 %v1334_v12, %s4613_s8  ;;  %v4312_v56 = vld [vmem:[%s7846_s3 + $0xa0] sm:$0xff]  ;;  %v5435_v12 = vpop.permute.xlu2 %1251 }
 0x380   : > { %1345 = vrot.lane.b32.xlu2 %v1333_v36, %s4613_s8  ;;  %8121 = vst [vmem:[#allocation62_spill] sm:$0xff] %v5435_v12 }
 0x387   : > { %1355 = vrot.lane.b32.xlu1 %v1338_v29, %s4613_s8  ;;  %1353 = vrot.lane.b32.xlu0 %v1337_v43, %s4613_s8  ;;  %v5437_v36 = vpop.permute.xlu2 %1257 }
 0x388   : > { %1351 = vrot.lane.b32.xlu2 %v1336_v10, %s4613_s8  ;;  %8122 = vst [vmem:[#allocation63_spill] sm:$0xff] %v5437_v36 }
 0x38f   : > { %v5439_v49 = vpop.permute.xlu2 %1298 }
 0x390   : > { %1379 = vperm.xlu2 %4493, %v4312_v56   ;;  %8123 = vst [vmem:[#allocation64_spill] sm:$0xff] %v5439_v49 }
 0x397   : > { %v5441_v44 = vpop.permute.xlu2 %1304 }
 0x398   : > { %8124 = vst [vmem:[#allocation65_spill] sm:$0xff] %v5441_v44 }
 0x3da   : > { %v5443_v57 = vpop.permute.xlu2 %1345 }
 0x3db   : > { %8125 = vst [vmem:[#allocation66_spill] sm:$0xff] %v5443_v57  ;;  %v5456_v57 = vpop.permute.xlu0 %1300 }
 0x3dc   : > { %8127 = vst [vmem:[#allocation68_spill] sm:$0xff] %v5456_v57 }
 0x3e2   : > { %v5445_v29 = vpop.permute.xlu2 %1351 }
 0x3e3   : > { %8126 = vst [vmem:[#allocation67_spill] sm:$0xff] %v5445_v29  ;;  %v4313_v29 = vld [vmem:[%s7846_s3 + $0xa8] sm:$0xff]  ;;  %v5458_v36 = vpop.permute.xlu0 %1306 }
 0x3e4   : > { %8128 = vst [vmem:[#allocation69_spill] sm:$0xff] %v5458_v36 }
 0x3ea   : > { %v1380_v43 = vpop.permute.xlu2 %1379 }
 0x3eb   : > { %v1384_v10 = vmul.f32 %v1380_v43, %v5028_v35  ;;  %v1383_v51 = vmul.f32 %v1380_v43, %v4904_v23  ;;  %v1382_v39 = vmul.f32 %v1380_v43, %v4907_v24  ;;  %v1387_v56 = vmul.f32 %v1380_v43, %v5175_v37 }
 0x3ec   : > { %v1386_v49 = vmul.f32 %v1380_v43, %v5134_v0  ;;  %v1385_v44 = vmul.f32 %v1380_v43, %v5013_v28 }
 0x3ed   : > { %1398 = vrot.lane.b32.xlu2 %v1384_v10, %s4614_s12  ;;  %1396 = vrot.lane.b32.xlu1 %v1383_v51, %s4614_s12 }
 0x3ee   : > { %1394 = vrot.lane.b32.xlu0 %v1382_v39, %s4614_s12 }
 0x3f1   : > { %v5460_v51 = vpop.permute.xlu0 %1347 }
 0x3f2   : > { %8129 = vst [vmem:[#allocation70_spill] sm:$0xff] %v5460_v51 }
 0x3f5   : > { %1404 = vrot.lane.b32.xlu2 %v1387_v56, %s4614_s12  ;;  %1402 = vrot.lane.b32.xlu1 %v1386_v49, %s4614_s12 }
 0x3f6   : > { %1400 = vrot.lane.b32.xlu0 %v1385_v44, %s4614_s12  ;;  %s4618_s12 = smov 92  }
 0x3f9   : > { %v5462_v39 = vpop.permute.xlu0 %1353 }
 0x3fa   : > { %8130 = vst [vmem:[#allocation71_spill] sm:$0xff] %v5462_v39 }
 0x3fe   : > { %1428 = vperm.xlu0 %4491, %v4313_v29  }
 0x460   : > { %v5464_v10 = vpop.permute.xlu0 %1394 }
 0x461   : > { %8131 = vst [vmem:[#allocation72_spill] sm:$0xff] %v5464_v10  ;;  %v5477_v10 = vpop.permute.xlu1 %1349 }
 0x462   : > { %8133 = vst [vmem:[#allocation74_spill] sm:$0xff] %v5477_v10 }
 0x468   : > { %v5466_v12 = vpop.permute.xlu0 %1400 }
 0x469   : > { %8132 = vst [vmem:[#allocation73_spill] sm:$0xff] %v5466_v12  ;;  %v4314_v12 = vld [vmem:[%s7846_s3 + $0xb0] sm:$0xff]  ;;  %v5479_v36 = vpop.permute.xlu1 %1355 }
 0x46a   : > { %8134 = vst [vmem:[#allocation75_spill] sm:$0xff] %v5479_v36 }
 0x470   : > { %v1429_v43 = vpop.permute.xlu0 %1428 }
 0x471   : > { %v1433_v49 = vmul.f32 %v1429_v43, %v5028_v35  ;;  %v1432_v44 = vmul.f32 %v1429_v43, %v4904_v23  ;;  %v1431_v56 = vmul.f32 %v1429_v43, %v4907_v24  ;;  %v1436_v29 = vmul.f32 %v1429_v43, %v5175_v37 }
 0x472   : > { %v1435_v51 = vmul.f32 %v1429_v43, %v5134_v0  ;;  %v1434_v39 = vmul.f32 %v1429_v43, %v5013_v28 }
 0x473   : > { %1447 = vrot.lane.b32.xlu0 %v1433_v49, %s4615_s15  ;;  %1445 = vrot.lane.b32.xlu2 %v1432_v44, %s4615_s15  ;;  %v5481_v49 = vpop.permute.xlu1 %1396 }
 0x474   : > { %1443 = vrot.lane.b32.xlu1 %v1431_v56, %s4615_s15  ;;  %8135 = vst [vmem:[#allocation76_spill] sm:$0xff] %v5481_v49 }
 0x47b   : > { %1453 = vrot.lane.b32.xlu0 %v1436_v29, %s4615_s15  ;;  %1451 = vrot.lane.b32.xlu2 %v1435_v51, %s4615_s15  ;;  %v5483_v44 = vpop.permute.xlu1 %1402 }
 0x47c   : > { %1449 = vrot.lane.b32.xlu1 %v1434_v39, %s4615_s15  ;;  %8136 = vst [vmem:[#allocation77_spill] sm:$0xff] %v5483_v44  ;;  %s4619_s15 = smov 62  }
 0x484   : > { %1477 = vperm.xlu1 %4492, %v4314_v12  }
 0x4e6   : > { %v5485_v56 = vpop.permute.xlu1 %1443 }
 0x4e7   : > { %8137 = vst [vmem:[#allocation78_spill] sm:$0xff] %v5485_v56  ;;  %v5498_v56 = vpop.permute.xlu2 %1398 }
 0x4e8   : > { %8139 = vst [vmem:[#allocation80_spill] sm:$0xff] %v5498_v56 }
 0x4ee   : > { %v5487_v57 = vpop.permute.xlu1 %1449 }
 0x4ef   : > { %8138 = vst [vmem:[#allocation79_spill] sm:$0xff] %v5487_v57  ;;  %v4315_v57 = vld [vmem:[%s7846_s3 + $0xb8] sm:$0xff]  ;;  %v5500_v49 = vpop.permute.xlu2 %1404 }
 0x4f0   : > { %8140 = vst [vmem:[#allocation81_spill] sm:$0xff] %v5500_v49 }
 0x4f6   : > { %v1478_v43 = vpop.permute.xlu1 %1477 }
 0x4f7   : > { %v1482_v51 = vmul.f32 %v1478_v43, %v5028_v35  ;;  %v1481_v39 = vmul.f32 %v1478_v43, %v4904_v23  ;;  %v1480_v29 = vmul.f32 %v1478_v43, %v4907_v24  ;;  %v1485_v12 = vmul.f32 %v1478_v43, %v5175_v37 }
 0x4f8   : > { %v1484_v36 = vmul.f32 %v1478_v43, %v5134_v0  ;;  %v1483_v44 = vmul.f32 %v1478_v43, %v5013_v28 }
 0x4f9   : > { %1496 = vrot.lane.b32.xlu1 %v1482_v51, %s4616_s10  ;;  %1494 = vrot.lane.b32.xlu0 %v1481_v39, %s4616_s10  ;;  %v5502_v51 = vpop.permute.xlu2 %1445 }
 0x4fa   : > { %1492 = vrot.lane.b32.xlu2 %v1480_v29, %s4616_s10  ;;  %8141 = vst [vmem:[#allocation82_spill] sm:$0xff] %v5502_v51 }
 0x501   : > { %1502 = vrot.lane.b32.xlu1 %v1485_v12, %s4616_s10  ;;  %1500 = vrot.lane.b32.xlu0 %v1484_v36, %s4616_s10  ;;  %v5504_v39 = vpop.permute.xlu2 %1451 }
 0x502   : > { %1498 = vrot.lane.b32.xlu2 %v1483_v44, %s4616_s10  ;;  %8142 = vst [vmem:[#allocation83_spill] sm:$0xff] %v5504_v39  ;;  %s4623_s10 = smov 116  }
 0x50a   : > { %1526 = vperm.xlu2 %4493, %v4315_v57  }
 0x554   : > { %v5506_v29 = vpop.permute.xlu2 %1492 }
 0x555   : > { %8143 = vst [vmem:[#allocation84_spill] sm:$0xff] %v5506_v29  ;;  %v5519_v29 = vpop.permute.xlu0 %1447 }
 0x55c   : > { %v5508_v10 = vpop.permute.xlu2 %1498 }
 0x55d   : > { %8144 = vst [vmem:[#allocation85_spill] sm:$0xff] %v5508_v10  ;;  %v4316_v10 = vld [vmem:[%s7846_s3 + $0xc0] sm:$0xff]  ;;  %v5521_v51 = vpop.permute.xlu0 %1453 }
 0x55e   : > { %8145 = vst [vmem:[#allocation86_spill] sm:$0xff] %v5521_v51 }
 0x564   : > { %v1527_v43 = vpop.permute.xlu2 %1526 }
 0x565   : > { %v1531_v36 = vmul.f32 %v1527_v43, %v5028_v35  ;;  %v1530_v44 = vmul.f32 %v1527_v43, %v4904_v23  ;;  %v1529_v12 = vmul.f32 %v1527_v43, %v4907_v24  ;;  %v1534_v57 = vmul.f32 %v1527_v43, %v5175_v37 }
 0x566   : > { %v1533_v49 = vmul.f32 %v1527_v43, %v5134_v0  ;;  %v1532_v39 = vmul.f32 %v1527_v43, %v5013_v28 }
 0x567   : > { %1545 = vrot.lane.b32.xlu2 %v1531_v36, %s4617_s26  ;;  %1543 = vrot.lane.b32.xlu1 %v1530_v44, %s4617_s26 }
 0x568   : > { %1541 = vrot.lane.b32.xlu0 %v1529_v12, %s4617_s26 }
 0x56b   : > { %v5523_v36 = vpop.permute.xlu0 %1494 }
 0x56f   : > { %1551 = vrot.lane.b32.xlu2 %v1534_v57, %s4617_s26  ;;  %1549 = vrot.lane.b32.xlu1 %v1533_v49, %s4617_s26 }
 0x570   : > { %1547 = vrot.lane.b32.xlu0 %v1532_v39, %s4617_s26  ;;  %s4625_s26 = smov 110  }
 0x573   : > { %v5525_v44 = vpop.permute.xlu0 %1500 }
 0x574   : > { %8146 = vst [vmem:[#allocation87_spill] sm:$0xff] %v5525_v44 }
 0x578   : > { %1575 = vperm.xlu0 %4491, %v4316_v10  }
 0x5da   : > { %v5527_v12 = vpop.permute.xlu0 %1541 }
 0x5db   : > { %8147 = vst [vmem:[#allocation88_spill] sm:$0xff] %v5527_v12  ;;  %v8149_v12 = vperm.slane %v4856_v21, 1 }
 0x5e2   : > { %v5529_v56 = vpop.permute.xlu0 %1547 }
 0x5e3   : > { %8148 = vst [vmem:[#allocation89_spill] sm:$0xff] %v5529_v56  ;;  %v238_v56 = vld [vmem:[%s7847_s4 + $0x8] sm:$0xff] }
 0x5ea   : > { %v1576_v43 = vpop.permute.xlu0 %1575 }
 0x5eb   : > { %v1580_v49 = vmul.f32 %v1576_v43, %v5028_v35  ;;  %v1579_v39 = vmul.f32 %v1576_v43, %v4904_v23  ;;  %v1578_v57 = vmul.f32 %v1576_v43, %v4907_v24  ;;  %v1583_v10 = vmul.f32 %v1576_v43, %v5175_v37 }
 0x5ec   : > { %v1582_v51 = vmul.f32 %v1576_v43, %v5134_v0  ;;  %v1581_v44 = vmul.f32 %v1576_v43, %v5013_v28  ;;  %v8151_v37 = vperm.slane %v4856_v21, 4  ;;  %v8152_v43 = vperm.slane %v4856_v21, 3 }
 0x5ed   : > { %1594 = vrot.lane.b32.xlu0 %v1580_v49, %s4618_s12  ;;  %1592 = vrot.lane.b32.xlu2 %v1579_v39, %s4618_s12  ;;  %v8150_v49 = vperm.slane %v4856_v21, 0 }
 0x5ee   : > { %1590 = vrot.lane.b32.xlu1 %v1578_v57, %s4618_s12 }
 0x5f5   : > { %1600 = vrot.lane.b32.xlu0 %v1583_v10, %s4618_s12  ;;  %1598 = vrot.lane.b32.xlu2 %v1582_v51, %s4618_s12  ;;  %v8153_v51 = vperm.slane %v4856_v21, 2  ;;  %v478_v21 = vsel %vm476_vm3, %v5122_v58, %v5274_v26  ;;  %v575_v10 = vsel %vm574_vm5, %v4888_v14, %v5050_v52  ;;  %v481_v14 = vsel %vm476_vm3, %v5266_v3, %v5390_v13 }
 0x5f6   : > { %1596 = vrot.lane.b32.xlu1 %v1581_v44, %s4618_s12  ;;  %v477_v44 = vsel %vm476_vm3, %v4967_v55, %v5122_v58  ;;  %v434_v55 = vmul.f32 %v4831_v45, %v4907_v24  ;;  %v479_v58 = vsel %vm476_vm3, %v5274_v26, %v5171_v46  ;;  %v435_v24 = vmul.f32 %v4831_v45, %v4904_v23  ;;  %s4620_s12 = smov 82  }
 0x5f7   : > { %v528_v26 = vsel %vm8042_vm4, %v5039_v42, %v5270_v27  ;;  %v436_v23 = vmul.f32 %v4831_v45, %v5028_v35  ;;  %v530_v35 = vsel %vm8042_vm4, %v5341_v63, %v5268_v5 }
 0x5fd   : > { %1633 = vrot.lane.b32.xlu0 %v8149_v12, %s4619_s15  ;;  %1631 = vrot.lane.b32.xlu2 %v8150_v49, %s4619_s15  ;;  %v433_v12 = vmul.f32 0.0, %v4831_v45  ;;  %v624_v49 = vsel %vm623_vm6, %v4978_v62, %v5160_v31  ;;  %v673_v62 = vsel %vm672_vm7, %v4894_v17, %v5292_v2  ;;  %v480_v17 = vsel %vm476_vm3, %v5171_v46, %v5266_v3 }
 0x5fe   : > { %1622 = vperm.xlu1 %4492, %v238_v56   ;;  %v526_v56 = vsel %vm8042_vm4, %v4890_v15, %v5280_v38  ;;  %v527_v15 = vsel %vm8042_vm4, %v5280_v38, %v5039_v42  ;;  %v437_v38 = vmul.f32 %v4831_v45, %v5013_v28  ;;  %v722_v42 = vsel %vm721_vm8, %v4892_v16, %v5072_v1 }
 0x5ff   : > { %v488_v39 = vadd.f32 %v477_v44, %v433_v12  ;;  %v674_v46 = vsel %vm672_vm7, %v5292_v2, %v5061_v59  ;;  %v529_v16 = vsel %vm8042_vm4, %v5270_v27, %v5341_v63  ;;  %v579_v27 = vsel %vm574_vm5, %v5188_v20, %v5335_v25 }
 0x601   : > { %v537_v57 = vadd.f32 %v526_v56, %v488_v39  ;;  %v490_v56 = vadd.f32 %v479_v58, %v435_v24  ;;  %v492_v39 = vadd.f32 %v481_v14, %v437_v38  ;;  %v578_v38 = vsel %vm574_vm5, %v5345_v6, %v5188_v20 }
 0x602   : > { %v723_v20 = vsel %vm721_vm8, %v5072_v1, %v5177_v41  ;;  %v821_v1 = vsel %vm819_vm10, %v5306_v54, %v5083_v8 }
 0x603   : > { %v541_v3 = vadd.f32 %v530_v35, %v492_v39 }
 0x605   : > { %1639 = vrot.lane.b32.xlu0 %v8151_v37, %s4619_s15  ;;  %1637 = vrot.lane.b32.xlu2 %v8152_v43, %s4619_s15  ;;  %v489_v37 = vadd.f32 %v478_v21, %v434_v55  ;;  %v586_v43 = vadd.f32 %v575_v10, %v537_v57  ;;  %v539_v21 = vadd.f32 %v528_v26, %v490_v56 }
 0x606   : > { %1635 = vrot.lane.b32.xlu1 %v8153_v51, %s4619_s15  ;;  %v438_v51 = vmul.f32 %v4831_v45, %v5134_v0  ;;  %v576_v0 = vsel %vm574_vm5, %v5050_v52, %v5144_v22  ;;  %v625_v45 = vsel %vm623_vm6, %v5160_v31, %v5286_v34  ;;  %v771_v52 = vsel %vm770_vm9, %v4995_v7, %v5194_v53  ;;  %s4624_s15 = smov 113  }
 0x607   : > { %v538_v44 = vadd.f32 %v527_v15, %v489_v37  ;;  %v635_v12 = vadd.f32 %v624_v49, %v586_v43  ;;  %v491_v10 = vadd.f32 %v480_v17, %v436_v23  ;;  %v577_v31 = vsel %vm574_vm5, %v5144_v22, %v5345_v6  ;;  %v8154_v17 = vld [vmem:[#allocation24_spill] sm:$0xff] }
 0x608   : > { %v493_v28 = vadd.f32 %v5390_v13, %v438_v51  ;;  %v588_v2 = vadd.f32 %v577_v31, %v539_v21  ;;  %v628_v7 = vsel %vm623_vm6, %v5276_v32, %v5396_v48  ;;  %v590_v37 = vadd.f32 %v579_v27, %v541_v3  ;;  %v8157_v3 = vld [vmem:[#allocation5_spill] sm:$0xff] }
 0x609   : > { %v684_v57 = vadd.f32 %v673_v62, %v635_v12  ;;  %v587_v13 = vadd.f32 %v576_v0, %v538_v44  ;;  %v540_v58 = vadd.f32 %v529_v16, %v491_v10  ;;  %v820_v22 = vsel %vm819_vm10, %v4898_v19, %v5306_v54  ;;  %v8161_v27 = vld [vmem:[#allocation21_spill] sm:$0xff] }
 0x60a   : > { %v542_v55 = vadd.f32 %v5268_v5, %v493_v28  ;;  %v626_v5 = vsel %vm623_vm6, %v5286_v34, %v5201_v9  ;;  %v675_v43 = vsel %vm672_vm7, %v5061_v59, %v5282_v50  ;;  %v627_v62 = vsel %vm623_vm6, %v5201_v9, %v5276_v32 }
 0x60b   : > { %v636_v15 = vadd.f32 %v625_v45, %v587_v13  ;;  %v733_v49 = vadd.f32 %v722_v42, %v684_v57  ;;  %v637_v26 = vadd.f32 %v626_v5, %v588_v2  ;;  %v639_v19 = vadd.f32 %v628_v7, %v590_v37  ;;  %v8156_v13 = vld [vmem:[#allocation26_spill] sm:$0xff]  ;;  %v8162_v37 = vld [vmem:[#allocation12_spill] sm:$0xff]  ;;  %v5703_v5 = vpop.permute.xlu2 %1545 }
 0x60c   : > { %v591_v24 = vadd.f32 %v5335_v25, %v542_v55  ;;  %v589_v51 = vadd.f32 %v578_v38, %v540_v58  ;;  %v676_v59 = vsel %vm672_vm7, %v5282_v50, %v5349_v47  ;;  %v772_v9 = vsel %vm770_vm9, %v5194_v53, %v5300_v60  ;;  %v8160_v58 = vld [vmem:[#allocation10_spill] sm:$0xff] }
 0x60d   : > { %v685_v63 = vadd.f32 %v674_v46, %v636_v15  ;;  %v782_v14 = vadd.f32 %v771_v52, %v733_v49  ;;  %v686_v25 = vadd.f32 %v675_v43, %v637_v26  ;;  %v677_v32 = vsel %vm672_vm7, %v5349_v47, %v5272_v11  ;;  %v8163_v43 = vld [vmem:[#allocation31_spill] sm:$0xff] }
 0x60e   : > { %v640_v34 = vadd.f32 %v5396_v48, %v591_v24  ;;  %v638_v6 = vadd.f32 %v627_v62, %v589_v51  ;;  %v5655_v48 = vpop.permute.xlu1 %1496  ;;  %v869_v50 = vsel %vm868_vm11, %v4896_v18, %v5094_v30  ;;  %v688_v56 = vadd.f32 %v677_v32, %v639_v19  ;;  %v8164_v24 = vld [vmem:[#allocation43_spill] sm:$0xff]  ;;  %v8165_v62 = vld [vmem:[#allocation45_spill] sm:$0xff] }
 0x60f   : > { %v831_v44 = vadd.f32 %v820_v22, %v782_v14  ;;  %v734_v12 = vadd.f32 %v723_v20, %v685_v63  ;;  %v724_v53 = vsel %vm721_vm8, %v5177_v41, %v5353_v33  ;;  %v726_v18 = vsel %vm721_vm8, %v5214_v4, %v5339_v40  ;;  %v8155_v41 = vld [vmem:[#allocation11_spill] sm:$0xff]  ;;  %v8166_v51 = vld [vmem:[#allocation33_spill] sm:$0xff] }
 0x610   : > { %v687_v39 = vadd.f32 %v676_v59, %v638_v6  ;;  %v689_v23 = vadd.f32 %v5272_v11, %v640_v34  ;;  %v735_v57 = vadd.f32 %v724_v53, %v686_v25  ;;  %v775_v21 = vsel %vm770_vm9, %v8154_v17, %v5398_v61  ;;  %v8168_v20 = vld [vmem:[#allocation15_spill] sm:$0xff] }
 0x611   : > { %v783_v47 = vadd.f32 %v772_v9, %v734_v12  ;;  %v880_v28 = vadd.f32 %v869_v50, %v831_v44  ;;  %v725_v54 = vsel %vm721_vm8, %v5353_v33, %v5214_v4  ;;  %v774_v11 = vsel %vm770_vm9, %v8155_v41, %v8154_v17  ;;  %v8158_v4 = vld [vmem:[#allocation41_spill] sm:$0xff] }
 0x612   : > { %v737_v0 = vadd.f32 %v726_v18, %v688_v56  ;;  %v773_v45 = vsel %vm770_vm9, %v5300_v60, %v8155_v41  ;;  %v736_v35 = vadd.f32 %v725_v54, %v687_v39  ;;  %v822_v46 = vsel %vm819_vm10, %v5083_v8, %v8156_v13  ;;  %v8159_v60 = vld [vmem:[#allocation14_spill] sm:$0xff]  ;;  %v8167_v44 = vld [vmem:[#allocation13_spill] sm:$0xff] }
 0x613   : > { %v832_v42 = vadd.f32 %v821_v1, %v783_v47  ;;  %v738_v16 = vadd.f32 %v5339_v40, %v689_v23  ;;  %v929_v52 = vadd.f32 %v8157_v3, %v880_v28  ;;  %v784_v10 = vadd.f32 %v773_v45, %v735_v57  ;;  %v8169_v50 = vld [vmem:[#allocation37_spill] sm:$0xff]  ;;  %v8170_v56 = vld [vmem:[#allocation38_spill] sm:$0xff]  ;;  %v8171_v23 = vld [vmem:[#allocation52_spill] sm:$0xff] }
 0x614   : > { %v823_v33 = vsel %vm819_vm10, %v8156_v13, %v8158_v4  ;;  %v786_v31 = vadd.f32 %v775_v21, %v737_v0  ;;  %v785_v55 = vadd.f32 %v774_v11, %v736_v35  ;;  %v870_v8 = vsel %vm868_vm11, %v5094_v30, %v8160_v58  ;;  %v8172_v17 = vld [vmem:[#allocation53_spill] sm:$0xff]  ;;  %v8173_v21 = vld [vmem:[#allocation28_spill] sm:$0xff]  ;;  %v8174_v54 = vld [vmem:[#allocation6_spill] sm:$0xff] }
 0x615   : > { %v787_v15 = vadd.f32 %v5398_v61, %v738_v16  ;;  %v978_v49 = vadd.f32 %v8159_v60, %v929_v52  ;;  %v833_v2 = vadd.f32 %v822_v46, %v784_v10  ;;  %v824_v7 = vsel %vm819_vm10, %v8158_v4, %v8161_v27  ;;  %v8175_v11 = vld [vmem:[#allocation7_spill] sm:$0xff]  ;;  %v8176_v35 = vld [vmem:[#allocation22_spill] sm:$0xff]  ;;  %v8177_v46 = vld [vmem:[#allocation16_spill] sm:$0xff] }
 0x616   : > { %v834_v40 = vadd.f32 %v823_v33, %v785_v55  ;;  %v5698_v63 = vpop.permute.xlu1 %1502  ;;  %v881_v14 = vadd.f32 %v870_v8, %v832_v42  ;;  %v918_v61 = vsel %vm8038_vm12, %v8157_v3, %v8162_v37  ;;  %v835_v22 = vadd.f32 %v824_v7, %v786_v31  ;;  %v8178_v3 = vld [vmem:[#allocation17_spill] sm:$0xff]  ;;  %v8179_v10 = vld [vmem:[#allocation30_spill] sm:$0xff] }
 0x617   : > { %v967_v30 = vsel %vm966_vm13, %v8159_v60, %v8163_v43  ;;  %v871_v38 = vsel %vm868_vm11, %v8160_v58, %v8164_v24  ;;  %v919_v26 = vsel %vm8038_vm12, %v8162_v37, %v8165_v62  ;;  %v836_v19 = vadd.f32 %v8161_v27, %v787_v15  ;;  %v8180_v60 = vld [vmem:[#allocation47_spill] sm:$0xff]  ;;  %v8183_v37 = vld [vmem:[#allocation18_spill] sm:$0xff] }
 0x618   : > { %v1027_v34 = vadd.f32 %v8166_v51, %v978_v49  ;;  %v872_v59 = vsel %vm868_vm11, %v8164_v24, %v8167_v44  ;;  %v882_v25 = vadd.f32 %v871_v38, %v833_v2  ;;  %v920_v9 = vsel %vm8038_vm12, %v8165_v62, %v8168_v20  ;;  %v5769_v38 = vpop.permute.xlu2 %1551 }
 0x619   : > { %v930_v6 = vadd.f32 %v918_v61, %v881_v14  ;;  %v883_v32 = vadd.f32 %v872_v59, %v834_v40  ;;  %v873_v12 = vsel %vm868_vm11, %v8167_v44, %v8169_v50  ;;  %v921_v1 = vsel %vm8038_vm12, %v8168_v20, %v8170_v56  ;;  %v8181_v40 = vld [vmem:[#allocation49_spill] sm:$0xff]  ;;  %v8182_v14 = vld [vmem:[#allocation35_spill] sm:$0xff] }
 0x61a   : > { %vm1113_vm7 = vcmask 359424   ;;  %v931_v39 = vadd.f32 %v919_v26, %v882_v25  ;;  %v884_v53 = vadd.f32 %v873_v12, %v835_v22  ;;  %v922_v47 = vsel %vm8038_vm12, %v8170_v56, %v8171_v23  ;;  %v8187_v25 = vld [vmem:[#allocation39_spill] sm:$0xff]  ;;  %v8191_v23 = vld [vmem:[#allocation8_spill] sm:$0xff] }
 0x61b   : > { %v979_v28 = vadd.f32 %v967_v30, %v930_v6  ;;  %v932_v57 = vadd.f32 %v920_v9, %v883_v32  ;;  %v885_v18 = vadd.f32 %v8169_v50, %v836_v19  ;;  %v970_v42 = vsel %vm966_vm13, %v8173_v21, %v8172_v17  ;;  %v8184_v30 = vld [vmem:[#allocation19_spill] sm:$0xff]  ;;  %v8188_v6 = vld [vmem:[#allocation54_spill] sm:$0xff] }
 0x61c   : > { %v1016_v41 = vsel %vm1015_vm14, %v8166_v51, %v8174_v54  ;;  %v1076_v0 = vadd.f32 %v8175_v11, %v1027_v34  ;;  %v933_v45 = vadd.f32 %v921_v1, %v884_v53  ;;  %v971_v13 = vsel %vm966_vm13, %v8172_v17, %v8176_v35  ;;  %v8185_v19 = vld [vmem:[#allocation23_spill] sm:$0xff]  ;;  %v8186_v34 = vld [vmem:[#allocation40_spill] sm:$0xff]  ;;  %v8193_v17 = vld [vmem:[#allocation25_spill] sm:$0xff] }
 0x61d   : > { %v1065_v16 = vsel %vm7932_vm15, %v8175_v11, %v8177_v46  ;;  %v968_v52 = vsel %vm966_vm13, %v8163_v43, %v8178_v3  ;;  %v1017_v4 = vsel %vm1015_vm14, %v8174_v54, %v8179_v10  ;;  %v934_v33 = vadd.f32 %v922_v47, %v885_v18  ;;  %v8189_v1 = vld [vmem:[#allocation55_spill] sm:$0xff]  ;;  %v8192_v47 = vld [vmem:[#allocation36_spill] sm:$0xff] }
 0x61e   : > { %v5751_v31 = vpop.permute.xlu1 %1543  ;;  %v969_v55 = vsel %vm966_vm13, %v8178_v3, %v8173_v21  ;;  %v980_v15 = vadd.f32 %v968_v52, %v931_v39  ;;  %v1018_v49 = vsel %vm1015_vm14, %v8179_v10, %v8180_v60  ;;  %v982_v2 = vadd.f32 %v970_v42, %v933_v45  ;;  %v8190_v39 = vld [vmem:[#allocation32_spill] sm:$0xff] }
 0x61f   : > { %v1028_v58 = vadd.f32 %v1016_v41, %v979_v28  ;;  %v981_v8 = vadd.f32 %v969_v55, %v932_v57  ;;  %v1066_v27 = vsel %vm7932_vm15, %v8177_v46, %v8181_v40  ;;  %v983_v7 = vadd.f32 %v971_v13, %v934_v33  ;;  %v8194_v42 = vld [vmem:[#allocation20_spill] sm:$0xff]  ;;  %v8195_v41 = vld [vmem:[#allocation34_spill] sm:$0xff]  ;;  %v8196_v13 = vld [vmem:[#allocation51_spill] sm:$0xff] }
 0x620   : > { %v1114_v61 = vsel %vm1113_vm7, %v8183_v37, %v8182_v14  ;;  %v1125_v22 = vadd.f32 %v8183_v37, %v1076_v0  ;;  %v1029_v43 = vadd.f32 %v1017_v4, %v980_v15  ;;  %v1067_v24 = vsel %vm7932_vm15, %v8181_v40, %v8184_v30  ;;  %v8197_v55 = vld [vmem:[#allocation44_spill] sm:$0xff]  ;;  %v8198_v15 = vld [vmem:[#allocation9_spill] sm:$0xff] }
 0x621   : > { %v1077_v62 = vadd.f32 %v1065_v16, %v1028_v58  ;;  %v1030_v26 = vadd.f32 %v1018_v49, %v981_v8  ;;  %v1019_v51 = vsel %vm1015_vm14, %v8180_v60, %v8185_v19  ;;  %v1068_v44 = vsel %vm7932_vm15, %v8184_v30, %v8186_v34  ;;  %v8199_v49 = vld [vmem:[#allocation56_spill] sm:$0xff]  ;;  %v8203_v30 = vld [vmem:[#allocation46_spill] sm:$0xff] }
 0x622   : > { %v1078_v59 = vadd.f32 %v1066_v27, %v1029_v43  ;;  %v1020_v20 = vsel %vm1015_vm14, %v8185_v19, %v8187_v25  ;;  %v1031_v9 = vadd.f32 %v1019_v51, %v982_v2  ;;  %v1069_v32 = vsel %vm7932_vm15, %v8186_v34, %v8188_v6  ;;  %v8200_v27 = vld [vmem:[#allocation27_spill] sm:$0xff]  ;;  %v8206_v25 = vld [vmem:[#allocation48_spill] sm:$0xff] }
 0x623   : > { %v1126_v50 = vadd.f32 %v1114_v61, %v1077_v62  ;;  %v1079_v12 = vadd.f32 %v1067_v24, %v1030_v26  ;;  %v1032_v56 = vadd.f32 %v1020_v20, %v983_v7  ;;  %v1117_v53 = vsel %vm1113_vm7, %v8190_v39, %v8189_v1  ;;  %v8202_v61 = vld [vmem:[#allocation42_spill] sm:$0xff]  ;;  %v8204_v62 = vld [vmem:[#allocation57_spill] sm:$0xff] }
 0x624   : > { %v1162_v28 = vsel %vm253_vm1, %v8192_v47, %v8191_v23  ;;  %v1173_v57 = vadd.f32 %v8192_v47, %v1125_v22  ;;  %v1080_v18 = vadd.f32 %v1068_v44, %v1031_v9  ;;  %v1118_v21 = vsel %vm1113_vm7, %v8189_v1, %v8193_v17  ;;  %v8207_v9 = vld [vmem:[#allocation62_spill] sm:$0xff]  ;;  %v8209_v1 = vld [vmem:[#allocation59_spill] sm:$0xff]  ;;  %v8213_v17 = vld [vmem:[#allocation60_spill] sm:$0xff] }
 0x625   : > { %v1115_v54 = vsel %vm1113_vm7, %v8182_v14, %v8194_v42  ;;  %v1163_v11 = vsel %vm253_vm1, %v8191_v23, %v8195_v41  ;;  %v1081_v0 = vadd.f32 %v1069_v32, %v1032_v56  ;;  %vm8039_vm8 = vcmask 56320   ;;  %v8201_v14 = vld [vmem:[#allocation29_spill] sm:$0xff]  ;;  %v8208_v32 = vld [vmem:[#allocation50_spill] sm:$0xff] }
 0x626   : > { %v1116_v45 = vsel %vm1113_vm7, %v8194_v42, %v8190_v39  ;;  %v1127_v35 = vadd.f32 %v1115_v54, %v1078_v59  ;;  %v1164_v46 = vsel %vm253_vm1, %v8195_v41, %v8196_v13  ;;  %v1129_v16 = vadd.f32 %v1117_v53, %v1080_v18  ;;  %v5805_v4 = vpop.permute.xlu1 %1549  ;;  %v8205_v59 = vld [vmem:[#allocation58_spill] sm:$0xff]  ;;  %v8210_v53 = vld [vmem:[#allocation63_spill] sm:$0xff] }
 0x627   : > { %v1174_v3 = vadd.f32 %v1162_v28, %v1126_v50  ;;  %v1128_v52 = vadd.f32 %v1116_v45, %v1079_v12  ;;  %v1130_v10 = vadd.f32 %v1118_v21, %v1081_v0  ;;  %v1211_v60 = vsel %vm8039_vm8, %v8198_v15, %v8197_v55  ;;  %v8211_v28 = vld [vmem:[#allocation68_spill] sm:$0xff]  ;;  %v8214_v0 = vld [vmem:[#allocation69_spill] sm:$0xff] }
 0x628   : > { %v1175_v33 = vadd.f32 %v1163_v11, %v1127_v35  ;;  %v1212_v2 = vsel %vm8039_vm8, %v8197_v55, %v8199_v49  ;;  %v1222_v58 = vadd.f32 %v8198_v15, %v1173_v57  ;;  %v1165_v7 = vsel %vm253_vm1, %v8196_v13, %v8200_v27  ;;  %v8212_v57 = vld [vmem:[#allocation64_spill] sm:$0xff]  ;;  %v8215_v45 = vld [vmem:[#allocation65_spill] sm:$0xff]  ;;  %v8217_v15 = vld [vmem:[#allocation70_spill] sm:$0xff] }
 0x629   : > { %v1176_v40 = vadd.f32 %v1164_v46, %v1128_v52  ;;  %v1213_v37 = vsel %vm8039_vm8, %v8199_v49, %v8201_v14  ;;  %vm8049_vm9 = vcmask 48128   ;;  %v1166_v22 = vsel %vm253_vm1, %v8200_v27, %v8202_v61  ;;  %v8220_v27 = vld [vmem:[#allocation74_spill] sm:$0xff] }
 0x62a   : > { %v1177_v43 = vadd.f32 %v1165_v7, %v1129_v16  ;;  %v1214_v24 = vsel %vm8039_vm8, %v8201_v14, %v8203_v30  ;;  %v1215_v26 = vsel %vm8039_vm8, %v8203_v30, %v8204_v62  ;;  %v1223_v19 = vadd.f32 %v1211_v60, %v1174_v3  ;;  %v8216_v3 = vld [vmem:[#allocation61_spill] sm:$0xff]  ;;  %v8218_v60 = vld [vmem:[#allocation66_spill] sm:$0xff] }
 0x62b   : > { %v1224_v51 = vadd.f32 %v1212_v2, %v1175_v33  ;;  %v1178_v34 = vadd.f32 %v1166_v22, %v1130_v10  ;;  %vm1308_vm10 = vcmask 39936   ;;  %v1225_v44 = vadd.f32 %v1213_v37, %v1176_v40  ;;  %v8219_v40 = vld [vmem:[#allocation67_spill] sm:$0xff]  ;;  %v8221_v22 = vld [vmem:[#allocation80_spill] sm:$0xff] }
 0x62c   : > { %v1260_v20 = vsel %vm8049_vm9, %v8206_v25, %v8205_v59  ;;  %v1261_v6 = vsel %vm8049_vm9, %v8205_v59, %v8207_v9  ;;  %v1262_v50 = vsel %vm8049_vm9, %v8207_v9, %v8208_v32  ;;  %v1226_v12 = vadd.f32 %v1214_v24, %v1177_v43  ;;  %v8222_v43 = vld [vmem:[#allocation76_spill] sm:$0xff]  ;;  %v8226_v9 = vld [vmem:[#allocation78_spill] sm:$0xff] }
 0x62d   : > { %v1227_v56 = vadd.f32 %v1215_v26, %v1178_v34  ;;  %v1263_v39 = vsel %vm8049_vm9, %v8208_v32, %v8209_v1  ;;  %v1264_v23 = vsel %vm8049_vm9, %v8209_v1, %v8210_v53  ;;  %v1271_v47 = vadd.f32 %v8206_v25, %v1222_v58  ;;  %v8223_v24 = vld [vmem:[#allocation72_spill] sm:$0xff]  ;;  %v8225_v25 = vld [vmem:[#allocation82_spill] sm:$0xff] }
 0x62e   : > { %v1310_v18 = vsel %vm1308_vm10, %v8212_v57, %v8211_v28  ;;  %v1309_v21 = vsel %vm1308_vm10, %v8213_v17, %v8212_v57  ;;  %vm8041_vm11 = vcmask 31744   ;;  %v1272_v54 = vadd.f32 %v1260_v20, %v1223_v19 }
 0x62f   : > { %v1273_v41 = vadd.f32 %v1261_v6, %v1224_v51  ;;  %v1274_v11 = vadd.f32 %v1262_v50, %v1225_v44  ;;  %v1313_v35 = vsel %vm1308_vm10, %v8215_v45, %v8214_v0  ;;  %v1275_v46 = vadd.f32 %v1263_v39, %v1226_v12  ;;  %v8224_v51 = vld [vmem:[#allocation71_spill] sm:$0xff]  ;;  %v8227_v12 = vld [vmem:[#allocation81_spill] sm:$0xff] }
 0x630   : > { %v1276_v16 = vadd.f32 %v1264_v23, %v1227_v56  ;;  %v1311_v52 = vsel %vm1308_vm10, %v8211_v28, %v8216_v3  ;;  %vm1406_vm13 = vcmask 785408   ;;  %v1320_v33 = vadd.f32 %v8213_v17, %v1271_v47  ;;  %v8228_v56 = vld [vmem:[#allocation77_spill] sm:$0xff]  ;;  %v8229_v47 = vld [vmem:[#allocation84_spill] sm:$0xff]  ;;  %v8230_v17 = vld [vmem:[#allocation75_spill] sm:$0xff] }
 0x631   : > { %v1322_v10 = vadd.f32 %v1310_v18, %v1273_v41  ;;  %v1321_v55 = vadd.f32 %v1309_v21, %v1272_v54  ;;  %v1358_v49 = vsel %vm8041_vm11, %v8218_v60, %v8217_v15  ;;  %v1312_v58 = vsel %vm1308_vm10, %v8216_v3, %v8215_v45  ;;  %v8231_v0 = vld [vmem:[#allocation73_spill] sm:$0xff]  ;;  %v8233_v3 = vld [vmem:[#allocation86_spill] sm:$0xff] }
 0x632   : > { %v5865_v2 = vadd.f32 %v1313_v35, %v1276_v16  ;;  %v1360_v7 = vsel %vm8041_vm11, %v8220_v27, %v8219_v40  ;;  %vm1455_vm14 = vcmask 777216   ;;  %v1323_v37 = vadd.f32 %v1311_v52, %v1274_v11  ;;  %v8234_v52 = vld [vmem:[#allocation83_spill] sm:$0xff] }
 0x633   : > { %v1369_v61 = vadd.f32 %v8218_v60, %v1320_v33  ;;  %v1408_v30 = vsel %vm1406_vm13, %v8222_v43, %v8221_v22  ;;  %v1407_v62 = vsel %vm1406_vm13, %v8223_v24, %v8222_v43  ;;  %v1359_v26 = vsel %vm8041_vm11, %v8217_v15, %v8220_v27  ;;  %v8235_v60 = vld [vmem:[#allocation79_spill] sm:$0xff] }
 0x634   : > { %v1370_v19 = vadd.f32 %v1358_v49, %v1321_v55  ;;  %v1361_v34 = vsel %vm8041_vm11, %v8219_v40, %v8224_v51  ;;  %vm1504_vm7 = vcmask 769024   ;;  %v1324_v44 = vadd.f32 %v1312_v58, %v1275_v46  ;;  %v8232_v46 = vld [vmem:[#allocation88_spill] sm:$0xff]  ;;  %v8236_v27 = vld [vmem:[#allocation87_spill] sm:$0xff] }
 0x635   : > { %v1372_v59 = vadd.f32 %v1360_v7, %v1323_v37  ;;  %v1457_v20 = vsel %vm1455_vm14, %v8225_v25, %v5519_v29  ;;  %v1456_v6 = vsel %vm1455_vm14, %v8226_v9, %v8225_v25  ;;  %v1418_v50 = vadd.f32 %v1407_v62, %v1369_v61 }
 0x636   : > { %v1419_v32 = vadd.f32 %v1408_v30, %v1370_v19  ;;  %v1411_v1 = vsel %vm1406_vm13, %v8228_v56, %v8227_v12  ;;  %v1371_v53 = vadd.f32 %v1359_v26, %v1322_v10  ;;  %v1373_v23 = vadd.f32 %v1361_v34, %v1324_v44  ;;  %v8237_v30 = vld [vmem:[#allocation85_spill] sm:$0xff] }
 0x637   : > { %v1505_v28 = vsel %vm1504_vm7, %v8229_v47, %v5523_v36  ;;  %v1506_v57 = vsel %vm1504_vm7, %v5523_v36, %v5655_v48  ;;  %v1362_v21 = vsel %vm8041_vm11, %v8224_v51, %v8230_v17  ;;  %v1467_v41 = vadd.f32 %v1456_v6, %v1418_v50 }
 0x638   : > { %v1468_v54 = vadd.f32 %v1457_v20, %v1419_v32  ;;  %vm1602_vm15 = vcmask 752640   ;;  %v1422_v11 = vadd.f32 %v1411_v1, %v1373_v23  ;;  %v1409_v45 = vsel %vm1406_vm13, %v8221_v22, %v8231_v0  ;;  %v8238_v20 = vld [vmem:[#allocation89_spill] sm:$0xff] }
 0x639   : > { %v1555_v35 = vsel %vm1553_vm0, %v5751_v31, %v5703_v5  ;;  %v1554_v36 = vsel %vm1553_vm0, %v8232_v46, %v5751_v31  ;;  %v1410_v16 = vsel %vm1406_vm13, %v8231_v0, %v8228_v56  ;;  %v1460_v10 = vsel %vm1455_vm14, %v8234_v52, %v8233_v3 }
 0x63a   : > { %v1516_v33 = vadd.f32 %v1505_v28, %v1467_v41  ;;  %v1517_v55 = vadd.f32 %v1506_v57, %v1468_v54  ;;  %v1458_v49 = vsel %vm1455_vm14, %v5519_v29, %v8235_v60  ;;  %v1459_v58 = vsel %vm1455_vm14, %v8235_v60, %v8234_v52 }
 0x63b   : > { %v1509_v7 = vsel %vm1504_vm7, %v8236_v27, %v5698_v63  ;;  %vm1641_vm13 = vcmask 506880   ;;  %v1420_v22 = vadd.f32 %v1409_v45, %v1371_v53  ;;  %v1421_v29 = vadd.f32 %v1410_v16, %v1372_v59 }
 0x63c   : > { %v1566_v37 = vadd.f32 %v1555_v35, %v1517_v55  ;;  %v1565_v61 = vadd.f32 %v1554_v36, %v1516_v33  ;;  %v1471_v43 = vadd.f32 %v1460_v10, %v1422_v11  ;;  %v1507_v24 = vsel %vm1504_vm7, %v5655_v48, %v8237_v30 }
 0x63d   : > { %v1508_v62 = vsel %vm1504_vm7, %v8237_v30, %v8236_v27  ;;  %v1469_v51 = vadd.f32 %v1458_v49, %v1420_v22  ;;  %v1470_v34 = vadd.f32 %v1459_v58, %v1421_v29  ;;  %v1556_v48 = vsel %vm1553_vm0, %v5703_v5, %v8238_v20  ;;  %v4318_v49 = vld [vmem:[%s7846_s3 + $0xd0] sm:$0xff]  ;;  %v4317_v58 = vld [vmem:[%s7846_s3 + $0xc8] sm:$0xff] }
 0x63e   : > { %v1520_v44 = vadd.f32 %v1509_v7, %v1471_v43  ;;  %v1557_v9 = vsel %vm1553_vm0, %v8238_v20, %v5805_v4  ;;  %v1374_v57 = vadd.f32 %v1362_v21, %v5865_v2  ;;  %v4320_v7 = vld [vmem:[%s7846_s3 + $0xe0] sm:$0xff]  ;;  %v4321_v43 = vld [vmem:[%s7846_s3 + $0xe8] sm:$0xff]  ;;  %vm2163_vm14 = vcmask 990208  }
 0x63f   : > { %v1518_v50 = vadd.f32 %v1507_v24, %v1469_v51  ;;  %v1519_v56 = vadd.f32 %v1508_v62, %v1470_v34  ;;  %v4322_v51 = vld [vmem:[%s7846_s3 + $0xf0] sm:$0xff]  ;;  %vm2207_vm7 = vcmask 965632   ;;  %vm8040_vm12 = vcmask 7168  }
 0x640   : > { %v1423_v11 = vadd.f32 %v8227_v12, %v1374_v57 }
 0x641   : > { %v1568_v17 = vadd.f32 %v1557_v9, %v1519_v56 }
 0x642   : > { %v1472_v46 = vadd.f32 %v8233_v3, %v1423_v11 }
 0x644   : > { %v1521_v10 = vadd.f32 %v5698_v63, %v1472_v46  ;;  %v4319_v63 = vld [vmem:[%s7846_s3 + $0xd8] sm:$0xff] }
 0x646   : > { %v1570_v55 = vadd.f32 %v5769_v38, %v1521_v10 }
 0x647   : > { %v5814_v8 = vpop.permute.xlu2 %1592 }
 0x64f   : > { %v5873_v14 = vpop.permute.xlu2 %1598 }
 0x657   : > { %v1632_v15 = vpop.permute.xlu2 %1631 }
 0x65f   : > { %v5853_v42 = vpop.permute.xlu0 %1594  ;;  %v1638_v41 = vpop.permute.xlu2 %1637 }
 0x660   : > { %v1591_v13 = vpop.permute.xlu1 %1590  ;;  %v1604_v31 = vsel %vm1602_vm15, %v5814_v8, %v5853_v42 }
 0x661   : > { %v1603_v40 = vsel %vm1602_vm15, %v1591_v13, %v5814_v8  ;;  %v1558_v8 = vsel %vm1553_vm0, %v5805_v4, %v5769_v38  ;;  %v1615_v13 = vadd.f32 %v1604_v31, %v1566_v37  ;;  %v1567_v4 = vadd.f32 %v1556_v48, %v1518_v50 }
 0x662   : > { %v1614_v26 = vadd.f32 %v1603_v40, %v1565_v61  ;;  %v1569_v1 = vadd.f32 %v1558_v8, %v1520_v44  ;;  %v4323_v44 = vld [vmem:[%s7846_s3 + $0xf8] sm:$0xff]  ;;  %vm1676_vm0 = vcmask 670720  }
 0x667   : > { %v5897_v39 = vpop.permute.xlu0 %1600 }
 0x668   : > { %v1597_v18 = vpop.permute.xlu1 %1596  ;;  %v1607_v53 = vsel %vm1602_vm15, %v5873_v14, %v5897_v39  ;;  %v1619_v3 = vadd.f32 %v5897_v39, %v1570_v55 }
 0x669   : > { %v1605_v23 = vsel %vm1602_vm15, %v5853_v42, %v1597_v18  ;;  %v1606_v47 = vsel %vm1602_vm15, %v1597_v18, %v5873_v14  ;;  %v1618_v54 = vadd.f32 %v1607_v53, %v1569_v1  ;;  %vm8051_vm15 = vcmask 261120  }
 0x66a   : > { %v1616_v0 = vadd.f32 %v1605_v23, %v1567_v4  ;;  %v1617_v45 = vadd.f32 %v1606_v47, %v1568_v17 }
 0x66f   : > { %v1634_v19 = vpop.permute.xlu0 %1633 }
 0x670   : > { %v1642_v59 = vsel %vm1641_vm13, %v1632_v15, %v1634_v19  ;;  %v1623_v25 = vpop.permute.xlu1 %1622 }
 0x671   : > { %v1626_v6 = vadd.f32 %v1623_v25, %v1615_v13  ;;  %v1625_v32 = vadd.f32 %v1623_v25, %v1614_v26  ;;  %v1629_v42 = vadd.f32 %v1623_v25, %v1618_v54  ;;  %v1628_v18 = vadd.f32 %v1623_v25, %v1617_v45 }
 0x672   : > { %v1627_v2 = vadd.f32 %v1623_v25, %v1616_v0 }
 0x673   : > { %v1653_v5 = vmul.f32 %v1642_v59, %v1626_v6  ;;  %v1652_v28 = vmul.f32 %v1632_v15, %v1625_v32  ;;  %v1630_v15 = vadd.f32 %v1623_v25, %v1619_v3 }
 0x675   : > { %1666 = vrot.lane.b32.xlu2 %v1653_v5, %s4620_s12  ;;  %1664 = vrot.lane.b32.xlu1 %v1652_v28, %s4620_s12 }
 0x677   : > { %v1640_v35 = vpop.permute.xlu0 %1639 }
 0x678   : > { %v1645_v14 = vsel %vm1641_vm13, %v1638_v41, %v1640_v35  ;;  %v1636_v36 = vpop.permute.xlu1 %1635  ;;  %v1657_v60 = vmul.f32 %v1640_v35, %v1630_v15 }
 0x679   : > { %v1656_v21 = vmul.f32 %v1645_v14, %v1629_v42  ;;  %v1643_v16 = vsel %vm1641_vm13, %v1634_v19, %v1636_v36  ;;  %v1644_v52 = vsel %vm1641_vm13, %v1636_v36, %v1638_v41  ;;  %vm8045_vm13 = vcmask 105472  }
 0x67a   : > { %v1654_v33 = vmul.f32 %v1643_v16, %v1627_v2  ;;  %v1655_v12 = vmul.f32 %v1644_v52, %v1628_v18  ;;  %v4324_v18 = vld [vmem:[%s7846_s3 + $0x100] sm:$0xff] }
 0x67c   : > { %1668 = vrot.lane.b32.xlu0 %v1654_v33, %s4620_s12 }
 0x67d   : > { %1672 = vrot.lane.b32.xlu2 %v1656_v21, %s4620_s12  ;;  %1670 = vrot.lane.b32.xlu1 %v1655_v12, %s4620_s12 }
 0x684   : > { %1674 = vrot.lane.b32.xlu0 %v1657_v60, %s4620_s12  ;;  %s4622_s12 = smov 119  }
 0x685   : > { %1709 = vperm.xlu2 %4493, %v4318_v49   ;;  %1694 = vperm.xlu1 %4492, %v4317_v58   ;;  %v4325_v49 = vld [vmem:[%s7846_s3 + $0x108] sm:$0xff] }
 0x68d   : > { %1745 = vperm.xlu1 %4492, %v4319_v63  }
 0x6cf   : > { %v1667_v38 = vpop.permute.xlu2 %1666 }
 0x6d7   : > { %v5978_v39 = vpop.permute.xlu2 %1672 }
 0x6df   : > { %v1710_v31 = vpop.permute.xlu2 %1709 }
 0x6e0   : > { %v1712_v40 = vmul.f32 0.0, %v1710_v31 }
 0x6e2   : > { %1720 = vrot.lane.b32.xlu0 %v1712_v40, %s4599_s7 }
 0x6e7   : > { %v1665_v27 = vpop.permute.xlu1 %1664 }
 0x6e8   : > { %v1677_v59 = vsel %vm1676_vm0, %v1665_v27, %v1667_v38 }
 0x6e9   : > { %v6008_v25 = vsel %vm414_vm2, 0.0, %v1677_v59 }
 0x6ea   : > { %1782 = vperm.xlu0 %4491, %v4320_v7   ;;  %8240 = vst [vmem:[#allocation11_spill] sm:$0xff] %v6008_v25  ;;  %v1713_v4 = vmul.f32 %v1710_v31, %v6008_v25 }
 0x6ee   : > { %v1669_v30 = vpop.permute.xlu0 %1668 }
 0x6ef   : > { %v5984_v37 = vpop.permute.xlu1 %1670  ;;  %v6029_v5 = vsel %vm1676_vm0, %v1667_v38, %v1669_v30 }
 0x6f0   : > { %v6021_v56 = vsel %vm1676_vm0, %v1669_v30, %v5984_v37  ;;  %v1714_v54 = vmul.f32 %v1710_v31, %v6029_v5  ;;  %v6087_v58 = vsel %vm1676_vm0, %v5984_v37, %v5978_v39  ;;  %v4326_v37 = vld [vmem:[%s7846_s3 + $0x110] sm:$0xff] }
 0x6f1   : > { %v1715_v53 = vmul.f32 %v1710_v31, %v6021_v56 }
 0x6f6   : > { %v5992_v24 = vpop.permute.xlu0 %1674 }
 0x6f7   : > { %v5986_v61 = vpop.permute.xlu1 %1694 }
 0x6f8   : > { %8239 = vst [vmem:[#allocation24_spill] sm:$0xff] %v5986_v61 }
 0x6ff   : > { %v1746_v22 = vpop.permute.xlu1 %1745 }
 0x700   : > { %v1748_v29 = vmul.f32 0.0, %v1746_v22  ;;  %v1749_v20 = vmul.f32 %v1746_v22, %v6008_v25  ;;  %v1751_v0 = vmul.f32 %v1746_v22, %v6021_v56  ;;  %v1750_v45 = vmul.f32 %v1746_v22, %v6029_v5 }
 0x702   : > { %1756 = vrot.lane.b32.xlu2 %v1748_v29, %s4621_s23 }
 0x70a   : > { %1819 = vperm.xlu2 %4493, %v4321_v43  }
 0x754   : > { %v5994_v62 = vpop.permute.xlu0 %1720 }
 0x75c   : > { %v5996_v8 = vpop.permute.xlu2 %1756  ;;  %v1783_v13 = vpop.permute.xlu0 %1782 }
 0x75d   : > { %v1785_v26 = vmul.f32 0.0, %v1783_v13  ;;  %v1786_v23 = vmul.f32 %v1783_v13, %v6008_v25  ;;  %v1787_v28 = vmul.f32 %v1783_v13, %v6029_v5  ;;  %v1788_v42 = vmul.f32 %v1783_v13, %v6021_v56 }
 0x75f   : > { %1793 = vrot.lane.b32.xlu1 %v1785_v26, %s4622_s12 }
 0x764   : > { %v1820_v19 = vpop.permute.xlu2 %1819 }
 0x765   : > { %v1822_v34 = vmul.f32 0.0, %v1820_v19  ;;  %v1825_v17 = vmul.f32 %v1820_v19, %v6021_v56  ;;  %v1823_v41 = vmul.f32 %v1820_v19, %v6008_v25  ;;  %v1824_v35 = vmul.f32 %v1820_v19, %v6029_v5 }
 0x767   : > { %1830 = vrot.lane.b32.xlu0 %v1822_v34, %s4623_s10  ;;  %1856 = vperm.xlu1 %4492, %v4322_v51   ;;  %v4327_v34 = vld [vmem:[%s7846_s3 + $0x118] sm:$0xff] }
 0x76f   : > { %1893 = vperm.xlu0 %4491, %v4323_v44  }
 0x777   : > { %1758 = vrot.lane.b32.xlu0 %v1749_v20, %s4621_s23 }
 0x7d1   : > { %v6012_v48 = vpop.permute.xlu1 %1793 }
 0x7d9   : > { %v1857_v9 = vpop.permute.xlu1 %1856  ;;  %v6014_v6 = vpop.permute.xlu0 %1830 }
 0x7da   : > { %v1859_v32 = vmul.f32 0.0, %v1857_v9  ;;  %v1860_v50 = vmul.f32 %v1857_v9, %v6008_v25  ;;  %v1862_v46 = vmul.f32 %v1857_v9, %v6021_v56  ;;  %v1861_v14 = vmul.f32 %v1857_v9, %v6029_v5 }
 0x7dc   : > { %1867 = vrot.lane.b32.xlu2 %v1859_v32, %s4624_s15  ;;  %1869 = vrot.lane.b32.xlu0 %v1860_v50, %s4624_s15 }
 0x7e1   : > { %v1894_v1 = vpop.permute.xlu0 %1893 }
 0x7e2   : > { %v1896_v47 = vmul.f32 0.0, %v1894_v1  ;;  %v1897_v57 = vmul.f32 %v1894_v1, %v6008_v25  ;;  %v1898_v11 = vmul.f32 %v1894_v1, %v6029_v5  ;;  %v1899_v36 = vmul.f32 %v1894_v1, %v6021_v56 }
 0x7e4   : > { %1726 = vrot.lane.b32.xlu0 %v1715_v53, %s4599_s7  ;;  %1795 = vrot.lane.b32.xlu2 %v1786_v23, %s4622_s12  ;;  %v4328_v53 = vld [vmem:[%s7846_s3 + $0x120] sm:$0xff] }
 0x7e5   : > { %1904 = vrot.lane.b32.xlu1 %v1896_v47, %s4625_s26 }
 0x7ec   : > { %1797 = vrot.lane.b32.xlu0 %v1787_v28, %s4622_s12  ;;  %1906 = vrot.lane.b32.xlu2 %v1897_v57, %s4625_s26 }
 0x7ed   : > { %1722 = vrot.lane.b32.xlu1 %v1713_v4, %s4599_s7 }
 0x7f4   : > { %1836 = vrot.lane.b32.xlu0 %v1825_v17, %s4623_s10  ;;  %1724 = vrot.lane.b32.xlu2 %v1714_v54, %s4599_s7  ;;  %s4629_s7 = smov 13  }
 0x7f5   : > { %1832 = vrot.lane.b32.xlu1 %v1823_v41, %s4623_s10  ;;  %v4329_v41 = vld [vmem:[%s7846_s3 + $0x128] sm:$0xff] }
 0x7fc   : > { %1908 = vrot.lane.b32.xlu0 %v1898_v11, %s4625_s26  ;;  %1762 = vrot.lane.b32.xlu2 %v1751_v0, %s4621_s23 }
 0x7fd   : > { %1760 = vrot.lane.b32.xlu1 %v1750_v45, %s4621_s23  ;;  %s4632_s23 = smov 24  }
 0x804   : > { %1834 = vrot.lane.b32.xlu2 %v1824_v35, %s4623_s10  ;;  %s4633_s10 = smov 21  }
 0x805   : > { %1799 = vrot.lane.b32.xlu1 %v1788_v42, %s4622_s12  ;;  %s4647_s12 = smov 34  }
 0x80c   : > { %1873 = vrot.lane.b32.xlu2 %v1862_v46, %s4624_s15 }
 0x80d   : > { %1871 = vrot.lane.b32.xlu1 %v1861_v14, %s4624_s15  ;;  %s8260_s15 = smov 16  }
 0x814   : > { %1930 = vperm.xlu2 %4493, %v4324_v18   ;;  %v4330_v18 = vld [vmem:[%s7846_s3 + $0x130] sm:$0xff] }
 0x815   : > { %1910 = vrot.lane.b32.xlu1 %v1899_v36, %s4625_s26  ;;  %s4640_s26 = smov 26  }
 0x836   : > { %v6062_v2 = vpop.permute.xlu2 %1867 }
 0x83e   : > { %v6064_v21 = vpop.permute.xlu2 %1795 }
 0x83f   : > { %8241 = vst [vmem:[#allocation26_spill] sm:$0xff] %v6064_v21 }
 0x846   : > { %v6066_v16 = vpop.permute.xlu2 %1906 }
 0x847   : > { %8242 = vst [vmem:[#allocation5_spill] sm:$0xff] %v6066_v16 }
 0x84e   : > { %v6068_v52 = vpop.permute.xlu2 %1724 }
 0x84f   : > { %8243 = vst [vmem:[#allocation41_spill] sm:$0xff] %v6068_v52 }
 0x856   : > { %v6070_v10 = vpop.permute.xlu2 %1762 }
 0x857   : > { %8244 = vst [vmem:[#allocation14_spill] sm:$0xff] %v6070_v10 }
 0x85e   : > { %v6072_v33 = vpop.permute.xlu2 %1834 }
 0x85f   : > { %8245 = vst [vmem:[#allocation10_spill] sm:$0xff] %v6072_v33 }
 0x866   : > { %v6074_v12 = vpop.permute.xlu2 %1873 }
 0x867   : > { %8246 = vst [vmem:[#allocation21_spill] sm:$0xff] %v6074_v12 }
 0x86e   : > { %v1931_v55 = vpop.permute.xlu2 %1930 }
 0x86f   : > { %v1933_v3 = vmul.f32 0.0, %v1931_v55  ;;  %v1935_v15 = vmul.f32 %v1931_v55, %v6029_v5  ;;  %v1934_v60 = vmul.f32 %v1931_v55, %v6008_v25  ;;  %v1936_v63 = vmul.f32 %v1931_v55, %v6021_v56 }
 0x870   : > { %v1937_v38 = vmul.f32 %v1931_v55, %v6087_v58 }
 0x871   : > { %1943 = vrot.lane.b32.xlu0 %v1933_v3, %s4609_s13  ;;  %1947 = vrot.lane.b32.xlu2 %v1935_v15, %s4609_s13 }
 0x872   : > { %1945 = vrot.lane.b32.xlu1 %v1934_v60, %s4609_s13 }
 0x879   : > { %1949 = vrot.lane.b32.xlu0 %v1936_v63, %s4609_s13  ;;  %1971 = vperm.xlu2 %4493, %v4325_v49  }
 0x87a   : > { %1951 = vrot.lane.b32.xlu1 %v1937_v38, %s4609_s13  ;;  %s4626_s13 = smov 2   ;;  %v4331_v38 = vld [vmem:[%s7846_s3 + $0x138] sm:$0xff] }
 0x8cb   : > { %v6093_v31 = vpop.permute.xlu2 %1947 }
 0x8cc   : > { %8247 = vst [vmem:[#allocation12_spill] sm:$0xff] %v6093_v31 }
 0x8d3   : > { %v1972_v40 = vpop.permute.xlu2 %1971 }
 0x8d4   : > { %v1974_v27 = vmul.f32 0.0, %v1972_v40  ;;  %v1976_v7 = vmul.f32 %v1972_v40, %v6029_v5  ;;  %v1975_v22 = vmul.f32 %v1972_v40, %v6008_v25  ;;  %v1977_v29 = vmul.f32 %v1972_v40, %v6021_v56 }
 0x8d5   : > { %v1978_v43 = vmul.f32 %v1972_v40, %v6087_v58 }
 0x8d6   : > { %1984 = vrot.lane.b32.xlu0 %v1974_v27, %s4612_s16  ;;  %1988 = vrot.lane.b32.xlu2 %v1976_v7, %s4612_s16  ;;  %v6162_v7 = vpop.permute.xlu0 %1758 }
 0x8d7   : > { %1986 = vrot.lane.b32.xlu1 %v1975_v22, %s4612_s16 }
 0x8de   : > { %1990 = vrot.lane.b32.xlu0 %v1977_v29, %s4612_s16  ;;  %2012 = vperm.xlu2 %4493, %v4326_v37   ;;  %v6164_v22 = vpop.permute.xlu0 %1869 }
 0x8df   : > { %1992 = vrot.lane.b32.xlu1 %v1978_v43, %s4612_s16  ;;  %8253 = vst [vmem:[#allocation15_spill] sm:$0xff] %v6164_v22  ;;  %s8303_s16 = smov 126  }
 0x8e6   : > { %v6166_v37 = vpop.permute.xlu0 %1726 }
 0x8e7   : > { %8254 = vst [vmem:[#allocation37_spill] sm:$0xff] %v6166_v37 }
 0x8ee   : > { %v6168_v29 = vpop.permute.xlu0 %1797 }
 0x8ef   : > { %8255 = vst [vmem:[#allocation38_spill] sm:$0xff] %v6168_v29 }
 0x8f6   : > { %v6170_v43 = vpop.permute.xlu0 %1836 }
 0x8f7   : > { %8256 = vst [vmem:[#allocation52_spill] sm:$0xff] %v6170_v43 }
 0x930   : > { %v6107_v30 = vpop.permute.xlu2 %1988 }
 0x931   : > { %8248 = vst [vmem:[#allocation31_spill] sm:$0xff] %v6107_v30 }
 0x938   : > { %v2013_v13 = vpop.permute.xlu2 %2012 }
 0x939   : > { %v2015_v26 = vmul.f32 0.0, %v2013_v13  ;;  %v2017_v19 = vmul.f32 %v2013_v13, %v6029_v5  ;;  %v2016_v51 = vmul.f32 %v2013_v13, %v6008_v25  ;;  %v2018_v44 = vmul.f32 %v2013_v13, %v6021_v56 }
 0x93a   : > { %v2019_v59 = vmul.f32 %v2013_v13, %v6087_v58  ;;  %v6172_v13 = vpop.permute.xlu0 %1908 }
 0x93b   : > { %2025 = vrot.lane.b32.xlu0 %v2015_v26, %s4626_s13  ;;  %2029 = vrot.lane.b32.xlu2 %v2017_v19, %s4626_s13  ;;  %8257 = vst [vmem:[#allocation53_spill] sm:$0xff] %v6172_v13 }
 0x93c   : > { %2027 = vrot.lane.b32.xlu1 %v2016_v51, %s4626_s13 }
 0x942   : > { %v6174_v26 = vpop.permute.xlu0 %1943 }
 0x943   : > { %2031 = vrot.lane.b32.xlu0 %v2018_v44, %s4626_s13  ;;  %2054 = vperm.xlu2 %4493, %v4327_v34  }
 0x944   : > { %2033 = vrot.lane.b32.xlu1 %v2019_v59, %s4626_s13  ;;  %s4638_s13 = smov 32  }
 0x94a   : > { %v6178_v34 = vpop.permute.xlu0 %1949 }
 0x94b   : > { %8259 = vst [vmem:[#allocation6_spill] sm:$0xff] %v6178_v34 }
 0x995   : > { %v6116_v20 = vpop.permute.xlu2 %2029 }
 0x996   : > { %8249 = vst [vmem:[#allocation43_spill] sm:$0xff] %v6116_v20 }
 0x99d   : > { %v2055_v9 = vpop.permute.xlu2 %2054 }
 0x99e   : > { %v2057_v32 = vmul.f32 0.0, %v2055_v9  ;;  %v2059_v50 = vmul.f32 %v2055_v9, %v6029_v5  ;;  %v2058_v1 = vmul.f32 %v2055_v9, %v6008_v25  ;;  %v2060_v23 = vmul.f32 %v2055_v9, %v6021_v56 }
 0x99f   : > { %v2061_v47 = vmul.f32 %v2055_v9, %v6087_v58 }
 0x9a0   : > { %2067 = vrot.lane.b32.xlu0 %v2057_v32, %s4597_s30  ;;  %2071 = vrot.lane.b32.xlu2 %v2059_v50, %s4597_s30  ;;  %v6188_v32 = vsel %vm1676_vm0, %v5978_v39, %v5992_v24  ;;  %v6190_v50 = vpop.permute.xlu0 %1984  ;;  %vm8043_vm0 = vcmask 80896  }
 0x9a1   : > { %2069 = vrot.lane.b32.xlu1 %v2058_v1, %s4597_s30 }
 0x9a8   : > { %2073 = vrot.lane.b32.xlu0 %v2060_v23, %s4597_s30  ;;  %2097 = vperm.xlu2 %4493, %v4328_v53   ;;  %v6201_v39 = vpop.permute.xlu0 %1990 }
 0x9a9   : > { %2075 = vrot.lane.b32.xlu1 %v2061_v47, %s4597_s30  ;;  %s4627_s30 = smov 121   ;;  %v4332_v47 = vld [vmem:[%s7846_s3 + $0x140] sm:$0xff]  ;;  %8261 = vst [vmem:[#allocation7_spill] sm:$0xff] %v6201_v39 }
 0x9fa   : > { %v6130_v28 = vpop.permute.xlu2 %2071 }
 0x9fb   : > { %8250 = vst [vmem:[#allocation45_spill] sm:$0xff] %v6130_v28 }
 0xa02   : > { %v2098_v57 = vpop.permute.xlu2 %2097 }
 0xa03   : > { %v2100_v4 = vmul.f32 0.0, %v2098_v57  ;;  %v2102_v17 = vmul.f32 %v2098_v57, %v6029_v5  ;;  %v2101_v54 = vmul.f32 %v2098_v57, %v6008_v25  ;;  %v2103_v11 = vmul.f32 %v2098_v57, %v6021_v56 }
 0xa04   : > { %v2104_v0 = vmul.f32 %v2098_v57, %v6087_v58  ;;  %v6203_v57 = vpop.permute.xlu0 %2025 }
 0xa05   : > { %2110 = vrot.lane.b32.xlu0 %v2100_v4, %s4598_s6  ;;  %2114 = vrot.lane.b32.xlu2 %v2102_v17, %s4598_s6  ;;  %8262 = vst [vmem:[#allocation22_spill] sm:$0xff] %v6203_v57  ;;  %v6207_v17 = vpop.permute.xlu1 %1904 }
 0xa06   : > { %2112 = vrot.lane.b32.xlu1 %v2101_v54, %s4598_s6 }
 0xa0c   : > { %v6205_v4 = vpop.permute.xlu0 %2031 }
 0xa0d   : > { %2116 = vrot.lane.b32.xlu0 %v2103_v11, %s4598_s6  ;;  %2140 = vperm.xlu2 %4493, %v4329_v41   ;;  %8263 = vst [vmem:[#allocation16_spill] sm:$0xff] %v6205_v4  ;;  %v6211_v41 = vpop.permute.xlu1 %1722 }
 0xa0e   : > { %2118 = vrot.lane.b32.xlu1 %v2104_v0, %s4598_s6  ;;  %s4628_s6 = smov 118  }
 0xa14   : > { %v6209_v54 = vpop.permute.xlu0 %2067 }
 0xa15   : > { %v6215_v0 = vpop.permute.xlu1 %1832 }
 0xa16   : > { %8265 = vst [vmem:[#allocation30_spill] sm:$0xff] %v6215_v0 }
 0xa1c   : > { %v6213_v11 = vpop.permute.xlu0 %2073 }
 0xa1d   : > { %8264 = vst [vmem:[#allocation17_spill] sm:$0xff] %v6213_v11 }
 0xa5f   : > { %v6144_v45 = vpop.permute.xlu2 %2114 }
 0xa60   : > { %8251 = vst [vmem:[#allocation33_spill] sm:$0xff] %v6144_v45 }
 0xa67   : > { %v2141_v35 = vpop.permute.xlu2 %2140 }
 0xa68   : > { %v2143_v42 = vmul.f32 0.0, %v2141_v35  ;;  %v2145_v46 = vmul.f32 %v2141_v35, %v6029_v5  ;;  %v2144_v14 = vmul.f32 %v2141_v35, %v6008_v25  ;;  %v2146_v36 = vmul.f32 %v2141_v35, %v6021_v56 }
 0xa69   : > { %v2147_v55 = vmul.f32 %v2141_v35, %v6087_v58 }
 0xa6a   : > { %2153 = vrot.lane.b32.xlu0 %v2143_v42, %s4627_s30  ;;  %2157 = vrot.lane.b32.xlu2 %v2145_v46, %s4627_s30  ;;  %v6219_v42 = vpop.permute.xlu1 %1760 }
 0xa6b   : > { %2155 = vrot.lane.b32.xlu1 %v2144_v14, %s4627_s30  ;;  %8266 = vst [vmem:[#allocation47_spill] sm:$0xff] %v6219_v42 }
 0xa72   : > { %2159 = vrot.lane.b32.xlu0 %v2146_v36, %s4627_s30  ;;  %2184 = vperm.xlu2 %4493, %v4330_v18   ;;  %v6223_v14 = vpop.permute.xlu1 %1799 }
 0xa73   : > { %2161 = vrot.lane.b32.xlu1 %v2147_v55, %s4627_s30  ;;  %8268 = vst [vmem:[#allocation35_spill] sm:$0xff] %v6223_v14  ;;  %s4630_s30 = smov 10  }
 0xa77   : > { %v6217_v35 = vpop.permute.xlu0 %2110 }
 0xa7a   : > { %v6227_v36 = vpop.permute.xlu1 %1871 }
 0xa7b   : > { %8269 = vst [vmem:[#allocation18_spill] sm:$0xff] %v6227_v36 }
 0xa7f   : > { %v6221_v46 = vpop.permute.xlu0 %2116 }
 0xa80   : > { %8267 = vst [vmem:[#allocation49_spill] sm:$0xff] %v6221_v46 }
 0xac4   : > { %v6153_v3 = vpop.permute.xlu2 %2157 }
 0xac5   : > { %8252 = vst [vmem:[#allocation13_spill] sm:$0xff] %v6153_v3 }
 0xacc   : > { %v2185_v15 = vpop.permute.xlu2 %2184 }
 0xacd   : > { %v2187_v60 = vmul.f32 0.0, %v2185_v15  ;;  %v2189_v49 = vmul.f32 %v2185_v15, %v6029_v5  ;;  %v2188_v63 = vmul.f32 %v2185_v15, %v6008_v25  ;;  %v2190_v40 = vmul.f32 %v2185_v15, %v6021_v56 }
 0xace   : > { %v2191_v27 = vmul.f32 %v2185_v15, %v6087_v58  ;;  %v6231_v15 = vpop.permute.xlu1 %1910 }
 0xacf   : > { %2197 = vrot.lane.b32.xlu0 %v2187_v60, %s4628_s6  ;;  %2201 = vrot.lane.b32.xlu2 %v2189_v49, %s4628_s6  ;;  %8271 = vst [vmem:[#allocation23_spill] sm:$0xff] %v6231_v15 }
 0xad0   : > { %2199 = vrot.lane.b32.xlu1 %v2188_v63, %s4628_s6 }
 0xad6   : > { %v6235_v49 = vpop.permute.xlu1 %1945 }
 0xad7   : > { %2203 = vrot.lane.b32.xlu0 %v2190_v40, %s4628_s6  ;;  %2228 = vperm.xlu2 %4493, %v4331_v38   ;;  %8272 = vst [vmem:[#allocation40_spill] sm:$0xff] %v6235_v49 }
 0xad8   : > { %2205 = vrot.lane.b32.xlu1 %v2191_v27, %s4628_s6  ;;  %s8334_s6 = smov 6  }
 0xadc   : > { %v6225_v18 = vpop.permute.xlu0 %2153 }
 0xade   : > { %v6239_v38 = vpop.permute.xlu1 %1951 }
 0xadf   : > { %8274 = vst [vmem:[#allocation54_spill] sm:$0xff] %v6239_v38 }
 0xae4   : > { %v6229_v55 = vpop.permute.xlu0 %2159 }
 0xae5   : > { %8270 = vst [vmem:[#allocation19_spill] sm:$0xff] %v6229_v55  ;;  %v4333_v55 = vld [vmem:[%s7846_s3 + $0x148] sm:$0xff] }
 0xae6   : > { %v6243_v27 = vpop.permute.xlu1 %1986 }
 0xae7   : > { %8275 = vst [vmem:[#allocation55_spill] sm:$0xff] %v6243_v27 }
 0xb29   : > { %v6176_v19 = vpop.permute.xlu2 %2201 }
 0xb2a   : > { %8258 = vst [vmem:[#allocation28_spill] sm:$0xff] %v6176_v19 }
 0xb31   : > { %v2229_v51 = vpop.permute.xlu2 %2228 }
 0xb32   : > { %v2231_v44 = vmul.f32 0.0, %v2229_v51  ;;  %v2233_v59 = vmul.f32 %v2229_v51, %v6029_v5  ;;  %v2232_v9 = vmul.f32 %v2229_v51, %v6008_v25  ;;  %v2234_v1 = vmul.f32 %v2229_v51, %v6021_v56 }
 0xb33   : > { %v2236_v53 = vmul.f32 %v2229_v51, %v6188_v32  ;;  %v2235_v23 = vmul.f32 %v2229_v51, %v6087_v58 }
 0xb34   : > { %2243 = vrot.lane.b32.xlu0 %v2231_v44, %s8260_s15  ;;  %2247 = vrot.lane.b32.xlu2 %v2233_v59, %s8260_s15  ;;  %v6247_v59 = vpop.permute.xlu1 %1992 }
 0xb35   : > { %2245 = vrot.lane.b32.xlu1 %v2232_v9, %s8260_s15  ;;  %8277 = vst [vmem:[#allocation8_spill] sm:$0xff] %v6247_v59 }
 0xb3c   : > { %2249 = vrot.lane.b32.xlu0 %v2234_v1, %s8260_s15  ;;  %2253 = vrot.lane.b32.xlu2 %v2236_v53, %s8260_s15 }
 0xb3d   : > { %2251 = vrot.lane.b32.xlu1 %v2235_v23, %s8260_s15  ;;  %v6251_v23 = vpop.permute.xlu1 %2027  ;;  %s4635_s15 = smov 15  }
 0xb3e   : > { %8278 = vst [vmem:[#allocation36_spill] sm:$0xff] %v6251_v23 }
 0xb41   : > { %v6233_v60 = vpop.permute.xlu0 %2197 }
 0xb44   : > { %2276 = vperm.xlu0 %4491, %v4332_v47  }
 0xb45   : > { %v6259_v46 = vpop.permute.xlu1 %2033 }
 0xb46   : > { %8279 = vst [vmem:[#allocation25_spill] sm:$0xff] %v6259_v46 }
 0xb49   : > { %v6237_v63 = vpop.permute.xlu0 %2203 }
 0xb4a   : > { %8273 = vst [vmem:[#allocation39_spill] sm:$0xff] %v6237_v63 }
 0xb8e   : > { %v6293_v30 = vpop.permute.xlu2 %2247 }
 0xb8f   : > { %8287 = vst [vmem:[#allocation29_spill] sm:$0xff] %v6293_v30 }
 0xb96   : > { %v6295_v34 = vpop.permute.xlu2 %2253 }
 0xb97   : > { %8288 = vst [vmem:[#allocation42_spill] sm:$0xff] %v6295_v34 }
 0xba6   : > { %v6241_v40 = vpop.permute.xlu0 %2243 }
 0xbae   : > { %v6245_v51 = vpop.permute.xlu0 %2249 }
 0xbaf   : > { %8276 = vst [vmem:[#allocation32_spill] sm:$0xff] %v6245_v51 }
 0xbb6   : > { %v2277_v44 = vpop.permute.xlu0 %2276 }
 0xbb7   : > { %v2279_v9 = vmul.f32 0.0, %v2277_v44  ;;  %v2281_v1 = vmul.f32 %v2277_v44, %v6029_v5  ;;  %v2280_v53 = vmul.f32 %v2277_v44, %v6008_v25  ;;  %v2282_v47 = vmul.f32 %v2277_v44, %v6021_v56 }
 0xbb8   : > { %v2284_v63 = vmul.f32 %v2277_v44, %v6188_v32  ;;  %v2283_v51 = vmul.f32 %v2277_v44, %v6087_v58 }
 0xbb9   : > { %2291 = vrot.lane.b32.xlu1 %v2279_v9, %s4629_s7  ;;  %2295 = vrot.lane.b32.xlu0 %v2281_v1, %s4629_s7  ;;  %v6261_v9 = vpop.permute.xlu1 %2069 }
 0xbba   : > { %2293 = vrot.lane.b32.xlu2 %v2280_v53, %s4629_s7  ;;  %8280 = vst [vmem:[#allocation20_spill] sm:$0xff] %v6261_v9 }
 0xbc1   : > { %2297 = vrot.lane.b32.xlu1 %v2282_v47, %s4629_s7  ;;  %2301 = vrot.lane.b32.xlu0 %v2284_v63, %s4629_s7  ;;  %v6263_v1 = vpop.permute.xlu1 %2075 }
 0xbc2   : > { %2299 = vrot.lane.b32.xlu2 %v2283_v51, %s4629_s7  ;;  %8281 = vst [vmem:[#allocation34_spill] sm:$0xff] %v6263_v1  ;;  %s4636_s7 = smov 12  }
 0xbc9   : > { %2325 = vperm.xlu1 %4492, %v4333_v55   ;;  %v6265_v53 = vpop.permute.xlu1 %2112 }
 0xbd1   : > { %v6267_v11 = vpop.permute.xlu1 %2118 }
 0xbd2   : > { %8282 = vst [vmem:[#allocation51_spill] sm:$0xff] %v6267_v11 }
 0xbd9   : > { %v6269_v20 = vpop.permute.xlu1 %2155 }
 0xbe1   : > { %v6271_v44 = vpop.permute.xlu1 %2161 }
 0xbe2   : > { %8283 = vst [vmem:[#allocation44_spill] sm:$0xff] %v6271_v44 }
 0xbe9   : > { %v6273_v63 = vpop.permute.xlu1 %2199 }
 0xbf1   : > { %v6275_v51 = vpop.permute.xlu1 %2205 }
 0xbf2   : > { %8284 = vst [vmem:[#allocation9_spill] sm:$0xff] %v6275_v51 }
 0xbf9   : > { %v6277_v47 = vpop.permute.xlu1 %2245 }
 0xc01   : > { %v6279_v4 = vpop.permute.xlu1 %2251 }
 0xc02   : > { %8285 = vst [vmem:[#allocation56_spill] sm:$0xff] %v6279_v4 }
 0xc2b   : > { %v6281_v55 = vpop.permute.xlu1 %2291 }
 0xc33   : > { %v6283_v46 = vpop.permute.xlu1 %2297 }
 0xc34   : > { %8286 = vst [vmem:[#allocation27_spill] sm:$0xff] %v6283_v46  ;;  %v4334_v46 = vld [vmem:[%s7846_s3 + $0x150] sm:$0xff] }
 0xc3b   : > { %v2326_v1 = vpop.permute.xlu1 %2325 }
 0xc3c   : > { %v2330_v39 = vmul.f32 %v2326_v1, %v6029_v5  ;;  %v2329_v11 = vmul.f32 %v2326_v1, %v6008_v25  ;;  %v2328_v59 = vmul.f32 0.0, %v2326_v1  ;;  %v2333_v51 = vmul.f32 %v2326_v1, %v6188_v32 }
 0xc3d   : > { %v2332_v44 = vmul.f32 %v2326_v1, %v6087_v58  ;;  %v2331_v4 = vmul.f32 %v2326_v1, %v6021_v56 }
 0xc3e   : > { %2344 = vrot.lane.b32.xlu1 %v2330_v39, %s4630_s30  ;;  %2342 = vrot.lane.b32.xlu0 %v2329_v11, %s4630_s30  ;;  %v6297_v39 = vpop.permute.xlu2 %2293 }
 0xc3f   : > { %2340 = vrot.lane.b32.xlu2 %v2328_v59, %s4630_s30 }
 0xc46   : > { %2350 = vrot.lane.b32.xlu1 %v2333_v51, %s4630_s30  ;;  %2348 = vrot.lane.b32.xlu0 %v2332_v44, %s4630_s30  ;;  %v6299_v11 = vpop.permute.xlu2 %2299 }
 0xc47   : > { %2346 = vrot.lane.b32.xlu2 %v2331_v4, %s4630_s30  ;;  %8289 = vst [vmem:[#allocation46_spill] sm:$0xff] %v6299_v11  ;;  %s4637_s30 = smov 9  }
 0xc4f   : > { %2374 = vperm.xlu2 %4493, %v4334_v46  }
 0xc99   : > { %v6301_v59 = vpop.permute.xlu2 %2340 }
 0xca1   : > { %v6303_v38 = vpop.permute.xlu2 %2346 }
 0xca2   : > { %8290 = vst [vmem:[#allocation57_spill] sm:$0xff] %v6303_v38 }
 0xca9   : > { %v2375_v1 = vpop.permute.xlu2 %2374 }
 0xcaa   : > { %v2377_v44 = vmul.f32 0.0, %v2375_v1  ;;  %v2379_v4 = vmul.f32 %v2375_v1, %v6029_v5  ;;  %v2378_v51 = vmul.f32 %v2375_v1, %v6008_v25  ;;  %v2380_v46 = vmul.f32 %v2375_v1, %v6021_v56 }
 0xcab   : > { %v2382_v11 = vmul.f32 %v2375_v1, %v6188_v32  ;;  %v2381_v34 = vmul.f32 %v2375_v1, %v6087_v58 }
 0xcac   : > { %2389 = vrot.lane.b32.xlu0 %v2377_v44, %s8071_s25  ;;  %2393 = vrot.lane.b32.xlu2 %v2379_v4, %s8071_s25  ;;  %v4335_v44 = vld [vmem:[%s7846_s3 + $0x158] sm:$0xff]  ;;  %v6319_v4 = vpop.permute.xlu0 %2295 }
 0xcad   : > { %2391 = vrot.lane.b32.xlu1 %v2378_v51, %s8071_s25  ;;  %8291 = vst [vmem:[#allocation58_spill] sm:$0xff] %v6319_v4 }
 0xcb4   : > { %2395 = vrot.lane.b32.xlu0 %v2380_v46, %s8071_s25  ;;  %2399 = vrot.lane.b32.xlu2 %v2382_v11, %s8071_s25  ;;  %v6321_v51 = vpop.permute.xlu0 %2301 }
 0xcb5   : > { %2397 = vrot.lane.b32.xlu1 %v2381_v34, %s8071_s25  ;;  %8292 = vst [vmem:[#allocation48_spill] sm:$0xff] %v6321_v51  ;;  %s4634_s25 = smov 18  }
 0xcbc   : > { %2422 = vperm.xlu0 %4491, %v4335_v44   ;;  %v6323_v38 = vpop.permute.xlu0 %2342 }
 0xcc4   : > { %v6325_v31 = vpop.permute.xlu0 %2348 }
 0xcc5   : > { %8293 = vst [vmem:[#allocation62_spill] sm:$0xff] %v6325_v31 }
 0xd1e   : > { %v6327_v1 = vpop.permute.xlu0 %2389 }
 0xd26   : > { %v6329_v46 = vpop.permute.xlu0 %2395 }
 0xd27   : > { %8294 = vst [vmem:[#allocation50_spill] sm:$0xff] %v6329_v46 }
 0xd2e   : > { %v2423_v11 = vpop.permute.xlu0 %2422 }
 0xd2f   : > { %v2427_v34 = vmul.f32 %v2423_v11, %v6029_v5  ;;  %v2426_v13 = vmul.f32 %v2423_v11, %v6008_v25  ;;  %v2425_v15 = vmul.f32 0.0, %v2423_v11  ;;  %v2430_v44 = vmul.f32 %v2423_v11, %v6188_v32 }
 0xd30   : > { %v2429_v31 = vmul.f32 %v2423_v11, %v6087_v58  ;;  %v2428_v51 = vmul.f32 %v2423_v11, %v6021_v56 }
 0xd31   : > { %2441 = vrot.lane.b32.xlu0 %v2427_v34, %s4613_s8  ;;  %2439 = vrot.lane.b32.xlu2 %v2426_v13, %s4613_s8  ;;  %v4336_v34 = vld [vmem:[%s7846_s3 + $0x160] sm:$0xff]  ;;  %v6345_v13 = vpop.permute.xlu1 %2344 }
 0xd32   : > { %2437 = vrot.lane.b32.xlu1 %v2425_v15, %s4613_s8  ;;  %8295 = vst [vmem:[#allocation59_spill] sm:$0xff] %v6345_v13  ;;  %v6365_v13 = vpop.permute.xlu2 %2393 }
 0xd33   : > { %8299 = vst [vmem:[#allocation60_spill] sm:$0xff] %v6365_v13 }
 0xd39   : > { %2447 = vrot.lane.b32.xlu0 %v2430_v44, %s4613_s8  ;;  %2445 = vrot.lane.b32.xlu2 %v2429_v31, %s4613_s8  ;;  %v6347_v15 = vpop.permute.xlu1 %2350 }
 0xd3a   : > { %2443 = vrot.lane.b32.xlu1 %v2428_v51, %s4613_s8  ;;  %8296 = vst [vmem:[#allocation63_spill] sm:$0xff] %v6347_v15  ;;  %s4631_s8 = smov 1   ;;  %v6367_v36 = vpop.permute.xlu2 %2399 }
 0xd3b   : > { %8300 = vst [vmem:[#allocation69_spill] sm:$0xff] %v6367_v36 }
 0xd41   : > { %v6349_v46 = vpop.permute.xlu1 %2391 }
 0xd42   : > { %2470 = vperm.xlu1 %4492, %v4336_v34  }
 0xd49   : > { %v6351_v12 = vpop.permute.xlu1 %2397 }
 0xd4a   : > { %8297 = vst [vmem:[#allocation68_spill] sm:$0xff] %v6351_v12 }
 0xda4   : > { %v6353_v11 = vpop.permute.xlu1 %2437 }
 0xdac   : > { %v6355_v44 = vpop.permute.xlu1 %2443 }
 0xdad   : > { %8298 = vst [vmem:[#allocation64_spill] sm:$0xff] %v6355_v44  ;;  %v4337_v44 = vld [vmem:[%s7846_s3 + $0x168] sm:$0xff] }
 0xdb4   : > { %v2471_v31 = vpop.permute.xlu1 %2470 }
 0xdb5   : > { %v2473_v4 = vmul.f32 0.0, %v2471_v31  ;;  %v2475_v51 = vmul.f32 %v2471_v31, %v6029_v5  ;;  %v2474_v43 = vmul.f32 %v2471_v31, %v6008_v25  ;;  %v2476_v34 = vmul.f32 %v2471_v31, %v6021_v56 }
 0xdb6   : > { %v2478_v15 = vmul.f32 %v2471_v31, %v6188_v32  ;;  %v2477_v12 = vmul.f32 %v2471_v31, %v6087_v58 }
 0xdb7   : > { %2485 = vrot.lane.b32.xlu2 %v2473_v4, %s4631_s8  ;;  %2489 = vrot.lane.b32.xlu1 %v2475_v51, %s4631_s8  ;;  %v6369_v4 = vpop.permute.xlu2 %2439 }
 0xdb8   : > { %2487 = vrot.lane.b32.xlu0 %v2474_v43, %s4631_s8 }
 0xdbf   : > { %2491 = vrot.lane.b32.xlu2 %v2476_v34, %s4631_s8  ;;  %2495 = vrot.lane.b32.xlu1 %v2478_v15, %s4631_s8  ;;  %v6371_v43 = vpop.permute.xlu2 %2445 }
 0xdc0   : > { %2493 = vrot.lane.b32.xlu0 %v2477_v12, %s4631_s8  ;;  %8301 = vst [vmem:[#allocation65_spill] sm:$0xff] %v6371_v43  ;;  %s8482_s8 = smov 48  }
 0xdc7   : > { %2519 = vperm.xlu2 %4493, %v4337_v44  }
 0xe11   : > { %v6373_v51 = vpop.permute.xlu2 %2485 }
 0xe19   : > { %v6375_v33 = vpop.permute.xlu2 %2491 }
 0xe1a   : > { %8302 = vst [vmem:[#allocation61_spill] sm:$0xff] %v6375_v33 }
 0xe21   : > { %v2520_v31 = vpop.permute.xlu2 %2519 }
 0xe22   : > { %v2524_v12 = vmul.f32 %v2520_v31, %v6029_v5  ;;  %v2523_v15 = vmul.f32 %v2520_v31, %v6008_v25  ;;  %v2522_v34 = vmul.f32 0.0, %v2520_v31  ;;  %v2527_v44 = vmul.f32 %v2520_v31, %v6188_v32 }
 0xe23   : > { %v2526_v43 = vmul.f32 %v2520_v31, %v6087_v58  ;;  %v2525_v36 = vmul.f32 %v2520_v31, %v6021_v56 }
 0xe24   : > { %2538 = vrot.lane.b32.xlu2 %v2524_v12, %s8303_s16  ;;  %2536 = vrot.lane.b32.xlu1 %v2523_v15, %s8303_s16  ;;  %v4338_v12 = vld [vmem:[%s7846_s3 + $0x170] sm:$0xff]  ;;  %v6391_v15 = vpop.permute.xlu0 %2441 }
 0xe25   : > { %2534 = vrot.lane.b32.xlu0 %v2522_v34, %s8303_s16  ;;  %8304 = vst [vmem:[#allocation70_spill] sm:$0xff] %v6391_v15  ;;  %v4339_v15 = vld [vmem:[%s7846_s3 + $0x178] sm:$0xff] }
 0xe2c   : > { %2544 = vrot.lane.b32.xlu2 %v2527_v44, %s8303_s16  ;;  %2542 = vrot.lane.b32.xlu1 %v2526_v43, %s8303_s16  ;;  %v6393_v34 = vpop.permute.xlu0 %2447 }
 0xe2d   : > { %2540 = vrot.lane.b32.xlu0 %v2525_v36, %s8303_s16  ;;  %8305 = vst [vmem:[#allocation66_spill] sm:$0xff] %v6393_v34  ;;  %s4641_s16 = smov 23  }
 0xe34   : > { %v6395_v33 = vpop.permute.xlu0 %2487 }
 0xe35   : > { %2567 = vperm.xlu0 %4491, %v4338_v12   ;;  %v6408_v12 = vsel %vm414_vm2, %v5992_v24, 0.0 }
 0xe3c   : > { %v6397_v13 = vpop.permute.xlu0 %2493 }
 0xe3d   : > { %8306 = vst [vmem:[#allocation67_spill] sm:$0xff] %v6397_v13 }
 0xe97   : > { %v6399_v31 = vpop.permute.xlu0 %2534 }
 0xe9f   : > { %v6401_v44 = vpop.permute.xlu0 %2540 }
 0xea0   : > { %8307 = vst [vmem:[#allocation74_spill] sm:$0xff] %v6401_v44 }
 0xea7   : > { %v2568_v43 = vpop.permute.xlu0 %2567 }
 0xea8   : > { %v2572_v36 = vmul.f32 %v2568_v43, %v6021_v56  ;;  %v2571_v30 = vmul.f32 %v2568_v43, %v6029_v5  ;;  %v2570_v19 = vmul.f32 %v2568_v43, %v6008_v25  ;;  %v2575_v13 = vmul.f32 %v2568_v43, %v6408_v12 }
 0xea9   : > { %v2574_v34 = vmul.f32 %v2568_v43, %v6188_v32  ;;  %v2573_v44 = vmul.f32 %v2568_v43, %v6087_v58 }
 0xeaa   : > { %2586 = vrot.lane.b32.xlu0 %v2572_v36, %s4632_s23  ;;  %2584 = vrot.lane.b32.xlu2 %v2571_v30, %s4632_s23  ;;  %v6416_v30 = vpop.permute.xlu1 %2489 }
 0xeab   : > { %2582 = vrot.lane.b32.xlu1 %v2570_v19, %s4632_s23  ;;  %8308 = vst [vmem:[#allocation80_spill] sm:$0xff] %v6416_v30  ;;  %v6437_v30 = vpop.permute.xlu2 %2538 }
 0xeb2   : > { %2592 = vrot.lane.b32.xlu0 %v2575_v13, %s4632_s23  ;;  %2590 = vrot.lane.b32.xlu2 %v2574_v34, %s4632_s23  ;;  %v6418_v19 = vpop.permute.xlu1 %2495 }
 0xeb3   : > { %2588 = vrot.lane.b32.xlu1 %v2573_v44, %s4632_s23  ;;  %8309 = vst [vmem:[#allocation76_spill] sm:$0xff] %v6418_v19  ;;  %v6439_v3 = vpop.permute.xlu2 %2544  ;;  %s4644_s23 = smov 14  }
 0xeb4   : > { %8312 = vst [vmem:[#allocation82_spill] sm:$0xff] %v6439_v3 }
 0xeba   : > { %v6420_v24 = vpop.permute.xlu1 %2536 }
 0xebb   : > { %2616 = vperm.xlu1 %4492, %v4339_v15  }
 0xec2   : > { %v6422_v36 = vpop.permute.xlu1 %2542 }
 0xec3   : > { %8310 = vst [vmem:[#allocation72_spill] sm:$0xff] %v6422_v36 }
 0xf1c   : > { %v6458_v45 = vpop.permute.xlu0 %2586 }
 0xf1d   : > { %v6424_v14 = vpop.permute.xlu1 %2582  ;;  %8315 = vst [vmem:[#allocation77_spill] sm:$0xff] %v6458_v45 }
 0xf24   : > { %v6460_v37 = vpop.permute.xlu0 %2592 }
 0xf25   : > { %v6426_v29 = vpop.permute.xlu1 %2588  ;;  %8316 = vst [vmem:[#allocation84_spill] sm:$0xff] %v6460_v37 }
 0xf26   : > { %8311 = vst [vmem:[#allocation71_spill] sm:$0xff] %v6426_v29  ;;  %v4340_v29 = vld [vmem:[%s7846_s3 + $0x180] sm:$0xff] }
 0xf2d   : > { %v2617_v13 = vpop.permute.xlu1 %2616 }
 0xf2e   : > { %v2621_v34 = vmul.f32 %v2617_v13, %v6021_v56  ;;  %v2620_v44 = vmul.f32 %v2617_v13, %v6029_v5  ;;  %v2619_v43 = vmul.f32 %v2617_v13, %v6008_v25  ;;  %v2624_v15 = vmul.f32 %v2617_v13, %v6408_v12 }
 0xf2f   : > { %v2623_v19 = vmul.f32 %v2617_v13, %v6188_v32  ;;  %v2622_v36 = vmul.f32 %v2617_v13, %v6087_v58 }
 0xf30   : > { %2635 = vrot.lane.b32.xlu1 %v2621_v34, %s4633_s10  ;;  %2633 = vrot.lane.b32.xlu0 %v2620_v44, %s4633_s10  ;;  %v6441_v34 = vpop.permute.xlu2 %2584 }
 0xf31   : > { %2631 = vrot.lane.b32.xlu2 %v2619_v43, %s4633_s10 }
 0xf38   : > { %2641 = vrot.lane.b32.xlu1 %v2624_v15, %s4633_s10  ;;  %2639 = vrot.lane.b32.xlu0 %v2623_v19, %s4633_s10  ;;  %v6443_v44 = vpop.permute.xlu2 %2590 }
 0xf39   : > { %2637 = vrot.lane.b32.xlu2 %v2622_v36, %s4633_s10  ;;  %8313 = vst [vmem:[#allocation78_spill] sm:$0xff] %v6443_v44  ;;  %s4648_s10 = smov 31  }
 0xf41   : > { %2665 = vperm.xlu2 %4493, %v4340_v29  }
 0xf8b   : > { %v6445_v43 = vpop.permute.xlu2 %2631 }
 0xf93   : > { %v6447_v10 = vpop.permute.xlu2 %2637 }
 0xf94   : > { %8314 = vst [vmem:[#allocation81_spill] sm:$0xff] %v6447_v10  ;;  %v4341_v10 = vld [vmem:[%s7846_s3 + $0x188] sm:$0xff] }
 0xf9b   : > { %v2666_v13 = vpop.permute.xlu2 %2665 }
 0xf9c   : > { %v2670_v19 = vmul.f32 %v2666_v13, %v6021_v56  ;;  %v2669_v36 = vmul.f32 %v2666_v13, %v6029_v5  ;;  %v2668_v15 = vmul.f32 %v2666_v13, %v6008_v25  ;;  %v2673_v29 = vmul.f32 %v2666_v13, %v6408_v12 }
 0xf9d   : > { %v2672_v3 = vmul.f32 %v2666_v13, %v6188_v32  ;;  %v2671_v44 = vmul.f32 %v2666_v13, %v6087_v58 }
 0xf9e   : > { %2684 = vrot.lane.b32.xlu2 %v2670_v19, %s4634_s25  ;;  %2682 = vrot.lane.b32.xlu1 %v2669_v36, %s4634_s25 }
 0xf9f   : > { %2680 = vrot.lane.b32.xlu0 %v2668_v15, %s4634_s25 }
 0xfa2   : > { %v6462_v19 = vpop.permute.xlu0 %2633  ;;  %v6479_v45 = vpop.permute.xlu1 %2635 }
 0xfa3   : > { %8319 = vst [vmem:[#allocation88_spill] sm:$0xff] %v6479_v45 }
 0xfa6   : > { %2690 = vrot.lane.b32.xlu2 %v2673_v29, %s4634_s25  ;;  %2688 = vrot.lane.b32.xlu1 %v2672_v3, %s4634_s25 }
 0xfa7   : > { %2686 = vrot.lane.b32.xlu0 %v2671_v44, %s4634_s25  ;;  %s4651_s25 = smov 22  }
 0xfaa   : > { %v6464_v36 = vpop.permute.xlu0 %2639  ;;  %v6481_v42 = vpop.permute.xlu1 %2641 }
 0xfab   : > { %8317 = vst [vmem:[#allocation75_spill] sm:$0xff] %v6464_v36 }
 0xfac   : > { %8320 = vst [vmem:[#allocation86_spill] sm:$0xff] %v6481_v42 }
 0xfaf   : > { %2714 = vperm.xlu0 %4491, %v4341_v10  }
 0xff8   : > { %v6500_v45 = vpop.permute.xlu2 %2684 }
 0xff9   : > { %8323 = vst [vmem:[#allocation87_spill] sm:$0xff] %v6500_v45 }
0x1000   : > { %v6502_v52 = vpop.permute.xlu2 %2690 }
0x1001   : > { %8324 = vst [vmem:[#allocation85_spill] sm:$0xff] %v6502_v52 }
0x1011   : > { %v6466_v15 = vpop.permute.xlu0 %2680 }
0x1019   : > { %v6468_v28 = vpop.permute.xlu0 %2686 }
0x101a   : > { %8318 = vst [vmem:[#allocation73_spill] sm:$0xff] %v6468_v28  ;;  %v4342_v28 = vld [vmem:[%s7846_s3 + $0x190] sm:$0xff] }
0x1021   : > { %v2715_v13 = vpop.permute.xlu0 %2714 }
0x1022   : > { %v2719_v3 = vmul.f32 %v2715_v13, %v6021_v56  ;;  %v2718_v44 = vmul.f32 %v2715_v13, %v6029_v5  ;;  %v2717_v29 = vmul.f32 %v2715_v13, %v6008_v25  ;;  %v2722_v10 = vmul.f32 %v2715_v13, %v6408_v12 }
0x1023   : > { %v2721_v37 = vmul.f32 %v2715_v13, %v6188_v32  ;;  %v2720_v36 = vmul.f32 %v2715_v13, %v6087_v58 }
0x1024   : > { %2733 = vrot.lane.b32.xlu0 %v2719_v3, %s4635_s15  ;;  %2731 = vrot.lane.b32.xlu2 %v2718_v44, %s4635_s15  ;;  %v6483_v3 = vpop.permute.xlu1 %2682 }
0x1025   : > { %2729 = vrot.lane.b32.xlu1 %v2717_v29, %s4635_s15 }
0x102c   : > { %2739 = vrot.lane.b32.xlu0 %v2722_v10, %s4635_s15  ;;  %2737 = vrot.lane.b32.xlu2 %v2721_v37, %s4635_s15  ;;  %v6485_v44 = vpop.permute.xlu1 %2688 }
0x102d   : > { %2735 = vrot.lane.b32.xlu1 %v2720_v36, %s4635_s15  ;;  %8321 = vst [vmem:[#allocation83_spill] sm:$0xff] %v6485_v44  ;;  %s4639_s15 = smov 29  }
0x1035   : > { %2763 = vperm.xlu1 %4492, %v4342_v28  }
0x1096   : > { %v6521_v45 = vpop.permute.xlu0 %2733 }
0x1097   : > { %v6487_v29 = vpop.permute.xlu1 %2729  ;;  %8328 = vst [vmem:[#allocation92_spill] sm:$0xff] %v6521_v45 }
0x109e   : > { %v6523_v49 = vpop.permute.xlu0 %2739 }
0x109f   : > { %v6489_v23 = vpop.permute.xlu1 %2735  ;;  %8329 = vst [vmem:[#allocation93_spill] sm:$0xff] %v6523_v49 }
0x10a0   : > { %8322 = vst [vmem:[#allocation79_spill] sm:$0xff] %v6489_v23  ;;  %v4343_v23 = vld [vmem:[%s7846_s3 + $0x198] sm:$0xff] }
0x10a7   : > { %v2764_v13 = vpop.permute.xlu1 %2763 }
0x10a8   : > { %v2768_v37 = vmul.f32 %v2764_v13, %v6021_v56  ;;  %v2767_v36 = vmul.f32 %v2764_v13, %v6029_v5  ;;  %v2766_v10 = vmul.f32 %v2764_v13, %v6008_v25  ;;  %v2771_v28 = vmul.f32 %v2764_v13, %v6408_v12 }
0x10a9   : > { %v2770_v42 = vmul.f32 %v2764_v13, %v6188_v32  ;;  %v2769_v44 = vmul.f32 %v2764_v13, %v6087_v58 }
0x10aa   : > { %2782 = vrot.lane.b32.xlu1 %v2768_v37, %s4636_s7  ;;  %2780 = vrot.lane.b32.xlu0 %v2767_v36, %s4636_s7  ;;  %v6504_v37 = vpop.permute.xlu2 %2731 }
0x10ab   : > { %2778 = vrot.lane.b32.xlu2 %v2766_v10, %s4636_s7 }
0x10b2   : > { %2788 = vrot.lane.b32.xlu1 %v2771_v28, %s4636_s7  ;;  %2786 = vrot.lane.b32.xlu0 %v2770_v42, %s4636_s7  ;;  %v6506_v36 = vpop.permute.xlu2 %2737 }
0x10b3   : > { %2784 = vrot.lane.b32.xlu2 %v2769_v44, %s4636_s7  ;;  %8325 = vst [vmem:[#allocation89_spill] sm:$0xff] %v6506_v36  ;;  %s4642_s7 = smov 20  }
0x10bb   : > { %2812 = vperm.xlu2 %4493, %v4343_v23  }
0x1105   : > { %v6508_v10 = vpop.permute.xlu2 %2778 }
0x1106   : > { %8326 = vst [vmem:[#allocation90_spill] sm:$0xff] %v6508_v10 }
0x110d   : > { %v6510_v27 = vpop.permute.xlu2 %2784 }
0x110e   : > { %8327 = vst [vmem:[#allocation91_spill] sm:$0xff] %v6510_v27  ;;  %v4344_v27 = vld [vmem:[%s7846_s3 + $0x1a0] sm:$0xff] }
0x1115   : > { %v2813_v13 = vpop.permute.xlu2 %2812 }
0x1116   : > { %v2817_v42 = vmul.f32 %v2813_v13, %v6021_v56  ;;  %v2816_v44 = vmul.f32 %v2813_v13, %v6029_v5  ;;  %v2815_v28 = vmul.f32 %v2813_v13, %v6008_v25  ;;  %v2820_v23 = vmul.f32 %v2813_v13, %v6408_v12 }
0x1117   : > { %v2819_v52 = vmul.f32 %v2813_v13, %v6188_v32  ;;  %v2818_v36 = vmul.f32 %v2813_v13, %v6087_v58 }
0x1118   : > { %2831 = vrot.lane.b32.xlu2 %v2817_v42, %s4637_s30  ;;  %2829 = vrot.lane.b32.xlu1 %v2816_v44, %s4637_s30 }
0x1119   : > { %2827 = vrot.lane.b32.xlu0 %v2815_v28, %s4637_s30 }
0x111c   : > { %v6525_v42 = vpop.permute.xlu0 %2780 }
0x111d   : > { %8330 = vst [vmem:[#allocation94_spill] sm:$0xff] %v6525_v42 }
0x1120   : > { %2837 = vrot.lane.b32.xlu2 %v2820_v23, %s4637_s30  ;;  %2835 = vrot.lane.b32.xlu1 %v2819_v52, %s4637_s30 }
0x1121   : > { %2833 = vrot.lane.b32.xlu0 %v2818_v36, %s4637_s30  ;;  %s4645_s30 = smov 40  }
0x1124   : > { %v6527_v44 = vpop.permute.xlu0 %2786 }
0x1125   : > { %8331 = vst [vmem:[#allocation95_spill] sm:$0xff] %v6527_v44 }
0x1129   : > { %2861 = vperm.xlu0 %4491, %v4344_v27  }
0x118b   : > { %v6529_v28 = vpop.permute.xlu0 %2827 }
0x118c   : > { %8332 = vst [vmem:[#allocation96_spill] sm:$0xff] %v6529_v28 }
0x1193   : > { %v6531_v16 = vpop.permute.xlu0 %2833 }
0x1194   : > { %8333 = vst [vmem:[#allocation97_spill] sm:$0xff] %v6531_v16 }
0x119b   : > { %v2862_v13 = vpop.permute.xlu0 %2861 }
0x119c   : > { %v2866_v52 = vmul.f32 %v2862_v13, %v6021_v56  ;;  %v2865_v36 = vmul.f32 %v2862_v13, %v6029_v5  ;;  %v2864_v23 = vmul.f32 %v2862_v13, %v6008_v25  ;;  %v2869_v27 = vmul.f32 %v2862_v13, %v6408_v12 }
0x119d   : > { %v2868_v49 = vmul.f32 %v2862_v13, %v6188_v32  ;;  %v2867_v44 = vmul.f32 %v2862_v13, %v6087_v58 }
0x119e   : > { %2880 = vrot.lane.b32.xlu0 %v2866_v52, %s8334_s6  ;;  %2878 = vrot.lane.b32.xlu2 %v2865_v36, %s8334_s6  ;;  %v4345_v52 = vld [vmem:[%s7846_s3 + $0x1a8] sm:$0xff]  ;;  %v6548_v36 = vpop.permute.xlu1 %2782 }
0x119f   : > { %2876 = vrot.lane.b32.xlu1 %v2864_v23, %s8334_s6  ;;  %8335 = vst [vmem:[#allocation98_spill] sm:$0xff] %v6548_v36 }
0x11a6   : > { %2886 = vrot.lane.b32.xlu0 %v2869_v27, %s8334_s6  ;;  %2884 = vrot.lane.b32.xlu2 %v2868_v49, %s8334_s6  ;;  %v6550_v23 = vpop.permute.xlu1 %2788 }
0x11a7   : > { %2882 = vrot.lane.b32.xlu1 %v2867_v44, %s8334_s6  ;;  %8336 = vst [vmem:[#allocation99_spill] sm:$0xff] %v6550_v23  ;;  %v4348_v23 = vld [vmem:[%s7846_s3 + $0x1c0] sm:$0xff]  ;;  %s4649_s6 = smov 28  }
0x11ae   : > { %v6552_v16 = vpop.permute.xlu1 %2829 }
0x11af   : > { %2909 = vperm.xlu1 %4492, %v4345_v52   ;;  %8337 = vst [vmem:[#allocation100_spill] sm:$0xff] %v6552_v16 }
0x11b6   : > { %v6554_v45 = vpop.permute.xlu1 %2835 }
0x11b7   : > { %8338 = vst [vmem:[#allocation101_spill] sm:$0xff] %v6554_v45  ;;  %v4346_v45 = vld [vmem:[%s7846_s3 + $0x1b0] sm:$0xff] }
0x1211   : > { %v6556_v13 = vpop.permute.xlu1 %2876 }
0x1212   : > { %8339 = vst [vmem:[#allocation102_spill] sm:$0xff] %v6556_v13 }
0x1219   : > { %v6558_v27 = vpop.permute.xlu1 %2882 }
0x121a   : > { %8340 = vst [vmem:[#allocation103_spill] sm:$0xff] %v6558_v27  ;;  %v4347_v27 = vld [vmem:[%s7846_s3 + $0x1b8] sm:$0xff] }
0x1221   : > { %v6560_v49 = vpop.permute.xlu1 %2909 }
0x1222   : > { %v2914_v44 = vmul.f32 %v6560_v49, %v6021_v56  ;;  %v2913_v52 = vmul.f32 %v6560_v49, %v6029_v5  ;;  %v2912_v36 = vmul.f32 %v6560_v49, %v6008_v25  ;;  %v2917_v0 = vmul.f32 %v6560_v49, %v6408_v12 }
0x1224   : > { %2928 = vrot.lane.b32.xlu1 %v2914_v44, %s4638_s13  ;;  %2926 = vrot.lane.b32.xlu0 %v2913_v52, %s4638_s13  ;;  %v4351_v44 = vld [vmem:[%s7846_s3 + $0x1d8] sm:$0xff]  ;;  %v4349_v52 = vld [vmem:[%s7846_s3 + $0x1c8] sm:$0xff] }
0x1225   : > { %2924 = vrot.lane.b32.xlu2 %v2912_v36, %s4638_s13  ;;  %v4350_v36 = vld [vmem:[%s7846_s3 + $0x1d0] sm:$0xff] }
0x122c   : > { %3056 = vperm.xlu1 %4492, %v4348_v23   ;;  %3007 = vperm.xlu0 %4491, %v4347_v27   ;;  %v4354_v23 = vld [vmem:[%s7846_s3 + $0x1f0] sm:$0xff]  ;;  %v4352_v27 = vld [vmem:[%s7846_s3 + $0x1e0] sm:$0xff] }
0x122d   : > { %2958 = vperm.xlu2 %4493, %v4346_v45   ;;  %v4353_v45 = vld [vmem:[%s7846_s3 + $0x1e8] sm:$0xff] }
0x1234   : > { %3203 = vperm.xlu1 %4492, %v4351_v44   ;;  %3154 = vperm.xlu0 %4491, %v4350_v36   ;;  %v4357_v44 = vld [vmem:[%s7846_s3 + $0x208] sm:$0xff]  ;;  %v4356_v36 = vld [vmem:[%s7846_s3 + $0x200] sm:$0xff] }
0x1235   : > { %3105 = vperm.xlu2 %4493, %v4349_v52   ;;  %v4355_v52 = vld [vmem:[%s7846_s3 + $0x1f8] sm:$0xff] }
0x123c   : > { %3350 = vperm.xlu1 %4492, %v4354_v23   ;;  %3301 = vperm.xlu0 %4491, %v4353_v45   ;;  %v4360_v23 = vld [vmem:[%s7846_s3 + $0x220] sm:$0xff]  ;;  %v4359_v45 = vld [vmem:[%s7846_s3 + $0x218] sm:$0xff] }
0x123d   : > { %3252 = vperm.xlu2 %4493, %v4352_v27   ;;  %v4358_v27 = vld [vmem:[%s7846_s3 + $0x210] sm:$0xff] }
0x1244   : > { %3487 = vperm.xlu1 %4492, %v4357_v44   ;;  %3443 = vperm.xlu0 %4491, %v4356_v36   ;;  %v4363_v44 = vld [vmem:[%s7846_s3 + $0x238] sm:$0xff]  ;;  %v4362_v36 = vld [vmem:[%s7846_s3 + $0x230] sm:$0xff] }
0x1245   : > { %3399 = vperm.xlu2 %4493, %v4355_v52   ;;  %v4361_v52 = vld [vmem:[%s7846_s3 + $0x228] sm:$0xff] }
0x124c   : > { %3617 = vperm.xlu1 %4492, %v4360_v23   ;;  %3575 = vperm.xlu0 %4491, %v4359_v45   ;;  %v4365_v23 = vld [vmem:[%s7846_s3 + $0x248] sm:$0xff]  ;;  %v4364_v45 = vld [vmem:[%s7846_s3 + $0x240] sm:$0xff] }
0x124d   : > { %3531 = vperm.xlu2 %4493, %v4358_v27   ;;  %v6631_v27 = vpop.permute.xlu2 %2831 }
0x124e   : > { %8341 = vst [vmem:[#allocation104_spill] sm:$0xff] %v6631_v27 }
0x1254   : > { %3745 = vperm.xlu1 %4492, %v4363_v44   ;;  %3702 = vperm.xlu0 %4491, %v4362_v36   ;;  %v6639_v36 = vpop.permute.xlu0 %2880 }
0x1255   : > { %3659 = vperm.xlu2 %4493, %v4361_v52   ;;  %v6633_v25 = vpop.permute.xlu2 %2837  ;;  %8345 = vst [vmem:[#allocation108_spill] sm:$0xff] %v6639_v36 }
0x1256   : > { %8342 = vst [vmem:[#allocation105_spill] sm:$0xff] %v6633_v25 }
0x125c   : > { %3831 = vperm.xlu0 %4491, %v4365_v23   ;;  %v6649_v23 = vpop.permute.xlu0 %2886 }
0x125d   : > { %3788 = vperm.xlu2 %4493, %v4364_v45   ;;  %v6635_v22 = vpop.permute.xlu2 %2878  ;;  %8346 = vst [vmem:[#allocation109_spill] sm:$0xff] %v6649_v23 }
0x125e   : > { %8343 = vst [vmem:[#allocation106_spill] sm:$0xff] %v6635_v22 }
0x1265   : > { %v6637_v13 = vpop.permute.xlu2 %2884 }
0x1266   : > { %8344 = vst [vmem:[#allocation107_spill] sm:$0xff] %v6637_v13 }
0x127f   : > { %v2925_v44 = vpop.permute.xlu2 %2924 }
0x1287   : > { %v6641_v52 = vpop.permute.xlu2 %2958 }
0x1288   : > { %v2962_v28 = vmul.f32 %v6641_v52, %v6021_v56  ;;  %v2961_v16 = vmul.f32 %v6641_v52, %v6029_v5 }
0x128a   : > { %2975 = vrot.lane.b32.xlu2 %v2962_v28, %s4639_s15  ;;  %2973 = vrot.lane.b32.xlu1 %v2961_v16, %s4639_s15 }
0x1296   : > { %v6651_v45 = vpop.permute.xlu1 %2928  ;;  %v6653_v25 = vpop.permute.xlu0 %2926 }
0x1297   : > { %8347 = vst [vmem:[#allocation110_spill] sm:$0xff] %v6651_v45  ;;  %v6657_v13 = vsel %vm8051_vm15, %v2925_v44, %v6653_v25  ;;  %v6672_v44 = vpop.permute.xlu2 %3105 }
0x1298   : > { %8348 = vst [vmem:[#allocation111_spill] sm:$0xff] %v6653_v25  ;;  %v3109_v25 = vmul.f32 %v6672_v44, %v6021_v56  ;;  %v3108_v45 = vmul.f32 %v6672_v44, %v6029_v5 }
0x1299   : > { %8349 = vst [vmem:[#allocation112_spill] sm:$0xff] %v6657_v13 }
0x129e   : > { %v6659_v36 = vpop.permute.xlu1 %3056  ;;  %v6661_v27 = vpop.permute.xlu0 %3007 }
0x129f   : > { %v3010_v28 = vmul.f32 %v6661_v27, %v6029_v5  ;;  %v3059_v16 = vmul.f32 %v6659_v36, %v6029_v5  ;;  %v3011_v23 = vmul.f32 %v6661_v27, %v6021_v56  ;;  %v3060_v13 = vmul.f32 %v6659_v36, %v6021_v56 }
0x12a1   : > { %3022 = vrot.lane.b32.xlu0 %v3010_v28, %s4640_s26  ;;  %3071 = vrot.lane.b32.xlu2 %v3059_v16, %s4641_s16 }
0x12a2   : > { %3024 = vrot.lane.b32.xlu1 %v3011_v23, %s4640_s26  ;;  %v2915_v23 = vmul.f32 %v6560_v49, %v6087_v58 }
0x12a6   : > { %v6683_v28 = vpop.permute.xlu0 %3154 }
0x12a7   : > { %v3158_v16 = vmul.f32 %v6683_v28, %v6021_v56  ;;  %v3157_v22 = vmul.f32 %v6683_v28, %v6029_v5 }
0x12a9   : > { %3073 = vrot.lane.b32.xlu0 %v3060_v13, %s4641_s16  ;;  %3122 = vrot.lane.b32.xlu2 %v3109_v25, %s4642_s7  ;;  %v6694_v25 = vpop.permute.xlu1 %3203  ;;  %v2963_v13 = vmul.f32 %v6641_v52, %v6087_v58 }
0x12aa   : > { %3120 = vrot.lane.b32.xlu1 %v3108_v45, %s4642_s7  ;;  %8350 = vst [vmem:[#allocation113_spill] sm:$0xff] %v6694_v25  ;;  %v3207_v45 = vmul.f32 %v6694_v25, %v6021_v56  ;;  %v3206_v10 = vmul.f32 %v6694_v25, %v6029_v5 }
0x12b1   : > { %2930 = vrot.lane.b32.xlu0 %v2915_v23, %s4638_s13  ;;  %3171 = vrot.lane.b32.xlu2 %v3158_v16, %s4643_s14  ;;  %v6705_v23 = vpop.permute.xlu2 %3252 }
0x12b2   : > { %3169 = vrot.lane.b32.xlu1 %v3157_v22, %s4643_s14  ;;  %8351 = vst [vmem:[#allocation114_spill] sm:$0xff] %v6705_v23  ;;  %v3012_v22 = vmul.f32 %v6661_v27, %v6087_v58  ;;  %v3256_v16 = vmul.f32 %v6705_v23, %v6021_v56  ;;  %v3255_v42 = vmul.f32 %v6705_v23, %v6029_v5 }
0x12b3   : > { %v3257_v25 = vmul.f32 %v6705_v23, %v6087_v58 }
0x12b9   : > { %2977 = vrot.lane.b32.xlu0 %v2963_v13, %s4639_s15  ;;  %3220 = vrot.lane.b32.xlu2 %v3207_v45, %s4644_s23 }
0x12ba   : > { %3218 = vrot.lane.b32.xlu1 %v3206_v10, %s4644_s23  ;;  %v6717_v10 = vmul.f32 0.0, %v5986_v61  ;;  %v6736_v61 = vpop.permute.xlu2 %3399 }
0x12bb   : > { %8353 = vst [vmem:[#allocation116_spill] sm:$0xff] %v6736_v61 }
0x12bc   : > { %v1736_v13 = vadd.f32 %v5994_v62, %v6717_v10 }
0x12be   : > { %v1773_v45 = vadd.f32 %v5996_v8, %v1736_v13  ;;  %v6733_v13 = vpop.permute.xlu0 %3301 }
0x12bf   : > { %8352 = vst [vmem:[#allocation115_spill] sm:$0xff] %v6733_v13 }
0x12c1   : > { %3026 = vrot.lane.b32.xlu0 %v3012_v22, %s4640_s26  ;;  %3269 = vrot.lane.b32.xlu2 %v3256_v16, %s4645_s30  ;;  %v2916_v22 = vmul.f32 %v6560_v49, %v6188_v32  ;;  %v1810_v16 = vadd.f32 %v6012_v48, %v1773_v45  ;;  %v3061_v49 = vmul.f32 %v6659_v36, %v6087_v58 }
0x12c2   : > { %3267 = vrot.lane.b32.xlu1 %v3255_v42, %s4645_s30 }
0x12c3   : > { %v1847_v42 = vadd.f32 %v6014_v6, %v1810_v16  ;;  %v2077_v16 = vsel %vm476_vm3, %v6209_v54, %v6261_v9  ;;  %v2964_v9 = vmul.f32 %v6641_v52, %v6188_v32 }
0x12c5   : > { %v1884_v23 = vadd.f32 %v6062_v2, %v1847_v42  ;;  %v6754_v42 = vpop.permute.xlu1 %3350 }
0x12c7   : > { %v1921_v21 = vadd.f32 %v6207_v17, %v1884_v23 }
0x12c9   : > { %3271 = vrot.lane.b32.xlu0 %v3257_v25, %s4645_s30  ;;  %2934 = vrot.lane.b32.xlu2 %v2917_v0, %s4638_s13  ;;  %v3305_v25 = vmul.f32 %v6733_v13, %v6021_v56  ;;  %v3304_v0 = vmul.f32 %v6733_v13, %v6029_v5  ;;  %v1962_v45 = vadd.f32 %v6174_v26, %v1921_v21 }
0x12ca   : > { %2932 = vrot.lane.b32.xlu1 %v2916_v22, %s4638_s13  ;;  %s4646_s13 = smov 37  }
0x12cb   : > { %v2003_v23 = vadd.f32 %v6190_v50, %v1962_v45  ;;  %v2965_v45 = vmul.f32 %v6641_v52, %v6408_v12 }
0x12cd   : > { %v2045_v22 = vadd.f32 %v6203_v57, %v2003_v23 }
0x12cf   : > { %v2087_v21 = vadd.f32 %v6209_v54, %v2045_v22  ;;  %v2088_v23 = vadd.f32 %v2077_v16, %v2045_v22  ;;  %v2164_v54 = vsel %vm2163_vm14, %v6225_v18, %v6269_v20  ;;  %v2208_v22 = vsel %vm2207_vm7, %v6233_v60, %v6273_v63 }
0x12d1   : > { %3075 = vrot.lane.b32.xlu0 %v3061_v49, %s4641_s16  ;;  %3318 = vrot.lane.b32.xlu2 %v3305_v25, %s4646_s13  ;;  %v2120_v49 = vsel %vm623_vm6, %v6217_v35, %v6265_v53  ;;  %v6760_v25 = vpop.permute.xlu2 %3531  ;;  %v2130_v57 = vadd.f32 %v6217_v35, %v2087_v21  ;;  %v2255_v21 = vsel %vm414_vm2, %v6241_v40, %v6277_v47 }
0x12d2   : > { %3316 = vrot.lane.b32.xlu1 %v3304_v0, %s4646_s13  ;;  %8354 = vst [vmem:[#allocation117_spill] sm:$0xff] %v6760_v25  ;;  %v3306_v0 = vmul.f32 %v6733_v13, %v6087_v58  ;;  %v2131_v25 = vadd.f32 %v2120_v49, %v2088_v23 }
0x12d3   : > { %v2174_v13 = vadd.f32 %v6225_v18, %v2130_v57  ;;  %v2304_v57 = vsel %vm8045_vm13, %v6281_v55, %v6297_v39  ;;  %v2966_v18 = vmul.f32 0.0, %v6641_v52  ;;  %vm8048_vm13 = vcmask 121856  }
0x12d4   : > { %v2175_v16 = vadd.f32 %v2164_v54, %v2131_v25 }
0x12d5   : > { %v2218_v35 = vadd.f32 %v6233_v60, %v2174_v13  ;;  %v3110_v60 = vmul.f32 %v6672_v44, %v6087_v58 }
0x12d7   : > { %v2266_v49 = vadd.f32 %v6241_v40, %v2218_v35  ;;  %v2353_v40 = vsel %vm8043_vm0, %v6301_v59, %v6323_v38  ;;  %v2449_v35 = vsel %vm8041_vm11, %v6353_v11, %v6369_v4  ;;  %vm8046_vm11 = vcmask 171008  }
0x12d8   : > { %vm1801_vm0 = vcmask 973824  }
0x12d9   : > { %3320 = vrot.lane.b32.xlu0 %v3306_v0, %s4646_s13  ;;  %2981 = vrot.lane.b32.xlu2 %v2965_v45, %s4639_s15  ;;  %v2219_v0 = vadd.f32 %v2208_v22, %v2175_v16  ;;  %v6790_v45 = vpop.permute.xlu1 %3487  ;;  %v2315_v13 = vadd.f32 %v6281_v55, %v2266_v49  ;;  %v6798_v23 = vpop.permute.xlu2 %3659  ;;  %v2401_v55 = vsel %vm8039_vm8, %v6327_v1, %v6349_v46  ;;  %vm8044_vm8 = vcmask 195584  }
0x12da   : > { %2979 = vrot.lane.b32.xlu1 %v2964_v9, %s4639_s15  ;;  %v3353_v9 = vmul.f32 %v6754_v42, %v6029_v5  ;;  %8355 = vst [vmem:[#allocation118_spill] sm:$0xff] %v6798_v23  ;;  %v2498_v49 = vsel %vm8040_vm12, %v6373_v51, %v6395_v33  ;;  %vm1764_vm12 = vcmask 998400  }
0x12db   : > { %v2267_v25 = vadd.f32 %v2255_v21, %v2219_v0  ;;  %v2364_v54 = vadd.f32 %v6301_v59, %v2315_v13  ;;  %v3354_v59 = vmul.f32 %v6754_v42, %v6021_v56 }
0x12dd   : > { %v2316_v52 = vadd.f32 %v2304_v57, %v2267_v25  ;;  %v2412_v16 = vadd.f32 %v6327_v1, %v2364_v54  ;;  %v3013_v57 = vmul.f32 %v6661_v27, %v6188_v32  ;;  %v2546_v1 = vsel %vm8042_vm4, %v6399_v31, %v6420_v24 }
0x12de   : > { %v1765_v54 = vsel %vm1764_vm12, %v5996_v8, %v6162_v7  ;;  %v3014_v8 = vmul.f32 %v6661_v27, %v6408_v12 }
0x12df   : > { %v2365_v22 = vadd.f32 %v2353_v40, %v2316_v52  ;;  %v2460_v0 = vadd.f32 %v6353_v11, %v2412_v16  ;;  %v1728_v11 = vsel %vm574_vm5, %v5994_v62, %v6211_v41  ;;  %v2595_v62 = vsel %vm8044_vm8, %v6424_v14, %v6441_v34  ;;  %v6849_v16 = vpop.permute.xlu0 %3443 }
0x12e0   : > { %vm1838_vm8 = vcmask 949248  }
0x12e1   : > { %2983 = vrot.lane.b32.xlu0 %v2966_v18, %s4639_s15  ;;  %3365 = vrot.lane.b32.xlu2 %v3353_v9, %s4647_s12  ;;  %v2413_v21 = vadd.f32 %v2401_v55, %v2365_v22  ;;  %v3355_v9 = vmul.f32 %v6754_v42, %v6087_v58  ;;  %v2509_v25 = vadd.f32 %v6373_v51, %v2460_v0  ;;  %v6833_v13 = vpop.permute.xlu1 %3617  ;;  %v6839_v51 = vpop.permute.xlu2 %3788  ;;  %s4652_s15 = smov 42  }
0x12e2   : > { %3124 = vrot.lane.b32.xlu1 %v3110_v60, %s4642_s7  ;;  %v2547_v60 = vsel %vm8042_vm4, %v6420_v24, %v6437_v30  ;;  %8356 = vst [vmem:[#allocation119_spill] sm:$0xff] %v6833_v13  ;;  %v1737_v24 = vadd.f32 %v1728_v11, %v6717_v10  ;;  %vm8047_vm4 = vcmask 146432   ;;  %v2644_v22 = vsel %vm8046_vm11, %v6445_v43, %v6462_v19  ;;  %v8359_v11 = vld [vmem:[#allocation30_spill] sm:$0xff] }
0x12e3   : > { %v2461_v18 = vadd.f32 %v2449_v35, %v2413_v21  ;;  %v2557_v40 = vadd.f32 %v2546_v1, %v2509_v25  ;;  %8357 = vst [vmem:[#allocation120_spill] sm:$0xff] %v6839_v51  ;;  %v2693_v21 = vsel %vm8047_vm4, %v6466_v15, %v6483_v3  ;;  %vm2790_vm11 = vcmask 97280   ;;  %v8358_v1 = vld [vmem:[#allocation26_spill] sm:$0xff]  ;;  %v8382_v51 = vld [vmem:[#allocation45_spill] sm:$0xff] }
0x12e4   : > { %v1774_v0 = vadd.f32 %v1765_v54, %v1737_v24  ;;  %vm8050_vm4 = vcmask 72704   ;;  %v8360_v25 = vld [vmem:[#allocation94_spill] sm:$0xff] }
0x12e5   : > { %v2510_v31 = vadd.f32 %v2498_v49, %v2461_v18  ;;  %v2606_v55 = vadd.f32 %v6424_v14, %v2557_v40  ;;  %v3159_v14 = vmul.f32 %v6683_v28, %v6087_v58 }
0x12e7   : > { %v2558_v52 = vadd.f32 %v2547_v60, %v2510_v31  ;;  %v2655_v10 = vadd.f32 %v6445_v43, %v2606_v55  ;;  %v2742_v43 = vsel %vm8048_vm13, %v6487_v29, %v6504_v37  ;;  %v8361_v60 = vld [vmem:[#allocation90_spill] sm:$0xff]  ;;  %v8363_v55 = vld [vmem:[#allocation100_spill] sm:$0xff]  ;;  %vm1875_vm13 = vcmask 924672  }
0x12e8   : > { %v2791_v31 = vsel %vm2790_vm11, %v8361_v60, %v8360_v25 }
0x12e9   : > { %3367 = vrot.lane.b32.xlu0 %v3354_v59, %s4647_s12  ;;  %3028 = vrot.lane.b32.xlu2 %v3013_v57, %s4640_s26  ;;  %v2607_v35 = vadd.f32 %v2595_v62, %v2558_v52  ;;  %v3015_v59 = vmul.f32 0.0, %v6661_v27  ;;  %v2704_v57 = vadd.f32 %v6466_v15, %v2655_v10  ;;  %v1839_v15 = vsel %vm1838_vm8, %v6014_v6, %v8359_v11  ;;  %v6877_v40 = vpop.permute.xlu2 %2975  ;;  %v6879_v52 = vpop.permute.xlu1 %3745  ;;  %v8365_v10 = vld [vmem:[#allocation106_spill] sm:$0xff] }
0x12ea   : > { %3369 = vrot.lane.b32.xlu1 %v3355_v9, %s4647_s12  ;;  %v1802_v9 = vsel %vm1801_vm0, %v6012_v48, %v8358_v1  ;;  %8362 = vst [vmem:[#allocation26_spill] sm:$0xff] %v6879_v52  ;;  %v8364_v48 = vld [vmem:[#allocation96_spill] sm:$0xff] }
0x12eb   : > { %v2656_v49 = vadd.f32 %v2644_v22, %v2607_v35  ;;  %v2753_v27 = vadd.f32 %v6487_v29, %v2704_v57  ;;  %v1811_v62 = vadd.f32 %v1802_v9, %v1774_v0  ;;  %v2840_v22 = vsel %vm8050_vm4, %v8364_v48, %v8363_v55  ;;  %v8368_v9 = vld [vmem:[#allocation111_spill] sm:$0xff]  ;;  %v8383_v52 = vld [vmem:[#allocation20_spill] sm:$0xff] }
0x12ec   : > { %v3062_v0 = vmul.f32 %v6659_v36, %v6188_v32  ;;  %v3403_v57 = vmul.f32 %v6736_v61, %v6087_v58  ;;  %vm1912_vm4 = vcmask 900096  }
0x12ed   : > { %v2705_v18 = vadd.f32 %v2693_v21, %v2656_v49  ;;  %v2802_v54 = vadd.f32 %v8361_v60, %v2753_v27  ;;  %v1848_v6 = vadd.f32 %v1839_v15, %v1811_v62  ;;  %v8366_v21 = vld [vmem:[#allocation102_spill] sm:$0xff]  ;;  %v3402_v49 = vmul.f32 %v6736_v61, %v6021_v56  ;;  %v8369_v27 = vld [vmem:[#allocation15_spill] sm:$0xff] }
0x12ee   : > { %v1876_v60 = vsel %vm1875_vm13, %v6062_v2, %v8369_v27 }
0x12ef   : > { %v2754_v24 = vadd.f32 %v2742_v43, %v2705_v18  ;;  %v2851_v29 = vadd.f32 %v8364_v48, %v2802_v54  ;;  %v8367_v18 = vld [vmem:[#allocation110_spill] sm:$0xff]  ;;  %v1885_v62 = vadd.f32 %v1876_v60, %v1848_v6 }
0x12f0   : > { %v2938_v15 = vsel %vm8051_vm15, %v8368_v9, %v8367_v18  ;;  %vm2035_vm15 = vcmask 15360   ;;  %v3063_v9 = vmul.f32 %v6659_v36, %v6408_v12 }
0x12f1   : > { %3030 = vrot.lane.b32.xlu0 %v3014_v8, %s4640_s26  ;;  %3173 = vrot.lane.b32.xlu2 %v3159_v14, %s4643_s14  ;;  %v2803_v35 = vadd.f32 %v2791_v31, %v2754_v24  ;;  %v2888_v8 = vsel %vm8049_vm9, %v8366_v21, %v8365_v10  ;;  %v6889_v14 = vpop.permute.xlu0 %3575  ;;  %v2899_v43 = vadd.f32 %v8366_v21, %v2851_v29  ;;  %vm2985_vm9 = vcmask 236544   ;;  %v8370_v24 = vld [vmem:[#allocation112_spill] sm:$0xff] }
0x12f2   : > { %3032 = vrot.lane.b32.xlu1 %v3015_v59, %s4640_s26  ;;  %s4653_s26 = smov 39  }
0x12f3   : > { %v2852_v59 = vadd.f32 %v2840_v22, %v2803_v35  ;;  %v2948_v54 = vadd.f32 %v8370_v24, %v2899_v43 }
0x12f5   : > { %v2900_v31 = vadd.f32 %v2888_v8, %v2852_v59  ;;  %v8372_v8 = vld [vmem:[#allocation40_spill] sm:$0xff] }
0x12f7   : > { %v2949_v22 = vadd.f32 %v2938_v15, %v2900_v31  ;;  %v8374_v15 = vld [vmem:[#allocation55_spill] sm:$0xff]  ;;  %v8375_v31 = vld [vmem:[#allocation41_spill] sm:$0xff] }
0x12f8   : > { %v1994_v60 = vsel %vm1308_vm10, %v6190_v50, %v8374_v15 }
0x12f9   : > { %3077 = vrot.lane.b32.xlu2 %v3062_v0, %s4641_s16  ;;  %3412 = vrot.lane.b32.xlu0 %v3402_v49, %s4648_s10  ;;  %v8371_v0 = vld [vmem:[#allocation5_spill] sm:$0xff]  ;;  %v1953_v49 = vsel %vm253_vm1, %v6174_v26, %v8372_v8  ;;  %v1729_v26 = vsel %vm574_vm5, %v6211_v41, %v8375_v31  ;;  %v8381_v41 = vld [vmem:[#allocation47_spill] sm:$0xff] }
0x12fa   : > { %3414 = vrot.lane.b32.xlu1 %v3403_v57, %s4648_s10  ;;  %v1913_v2 = vsel %vm1912_vm4, %v6207_v17, %v8371_v0  ;;  %v8373_v57 = vld [vmem:[#allocation113_spill] sm:$0xff]  ;;  %v3064_v17 = vmul.f32 0.0, %v6659_v36 }
0x12fb   : > { %v6908_v48 = vpop.permute.xlu2 %3071  ;;  %v1922_v59 = vadd.f32 %v1913_v2, %v1885_v62  ;;  %v3208_v43 = vmul.f32 %v8373_v57, %v6087_v58  ;;  %v8377_v62 = vld [vmem:[#allocation11_spill] sm:$0xff]  ;;  %v8380_v2 = vld [vmem:[#allocation22_spill] sm:$0xff] }
0x12fc   : > { %v2974_v35 = vpop.permute.xlu1 %2973 }
0x12fd   : > { %v2986_v29 = vsel %vm2985_vm9, %v2974_v35, %v6877_v40  ;;  %v6912_v21 = vadd.f32 %v2974_v35, %v2948_v54  ;;  %v1963_v24 = vadd.f32 %v1953_v49, %v1922_v59  ;;  %v6933_v54 = vpop.permute.xlu0 %3702  ;;  %v1766_v49 = vsel %vm1764_vm12, %v6162_v7, %v8381_v41  ;;  %v8385_v7 = vld [vmem:[#allocation33_spill] sm:$0xff] }
0x12fe   : > { %v6920_v6 = vadd.f32 %v2986_v29, %v2949_v22  ;;  %8376 = vst [vmem:[#allocation30_spill] sm:$0xff] %v6933_v54  ;;  %v8378_v22 = vld [vmem:[#allocation24_spill] sm:$0xff]  ;;  %v8384_v54 = vld [vmem:[#allocation37_spill] sm:$0xff] }
0x12ff   : > { %v1698_v35 = vmul.f32 %v8378_v22, %v8377_v62  ;;  %v8379_v29 = vld [vmem:[#allocation36_spill] sm:$0xff]  ;;  %v1700_v36 = vmul.f32 %v8378_v22, %v6021_v56  ;;  %v2004_v59 = vadd.f32 %v1994_v60, %v1963_v24  ;;  %v2078_v62 = vsel %vm476_vm3, %v8383_v52, %v8382_v51 }
0x1300   : > { %v2036_v50 = vsel %vm2035_vm15, %v8380_v2, %v8379_v29  ;;  %v1730_v2 = vsel %vm574_vm5, %v8375_v31, %v8384_v54  ;;  %v1699_v13 = vmul.f32 %v8378_v22, %v6029_v5  ;;  %v2121_v60 = vsel %vm623_vm6, %v6265_v53, %v8385_v7  ;;  %v8386_v31 = vld [vmem:[#allocation14_spill] sm:$0xff] }
0x1301   : > { %3222 = vrot.lane.b32.xlu2 %v3208_v43, %s4644_s23  ;;  %3079 = vrot.lane.b32.xlu0 %v3063_v9, %s4641_s16  ;;  %v1738_v9 = vadd.f32 %v1729_v26, %v1698_v35  ;;  %v2046_v23 = vadd.f32 %v2036_v50, %v2004_v59  ;;  %v3111_v24 = vmul.f32 %v6672_v44, %v6188_v32  ;;  %v8387_v50 = vld [vmem:[#allocation13_spill] sm:$0xff]  ;;  %v8388_v53 = vld [vmem:[#allocation38_spill] sm:$0xff]  ;;  %v8390_v59 = vld [vmem:[#allocation28_spill] sm:$0xff]  ;;  %vm8397_vm5 = vcmask 105472  }
0x1302   : > { %3081 = vrot.lane.b32.xlu1 %v3064_v17, %s4641_s16  ;;  %v1740_v17 = vadd.f32 %v8384_v54, %v1700_v36  ;;  %v3446_v52 = vmul.f32 %v6849_v16, %v6021_v56  ;;  %v1739_v35 = vadd.f32 %v1730_v2, %v1699_v13  ;;  %v1767_v54 = vsel %vm1764_vm12, %v8381_v41, %v8386_v31  ;;  %v8389_v41 = vld [vmem:[#allocation35_spill] sm:$0xff]  ;;  %s4654_s16 = smov 36  }
0x1303   : > { %v6948_v43 = vpop.permute.xlu2 %3122  ;;  %v1775_v61 = vadd.f32 %v1766_v49, %v1738_v9  ;;  %v2089_v26 = vadd.f32 %v2078_v62, %v2046_v23  ;;  %v2165_v5 = vsel %vm2163_vm14, %v6269_v20, %v8387_v50  ;;  %v3447_v22 = vmul.f32 %v6849_v16, %v6087_v58 }
0x1304   : > { %v1803_v23 = vsel %vm1801_vm0, %v8358_v1, %v8388_v53  ;;  %v1777_v36 = vadd.f32 %v8386_v31, %v1740_v17  ;;  %v1804_v20 = vsel %vm1801_vm0, %v8388_v53, %v8389_v41  ;;  %v2209_v9 = vsel %vm2207_vm7, %v6273_v63, %v8390_v59  ;;  %v8394_v63 = vld [vmem:[#allocation18_spill] sm:$0xff] }
0x1305   : > { %v2132_v49 = vadd.f32 %v2121_v60, %v2089_v26  ;;  %v1812_v13 = vadd.f32 %v1803_v23, %v1775_v61  ;;  %v1776_v1 = vadd.f32 %v1767_v54, %v1739_v35  ;;  %v6988_v17 = vpop.permute.xlu0 %3831  ;;  %v8392_v26 = vld [vmem:[#allocation29_spill] sm:$0xff]  ;;  %v1877_v35 = vsel %vm1875_vm13, %v8369_v27, %v8394_v63  ;;  %v8396_v23 = vld [vmem:[#allocation58_spill] sm:$0xff] }
0x1306   : > { %v1814_v62 = vadd.f32 %v8389_v41, %v1777_v36  ;;  %8391 = vst [vmem:[#allocation94_spill] sm:$0xff] %v6988_v17  ;;  %v2256_v61 = vsel %vm414_vm2, %v6277_v47, %v8392_v26  ;;  %v2305_v36 = vsel %vm8397_vm5, %v6297_v39, %v8396_v23  ;;  %v8399_v27 = vld [vmem:[#allocation21_spill] sm:$0xff]  ;;  %vm8401_vm12 = vcmask 80896  }
0x1307   : > { %v2176_v2 = vadd.f32 %v2165_v5, %v2132_v49  ;;  %v1813_v31 = vadd.f32 %v1804_v20, %v1776_v1  ;;  %v3112_v20 = vmul.f32 %v6672_v44, %v6408_v12  ;;  %v3113_v39 = vmul.f32 0.0, %v6672_v44 }
0x1308   : > { %vm8407_vm0 = vcmask 31744   ;;  %vm8415_vm5 = vcmask 1031168  }
0x1309   : > { %3126 = vrot.lane.b32.xlu2 %v3111_v24, %s4642_s7  ;;  %3456 = vrot.lane.b32.xlu0 %v3446_v52, %s4649_s6  ;;  %v8393_v24 = vld [vmem:[#allocation10_spill] sm:$0xff]  ;;  %v2220_v54 = vadd.f32 %v2209_v9, %v2176_v2  ;;  %v1878_v9 = vsel %vm1875_vm13, %v8394_v63, %v8399_v27  ;;  %v8400_v2 = vld [vmem:[#allocation59_spill] sm:$0xff]  ;;  %vm3034_vm13 = vcmask 211968  }
0x130a   : > { %3458 = vrot.lane.b32.xlu1 %v3447_v22, %s4649_s6  ;;  %v1840_v52 = vsel %vm1838_vm8, %v8359_v11, %v8393_v24  ;;  %v8395_v22 = vld [vmem:[#allocation52_spill] sm:$0xff]  ;;  %v8398_v11 = vld [vmem:[#allocation114_spill] sm:$0xff] }
0x130b   : > { %v6990_v60 = vpop.permute.xlu2 %3171  ;;  %v1841_v5 = vsel %vm1838_vm8, %v8393_v24, %v8395_v22  ;;  %v1849_v53 = vadd.f32 %v1840_v52, %v1812_v13  ;;  %v1851_v47 = vadd.f32 %v8395_v22, %v1814_v62  ;;  %v2268_v49 = vadd.f32 %v2256_v61, %v2220_v54  ;;  %v8402_v61 = vld [vmem:[#allocation23_spill] sm:$0xff]  ;;  %v8403_v52 = vld [vmem:[#allocation53_spill] sm:$0xff]  ;;  %v8404_v22 = vld [vmem:[#allocation60_spill] sm:$0xff] }
0x130c   : > { %v3258_v41 = vmul.f32 %v8398_v11, %v6188_v32  ;;  %v2354_v13 = vsel %vm8401_vm12, %v6323_v38, %v8400_v2  ;;  %v1850_v24 = vadd.f32 %v1841_v5, %v1813_v31  ;;  %v1915_v54 = vsel %vm1912_vm4, %v8403_v52, %v8402_v61 }
0x130d   : > { %v1886_v1 = vadd.f32 %v1877_v35, %v1849_v53  ;;  %v2317_v62 = vadd.f32 %v2305_v36, %v2268_v49  ;;  %vm8405_vm8 = vcmask 56320   ;;  %v1914_v38 = vsel %vm1912_vm4, %v8371_v0, %v8403_v52  ;;  %v8406_v49 = vld [vmem:[#allocation70_spill] sm:$0xff] }
0x130e   : > { %v2402_v63 = vsel %vm8405_vm8, %v6349_v46, %v8404_v22  ;;  %v1887_v44 = vadd.f32 %v1878_v9, %v1850_v24  ;;  %v1888_v31 = vadd.f32 %v8399_v27, %v1851_v47  ;;  %v8408_v27 = vld [vmem:[#allocation12_spill] sm:$0xff]  ;;  %vm8410_vm4 = vcmask 7168   ;;  %v8411_v24 = vld [vmem:[#allocation54_spill] sm:$0xff] }
0x130f   : > { %v2366_v35 = vadd.f32 %v2354_v13, %v2317_v62  ;;  %v1923_v36 = vadd.f32 %v1914_v38, %v1886_v1  ;;  %v1954_v9 = vsel %vm253_vm1, %v8372_v8, %v8408_v27  ;;  %v8409_v1 = vld [vmem:[#allocation80_spill] sm:$0xff]  ;;  %v8412_v62 = vld [vmem:[#allocation6_spill] sm:$0xff]  ;;  %vm3083_vm12 = vcmask 187392  }
0x1310   : > { %v1925_v17 = vadd.f32 %v8402_v61, %v1888_v31  ;;  %v2499_v13 = vsel %vm8410_vm4, %v6395_v33, %v8409_v1  ;;  %v1956_v61 = vsel %vm253_vm1, %v8412_v62, %v8411_v24  ;;  %v1955_v8 = vsel %vm253_vm1, %v8408_v27, %v8412_v62  ;;  %v8413_v33 = vld [vmem:[#allocation31_spill] sm:$0xff]  ;;  %v8414_v38 = vld [vmem:[#allocation74_spill] sm:$0xff] }
0x1311   : > { %3273 = vrot.lane.b32.xlu2 %v3258_v41, %s4645_s30  ;;  %3128 = vrot.lane.b32.xlu0 %v3112_v20, %s4642_s7  ;;  %v2450_v41 = vsel %vm8407_vm0, %v6369_v4, %v8406_v49  ;;  %v2414_v0 = vadd.f32 %v2402_v63, %v2366_v35  ;;  %v3490_v63 = vmul.f32 %v6790_v45, %v6021_v56  ;;  %vm8419_vm8 = vcmask 195584  }
0x1312   : > { %3130 = vrot.lane.b32.xlu1 %v3113_v39, %s4642_s7  ;;  %v1924_v39 = vadd.f32 %v1915_v54, %v1887_v44  ;;  %v3160_v54 = vmul.f32 %v6683_v28, %v6188_v32  ;;  %v2548_v44 = vsel %vm8415_vm5, %v6437_v30, %v8414_v38  ;;  %v3491_v31 = vmul.f32 %v6790_v45, %v6087_v58  ;;  %s4655_s7 = smov 33  }
0x1313   : > { %v3023_v5 = vpop.permute.xlu0 %3022  ;;  %v7032_v53 = vpop.permute.xlu2 %3220  ;;  %v2462_v52 = vadd.f32 %v2450_v41, %v2414_v0  ;;  %v1964_v35 = vadd.f32 %v1954_v9, %v1923_v36  ;;  %v8417_v41 = vld [vmem:[#allocation7_spill] sm:$0xff]  ;;  %vm3132_vm0 = vcmask 162816   ;;  %vm8421_vm4 = vcmask 171008  }
0x1314   : > { %v3046_v46 = vadd.f32 %v3023_v5, %v6912_v21  ;;  %v7038_v20 = vpop.permute.xlu1 %3024  ;;  %v1965_v27 = vadd.f32 %v1955_v8, %v1924_v39  ;;  %v1996_v62 = vsel %vm1308_vm10, %v8413_v33, %v8417_v41  ;;  %vm3181_vm5 = vcmask 138240  }
0x1315   : > { %v3035_v47 = vsel %vm3034_vm13, %v3023_v5, %v7038_v20  ;;  %v8416_v5 = vld [vmem:[#allocation8_spill] sm:$0xff]  ;;  %v2511_v0 = vadd.f32 %v2499_v13, %v2462_v52 }
0x1316   : > { %v3047_v4 = vadd.f32 %v3035_v47, %v6920_v6  ;;  %v3095_v21 = vadd.f32 %v6908_v48, %v3046_v46  ;;  %v1995_v6 = vsel %vm1308_vm10, %v8374_v15, %v8413_v33  ;;  %v1997_v46 = vsel %vm1308_vm10, %v8417_v41, %v8416_v5  ;;  %v8418_v47 = vld [vmem:[#allocation77_spill] sm:$0xff]  ;;  %v8425_v5 = vld [vmem:[#allocation87_spill] sm:$0xff] }
0x1317   : > { %v1966_v15 = vadd.f32 %v1956_v61, %v1925_v17  ;;  %v2596_v30 = vsel %vm8419_vm8, %v6441_v34, %v8418_v47  ;;  %v2005_v36 = vadd.f32 %v1995_v6, %v1964_v35  ;;  %v2559_v9 = vadd.f32 %v2548_v44, %v2511_v0  ;;  %v8420_v17 = vld [vmem:[#allocation88_spill] sm:$0xff]  ;;  %v8424_v35 = vld [vmem:[#allocation43_spill] sm:$0xff] }
0x1318   : > { %v2645_v61 = vsel %vm8421_vm4, %v6462_v19, %v8420_v17  ;;  %v2037_v33 = vsel %vm2035_vm15, %v8379_v29, %v8424_v35  ;;  %vm8426_vm10 = vcmask 146432   ;;  %v2006_v29 = vadd.f32 %v1996_v62, %v1965_v27 }
0x1319   : > { %3175 = vrot.lane.b32.xlu2 %v3160_v54, %s4643_s14  ;;  %3500 = vrot.lane.b32.xlu0 %v3490_v63, %s4650_s9  ;;  %v2007_v52 = vadd.f32 %v1997_v46, %v1966_v15  ;;  %v8422_v54 = vld [vmem:[#allocation25_spill] sm:$0xff]  ;;  %v8423_v63 = vld [vmem:[#allocation16_spill] sm:$0xff]  ;;  %v2608_v6 = vadd.f32 %v2596_v30, %v2559_v9  ;;  %v3161_v15 = vmul.f32 %v6683_v28, %v6408_v12  ;;  %vm8439_vm8 = vcmask 48128  }
0x131a   : > { %3502 = vrot.lane.b32.xlu1 %v3491_v31, %s4650_s9  ;;  %v2039_v8 = vsel %vm2035_vm15, %v8423_v63, %v8422_v54  ;;  %v2038_v19 = vsel %vm2035_vm15, %v8424_v35, %v8423_v63  ;;  %v8428_v9 = vld [vmem:[#allocation92_spill] sm:$0xff]  ;;  %vm8429_vm15 = vcmask 121856   ;;  %v3162_v54 = vmul.f32 0.0, %v6683_v28 }
0x131b   : > { %v7078_v24 = vpop.permute.xlu0 %3073  ;;  %v7080_v13 = vpop.permute.xlu2 %3269  ;;  %v2657_v46 = vadd.f32 %v2645_v61, %v2608_v6  ;;  %v2049_v30 = vadd.f32 %v2039_v8, %v2007_v52  ;;  %v8431_v61 = vld [vmem:[#allocation34_spill] sm:$0xff]  ;;  %v2047_v27 = vadd.f32 %v2037_v33, %v2005_v36  ;;  %v2048_v62 = vadd.f32 %v2038_v19, %v2006_v29  ;;  %v8434_v33 = vld [vmem:[#allocation104_spill] sm:$0xff] }
0x131c   : > { %v3084_v34 = vsel %vm3083_vm12, %v6908_v48, %v7078_v24  ;;  %v3121_v39 = vpop.permute.xlu1 %3120  ;;  %v2694_v48 = vsel %vm8426_vm10, %v6483_v3, %v8425_v5  ;;  %v8430_v3 = vld [vmem:[#allocation17_spill] sm:$0xff]  ;;  %v8432_v52 = vld [vmem:[#allocation98_spill] sm:$0xff]  ;;  %vm8455_vm10 = vcmask 80896  }
0x131d   : > { %v3096_v44 = vadd.f32 %v3084_v34, %v3047_v4  ;;  %v3144_v31 = vadd.f32 %v3121_v39, %v3095_v21  ;;  %v3133_v41 = vsel %vm3132_vm0, %v3121_v39, %v6948_v43  ;;  %v8427_v4 = vld [vmem:[#allocation115_spill] sm:$0xff]  ;;  %v2743_v34 = vsel %vm8429_vm15, %v6504_v37, %v8428_v9  ;;  %vm8457_vm15 = vmmov %vm8455_vm10 }
0x131e   : > { %v3307_v21 = vmul.f32 %v8427_v4, %v6188_v32  ;;  %v2079_v39 = vsel %vm476_vm3, %v8382_v51, %v8430_v3  ;;  %v2080_v63 = vsel %vm476_vm3, %v8430_v3, %v8431_v61  ;;  %v2706_v6 = vadd.f32 %v2694_v48, %v2657_v46  ;;  %v8436_v46 = vld [vmem:[#allocation51_spill] sm:$0xff]  ;;  %v8438_v3 = vld [vmem:[#allocation108_spill] sm:$0xff] }
0x131f   : > { %v3145_v0 = vadd.f32 %v3133_v41, %v3096_v44  ;;  %v2792_v37 = vsel %vm2790_vm11, %v8360_v25, %v8432_v52  ;;  %v2092_v28 = vadd.f32 %v8431_v61, %v2049_v30  ;;  %v2090_v35 = vadd.f32 %v2079_v39, %v2047_v27  ;;  %v8433_v41 = vld [vmem:[#allocation49_spill] sm:$0xff]  ;;  %v8440_v61 = vld [vmem:[#allocation44_spill] sm:$0xff] }
0x1320   : > { %v2755_v51 = vadd.f32 %v2743_v34, %v2706_v6  ;;  %v2091_v48 = vadd.f32 %v2080_v63, %v2048_v62  ;;  %v2122_v36 = vsel %vm623_vm6, %v8385_v7, %v8433_v41  ;;  %vm8435_vm3 = vcmask 72704  }
0x1321   : > { %3322 = vrot.lane.b32.xlu2 %v3307_v21, %s4646_s13  ;;  %3177 = vrot.lane.b32.xlu0 %v3161_v15, %s4643_s14  ;;  %v2841_v25 = vsel %vm8435_vm3, %v8363_v55, %v8434_v33  ;;  %v2123_v21 = vsel %vm623_vm6, %v8433_v41, %v8436_v46  ;;  %v2135_v34 = vadd.f32 %v8436_v46, %v2092_v28  ;;  %vm8442_vm6 = vcmask 261120   ;;  %v8445_v46 = vld [vmem:[#allocation32_spill] sm:$0xff]  ;;  %vm8459_vm3 = vmmov %vm8455_vm10 }
0x1322   : > { %3179 = vrot.lane.b32.xlu1 %v3162_v54, %s4643_s14  ;;  %v2804_v15 = vadd.f32 %v2792_v37, %v2755_v51  ;;  %v8437_v54 = vld [vmem:[#allocation19_spill] sm:$0xff]  ;;  %v2889_v55 = vsel %vm8439_vm8, %v8365_v10, %v8438_v3  ;;  %v3209_v27 = vmul.f32 %v8373_v57, %v6188_v32  ;;  %v2133_v37 = vadd.f32 %v2122_v36, %v2090_v35  ;;  %s4656_s14 = smov 30  }
0x1323   : > { %v7126_v8 = vpop.permute.xlu0 %2930  ;;  %v7128_v44 = vpop.permute.xlu2 %2934  ;;  %v2166_v7 = vsel %vm2163_vm14, %v8387_v50, %v8437_v54  ;;  %v2167_v63 = vsel %vm2163_vm14, %v8437_v54, %v8440_v61  ;;  %v2134_v28 = vadd.f32 %v2123_v21, %v2091_v48  ;;  %v8443_v51 = vld [vmem:[#allocation39_spill] sm:$0xff]  ;;  %vm3230_vm14 = vcmask 113664   ;;  %v8446_v54 = vld [vmem:[#allocation42_spill] sm:$0xff] }
0x1324   : > { %v3170_v19 = vpop.permute.xlu1 %3169  ;;  %v2853_v6 = vadd.f32 %v2841_v25, %v2804_v15  ;;  %v2939_v50 = vsel %vm8442_vm6, %v8367_v18, %v7126_v8  ;;  %v2210_v41 = vsel %vm2207_vm7, %v8390_v59, %v8443_v51  ;;  %v2177_v35 = vadd.f32 %v2166_v7, %v2133_v37  ;;  %v8444_v18 = vld [vmem:[#allocation9_spill] sm:$0xff]  ;;  %v8447_v7 = vld [vmem:[#allocation56_spill] sm:$0xff] }
0x1325   : > { %v3182_v29 = vsel %vm3181_vm5, %v3170_v19, %v6990_v60  ;;  %v3193_v30 = vadd.f32 %v3170_v19, %v3144_v31  ;;  %v8441_v31 = vld [vmem:[#allocation117_spill] sm:$0xff]  ;;  %v2178_v48 = vadd.f32 %v2167_v63, %v2134_v28  ;;  %v2211_v19 = vsel %vm2207_vm7, %v8443_v51, %v8444_v18 }
0x1326   : > { %v3194_v39 = vadd.f32 %v3182_v29, %v3145_v0  ;;  %v3534_v62 = vmul.f32 %v8441_v31, %v6021_v56  ;;  %v3535_v10 = vmul.f32 %v8441_v31, %v6087_v58  ;;  %v2179_v0 = vadd.f32 %v8440_v61, %v2135_v34 }
0x1327   : > { %v2901_v25 = vadd.f32 %v2889_v55, %v2853_v6  ;;  %v2257_v59 = vsel %vm414_vm2, %v8392_v26, %v8445_v46  ;;  %v2221_v34 = vadd.f32 %v2210_v41, %v2177_v35  ;;  %v2259_v55 = vsel %vm414_vm2, %v8447_v7, %v8446_v54  ;;  %v8448_v26 = vld [vmem:[#allocation27_spill] sm:$0xff]  ;;  %v8454_v35 = vld [vmem:[#allocation57_spill] sm:$0xff] }
0x1328   : > { %v2223_v36 = vadd.f32 %v8444_v18, %v2179_v0  ;;  %v2258_v61 = vsel %vm414_vm2, %v8445_v46, %v8447_v7  ;;  %vm8449_vm7 = vcmask 105472   ;;  %v8450_v0 = vld [vmem:[#allocation46_spill] sm:$0xff]  ;;  %v3356_v18 = vmul.f32 %v6754_v42, %v6188_v32 }
0x1329   : > { %3224 = vrot.lane.b32.xlu2 %v3209_v27, %s4644_s23  ;;  %3544 = vrot.lane.b32.xlu0 %v3534_v62, %s4651_s25  ;;  %v2950_v21 = vadd.f32 %v2939_v50, %v2901_v25  ;;  %v2306_v27 = vsel %vm8449_vm7, %v8396_v23, %v8448_v26  ;;  %v2222_v50 = vadd.f32 %v2211_v19, %v2178_v48  ;;  %vm8451_vm4 = vmmov %vm8449_vm7  ;;  %v8452_v25 = vld [vmem:[#allocation48_spill] sm:$0xff]  ;;  %vm8461_vm8 = vcmask 56320  }
0x132a   : > { %3546 = vrot.lane.b32.xlu1 %v3535_v10, %s4651_s25  ;;  %v2269_v10 = vadd.f32 %v2257_v59, %v2221_v34  ;;  %v2307_v51 = vsel %vm8451_vm4, %v8448_v26, %v8450_v0  ;;  %vm8453_vm2 = vmmov %vm8451_vm4  ;;  %v2355_v23 = vsel %vm8455_vm10, %v8400_v2, %v8454_v35  ;;  %v2271_v48 = vadd.f32 %v2259_v55, %v2223_v36  ;;  %v8456_v59 = vld [vmem:[#allocation62_spill] sm:$0xff]  ;;  %v8458_v34 = vld [vmem:[#allocation63_spill] sm:$0xff] }
0x132b   : > { %v7174_v15 = vpop.permute.xlu0 %2977  ;;  %v7176_v29 = vpop.permute.xlu2 %3318  ;;  %v2270_v19 = vadd.f32 %v2258_v61, %v2222_v50  ;;  %v2357_v54 = vsel %vm8459_vm3, %v8456_v59, %v8458_v34  ;;  %v8460_v2 = vld [vmem:[#allocation50_spill] sm:$0xff]  ;;  %vm3279_vm6 = vcmask 326656   ;;  %vm8463_vm7 = vmmov %vm8461_vm8  ;;  %vm8473_vm3 = vcmask 7168  }
0x132c   : > { %v2987_v63 = vsel %vm2985_vm9, %v6877_v40, %v7174_v15  ;;  %v3219_v6 = vpop.permute.xlu1 %3218  ;;  %v2308_v40 = vsel %vm8453_vm2, %v8450_v0, %v8452_v25  ;;  %v2318_v46 = vadd.f32 %v2306_v27, %v2269_v10  ;;  %v2403_v7 = vsel %vm8461_vm8, %v8404_v22, %v8460_v2  ;;  %vm8465_vm4 = vmmov %vm8463_vm7  ;;  %v8466_v25 = vld [vmem:[#allocation64_spill] sm:$0xff] }
0x132d   : > { %v2999_v62 = vadd.f32 %v2987_v63, %v2950_v21  ;;  %v3231_v37 = vsel %vm3230_vm14, %v3219_v6, %v7032_v53  ;;  %v3242_v28 = vadd.f32 %v3219_v6, %v3193_v30  ;;  %v3210_v30 = vmul.f32 %v8373_v57, %v6408_v12  ;;  %v8464_v6 = vld [vmem:[#allocation69_spill] sm:$0xff]  ;;  %vm8475_vm8 = vmmov %vm8473_vm3 }
0x132e   : > { %v7195_v41 = vadd.f32 %v3231_v37, %v3194_v39  ;;  %v3211_v39 = vmul.f32 0.0, %v8373_v57  ;;  %v2356_v21 = vsel %vm8457_vm15, %v8454_v35, %v8456_v59  ;;  %v2319_v36 = vadd.f32 %v2307_v51, %v2270_v19  ;;  %v8462_v57 = vld [vmem:[#allocation68_spill] sm:$0xff]  ;;  %v8468_v35 = vld [vmem:[#allocation65_spill] sm:$0xff] }
0x132f   : > { %v2320_v55 = vadd.f32 %v2308_v40, %v2271_v48  ;;  %v2367_v61 = vadd.f32 %v2355_v23, %v2318_v46  ;;  %v2404_v63 = vsel %vm8463_vm7, %v8460_v2, %v8462_v57  ;;  %v2405_v26 = vsel %vm8465_vm4, %v8462_v57, %v8464_v6  ;;  %v8470_v46 = vld [vmem:[#allocation66_spill] sm:$0xff]  ;;  %v8472_v59 = vld [vmem:[#allocation61_spill] sm:$0xff]  ;;  %vm8477_vm7 = vmmov %vm8473_vm3 }
0x1330   : > { %v2368_v37 = vadd.f32 %v2356_v21, %v2319_v36  ;;  %vm8467_vm2 = vcmask 31744   ;;  %v8474_v21 = vld [vmem:[#allocation67_spill] sm:$0xff]  ;;  %v3580_v34 = vmul.f32 %v6889_v14, %v6188_v32  ;;  %v8476_v36 = vld [vmem:[#allocation76_spill] sm:$0xff]  ;;  %vm8480_vm4 = vcmask 1031168  }
0x1331   : > { %3371 = vrot.lane.b32.xlu2 %v3356_v18, %s4647_s12  ;;  %3226 = vrot.lane.b32.xlu0 %v3210_v30, %s4644_s23  ;;  %v2369_v50 = vadd.f32 %v2357_v54, %v2320_v55  ;;  %v2415_v10 = vadd.f32 %v2403_v7, %v2367_v61  ;;  %v2451_v40 = vsel %vm8467_vm2, %v8406_v49, %v8466_v25  ;;  %vm8469_vm10 = vmmov %vm8467_vm2  ;;  %v8478_v61 = vld [vmem:[#allocation82_spill] sm:$0xff]  ;;  %v8479_v57 = vld [vmem:[#allocation72_spill] sm:$0xff] }
0x1332   : > { %3228 = vrot.lane.b32.xlu1 %v3211_v39, %s4644_s23  ;;  %v2452_v23 = vsel %vm8469_vm10, %v8466_v25, %v8468_v35  ;;  %v2416_v48 = vadd.f32 %v2404_v63, %v2368_v37  ;;  %vm8471_vm15 = vmmov %vm8467_vm2  ;;  %v2500_v49 = vsel %vm8473_vm3, %v8409_v1, %v8472_v59  ;;  %v3578_v54 = vmul.f32 %v6889_v14, %v6021_v56  ;;  %s215_s23 = sand.u32 1, %s4583_s19  }
0x1333   : > { %v7226_v27 = vpop.permute.xlu0 %3026  ;;  %v7228_v22 = vpop.permute.xlu2 %2981  ;;  %v2417_v19 = vadd.f32 %v2405_v26, %v2369_v50  ;;  %v2463_v2 = vadd.f32 %v2451_v40, %v2415_v10  ;;  %v3579_v55 = vmul.f32 %v6889_v14, %v6087_v58  ;;  %v2550_v63 = vsel %vm8480_vm4, %v8479_v57, %v8478_v61  ;;  %vm8481_vm2 = vmmov %vm8480_vm4  ;;  %v8483_v10 = vld [vmem:[#allocation71_spill] sm:$0xff] }
0x1334   : > { %v3036_v0 = vsel %vm3034_vm13, %v7038_v20, %v7226_v27  ;;  %v3268_v51 = vpop.permute.xlu1 %3267  ;;  %v2453_v20 = vsel %vm8471_vm15, %v8468_v35, %v8470_v46  ;;  %v2464_v7 = vadd.f32 %v2452_v23, %v2416_v48  ;;  %v2549_v6 = vsel %vm8481_vm2, %v8414_v38, %v8479_v57 }
0x1335   : > { %v7239_v18 = vadd.f32 %v3036_v0, %v2999_v62  ;;  %v3280_v30 = vsel %vm3279_vm6, %v3268_v51, %v7080_v13  ;;  %v2501_v62 = vsel %vm8475_vm8, %v8472_v59, %v8474_v21  ;;  %v2465_v1 = vadd.f32 %v2453_v20, %v2417_v19  ;;  %v8485_v51 = vld [vmem:[#allocation78_spill] sm:$0xff] }
0x1336   : > { %v7246_v39 = vadd.f32 %v3280_v30, %v3242_v28  ;;  %v2502_v28 = vsel %vm8477_vm7, %v8474_v21, %v8476_v36  ;;  %v2512_v26 = vadd.f32 %v2500_v49, %v2463_v2  ;;  %v2513_v37 = vadd.f32 %v2501_v62, %v2464_v7  ;;  %v8487_v30 = vld [vmem:[#allocation81_spill] sm:$0xff]  ;;  %v8493_v62 = vld [vmem:[#allocation84_spill] sm:$0xff] }
0x1337   : > { %v2514_v50 = vadd.f32 %v2502_v28, %v2465_v1  ;;  %vm8484_vm10 = vcmask 195584   ;;  %vm8488_vm3 = vcmask 171008   ;;  %vm8491_vm7 = vcmask 261120   ;;  %v8495_v2 = vld [vmem:[#allocation73_spill] sm:$0xff] }
0x1338   : > { %v2597_v0 = vsel %vm8484_vm10, %v8418_v47, %v8483_v10  ;;  %vm8486_vm15 = vmmov %vm8484_vm10  ;;  %v2561_v35 = vadd.f32 %v2550_v63, %v2513_v37  ;;  %v2560_v23 = vadd.f32 %v2549_v6, %v2512_v26  ;;  %v2646_v48 = vsel %vm8488_vm3, %v8420_v17, %v8487_v30  ;;  %v8489_v47 = vld [vmem:[#allocation75_spill] sm:$0xff] }
0x1339   : > { %3592 = vrot.lane.b32.xlu2 %v3580_v34, %s8482_s8  ;;  %3588 = vrot.lane.b32.xlu0 %v3578_v54, %s8482_s8  ;;  %v2598_v25 = vsel %vm8486_vm15, %v8483_v10, %v8485_v51  ;;  %vm8490_vm8 = vmmov %vm8488_vm3  ;;  %v2562_v17 = vadd.f32 %v8478_v61, %v2514_v50  ;;  %v8500_v61 = vld [vmem:[#allocation86_spill] sm:$0xff]  ;;  %v3260_v6 = vmul.f32 0.0, %v8398_v11  ;;  %v8503_v50 = vld [vmem:[#allocation89_spill] sm:$0xff] }
0x133a   : > { %3590 = vrot.lane.b32.xlu1 %v3579_v55, %s8482_s8  ;;  %v2647_v20 = vsel %vm8490_vm8, %v8487_v30, %v8489_v47  ;;  %vm8492_vm4 = vmmov %vm8491_vm7  ;;  %v2609_v34 = vadd.f32 %v2597_v0, %v2560_v23  ;;  %v2610_v54 = vadd.f32 %v2598_v25, %v2561_v35  ;;  %v3259_v55 = vmul.f32 %v8398_v11, %v6408_v12  ;;  %v8505_v11 = vld [vmem:[#allocation91_spill] sm:$0xff] }
0x133b   : > { %v7278_v40 = vpop.permute.xlu0 %3271  ;;  %v7280_v38 = vpop.permute.xlu2 %3365  ;;  %vm8494_vm2 = vmmov %vm8484_vm10  ;;  %vm8496_vm10 = vcmask 146432   ;;  %v2648_v57 = vsel %vm8488_vm3, %v8489_v47, %v8500_v61  ;;  %vm8502_vm8 = vcmask 121856   ;;  %v2793_v35 = vsel %vm2790_vm11, %v8432_v52, %v8505_v11  ;;  %v8506_v23 = vld [vmem:[#allocation95_spill] sm:$0xff] }
0x133c   : > { %v3281_v19 = vsel %vm3279_vm6, %v7080_v13, %v7278_v40  ;;  %v2933_v46 = vpop.permute.xlu1 %2932  ;;  %v2599_v13 = vsel %vm8494_vm2, %v8485_v51, %v8493_v62  ;;  %v2695_v7 = vsel %vm8496_vm10, %v8425_v5, %v8495_v2  ;;  %vm8498_vm15 = vmmov %vm8496_vm10  ;;  %v2658_v1 = vadd.f32 %v2646_v48, %v2609_v34  ;;  %v8501_v5 = vld [vmem:[#allocation79_spill] sm:$0xff]  ;;  %v8507_v62 = vld [vmem:[#allocation97_spill] sm:$0xff] }
0x133d   : > { %v7292_v59 = vadd.f32 %v3281_v19, %v7195_v41  ;;  %v2940_v49 = vsel %vm8491_vm7, %v7126_v8, %v2933_v46  ;;  %v2941_v21 = vsel %vm8492_vm4, %v2933_v46, %v7128_v44  ;;  %v8497_v41 = vld [vmem:[#allocation83_spill] sm:$0xff]  ;;  %v8499_v8 = vld [vmem:[#allocation116_spill] sm:$0xff]  ;;  %v2659_v63 = vadd.f32 %v2647_v20, %v2610_v54  ;;  %vm8504_vm7 = vmmov %vm8502_vm8 }
0x133e   : > { %v2696_v36 = vsel %vm8498_vm15, %v8495_v2, %v8497_v41  ;;  %v3404_v28 = vmul.f32 %v8499_v8, %v6188_v32  ;;  %v2611_v26 = vadd.f32 %v2599_v13, %v2562_v17  ;;  %v2744_v37 = vsel %vm8502_vm8, %v8428_v9, %v8501_v5  ;;  %v8509_v13 = vld [vmem:[#allocation101_spill] sm:$0xff]  ;;  %v8516_v61 = vld [vmem:[#allocation119_spill] sm:$0xff] }
0x133f   : > { %v2745_v10 = vsel %vm8504_vm7, %v8501_v5, %v8503_v50  ;;  %v2707_v0 = vadd.f32 %v2695_v7, %v2658_v1  ;;  %v2708_v51 = vadd.f32 %v2696_v36, %v2659_v63  ;;  %vm3328_vm4 = vcmask 302080   ;;  %v8511_v7 = vld [vmem:[#allocation85_spill] sm:$0xff]  ;;  %v8514_v1 = vld [vmem:[#allocation107_spill] sm:$0xff] }
0x1340   : > { %v2660_v25 = vadd.f32 %v2648_v57, %v2611_v26  ;;  %v2794_v9 = vsel %vm2790_vm11, %v8505_v11, %v8506_v23  ;;  %vm8508_vm2 = vcmask 72704   ;;  %vm8513_vm3 = vcmask 48128  }
0x1341   : > { %3416 = vrot.lane.b32.xlu2 %v3404_v28, %s4648_s10  ;;  %3275 = vrot.lane.b32.xlu0 %v3259_v55, %s4645_s30  ;;  %v2756_v19 = vadd.f32 %v2744_v37, %v2707_v0  ;;  %v2757_v46 = vadd.f32 %v2745_v10, %v2708_v51  ;;  %v2842_v52 = vsel %vm8508_vm2, %v8434_v33, %v8507_v62  ;;  %vm8510_vm10 = vmmov %vm8508_vm2  ;;  %v8512_v55 = vld [vmem:[#allocation103_spill] sm:$0xff] }
0x1342   : > { %3277 = vrot.lane.b32.xlu1 %v3260_v6, %s4645_s30  ;;  %v2843_v34 = vsel %vm8510_vm10, %v8507_v62, %v8509_v13  ;;  %v2890_v33 = vsel %vm8513_vm3, %v8438_v3, %v8512_v55  ;;  %vm8515_vm8 = vmmov %vm8513_vm3  ;;  %v3622_v57 = vmul.f32 %v8516_v61, %v6188_v32  ;;  %v3620_v63 = vmul.f32 %v8516_v61, %v6021_v56  ;;  %v8518_v37 = vld [vmem:[#allocation99_spill] sm:$0xff]  ;;  %s4384_s30 = smul.u32 40, %s215_s23 }
0x1343   : > { %v3076_v30 = vpop.permute.xlu0 %3075  ;;  %v7331_v48 = vpop.permute.xlu2 %3028  ;;  %v2805_v36 = vadd.f32 %v2793_v35, %v2756_v19  ;;  %v2806_v28 = vadd.f32 %v2794_v9, %v2757_v46  ;;  %v3621_v5 = vmul.f32 %v8516_v61, %v6087_v58  ;;  %v2795_v10 = vsel %vm2790_vm11, %v8506_v23, %v8518_v37  ;;  %vm8521_vm11 = vmmov %vm8513_vm3 }
0x1344   : > { %v3085_v47 = vsel %vm3083_vm12, %v7078_v24, %v3076_v30  ;;  %v3317_v20 = vpop.permute.xlu1 %3316  ;;  %v3037_v17 = vsel %vm3034_vm13, %v7226_v27, %v7331_v48  ;;  %v2697_v24 = vsel %vm8498_vm15, %v8497_v41, %v8511_v7  ;;  %v8517_v41 = vld [vmem:[#allocation93_spill] sm:$0xff]  ;;  %vm3422_vm10 = vcmask 252928  }
0x1345   : > { %v3097_v54 = vadd.f32 %v3085_v47, %v7239_v18  ;;  %v3329_v2 = vsel %vm3328_vm4, %v3317_v20, %v7176_v29  ;;  %v2891_v18 = vsel %vm8515_vm8, %v8512_v55, %v8514_v1  ;;  %v2746_v6 = vsel %vm8504_vm7, %v8503_v50, %v8517_v41  ;;  %v8519_v50 = vld [vmem:[#allocation105_spill] sm:$0xff] }
0x1346   : > { %v7351_v27 = vadd.f32 %v3329_v2, %v7246_v39  ;;  %v2854_v39 = vadd.f32 %v2842_v52, %v2805_v36  ;;  %v2855_v26 = vadd.f32 %v2843_v34, %v2806_v28  ;;  %v2709_v3 = vadd.f32 %v2697_v24, %v2660_v25 }
0x1347   : > { %v2844_v35 = vsel %vm8508_vm2, %v8509_v13, %v8519_v50  ;;  %v3448_v24 = vmul.f32 %v6849_v16, %v6188_v32  ;;  %v3357_v50 = vmul.f32 %v6754_v42, %v6408_v12  ;;  %vm3725_vm3 = vcmask 318464  }
0x1348   : > { %v2902_v0 = vadd.f32 %v2890_v33, %v2854_v39  ;;  %v2903_v51 = vadd.f32 %v2891_v18, %v2855_v26  ;;  %v2758_v11 = vadd.f32 %v2746_v6, %v2709_v3  ;;  %v8522_v6 = vld [vmem:[#allocation118_spill] sm:$0xff]  ;;  %vm3768_vm8 = vcmask 293888  }
0x1349   : > { %3634 = vrot.lane.b32.xlu2 %v3622_v57, %s8063_s11  ;;  %3630 = vrot.lane.b32.xlu0 %v3620_v63, %s8063_s11  ;;  %v3664_v39 = vmul.f32 %v8522_v6, %v6188_v32  ;;  %v3663_v26 = vmul.f32 %v8522_v6, %v6087_v58  ;;  %vm3811_vm7 = vcmask 269312   ;;  %vm3850_vm2 = vcmask 244736  }
0x134a   : > { %3632 = vrot.lane.b32.xlu1 %v3621_v5, %s8063_s11  ;;  %v2951_v19 = vadd.f32 %v2940_v49, %v2902_v0  ;;  %v2952_v46 = vadd.f32 %v2941_v21, %v2903_v51  ;;  %v2807_v62 = vadd.f32 %v2795_v10, %v2758_v11  ;;  %v8520_v49 = vld [vmem:[#allocation109_spill] sm:$0xff]  ;;  %v3492_v11 = vmul.f32 %v6790_v45, %v6188_v32 }
0x134b   : > { %v7377_v9 = vpop.permute.xlu0 %3320  ;;  %v7379_v25 = vpop.permute.xlu2 %3173  ;;  %v2892_v21 = vsel %vm8521_vm11, %v8514_v1, %v8520_v49 }
0x134c   : > { %v3330_v47 = vsel %vm3328_vm4, %v7176_v29, %v7377_v9  ;;  %v2980_v23 = vpop.permute.xlu1 %2979  ;;  %v3183_v20 = vsel %vm3181_vm5, %v6990_v60, %v7379_v25  ;;  %v2856_v7 = vadd.f32 %v2844_v35, %v2807_v62  ;;  %v3308_v60 = vmul.f32 %v8427_v4, %v6408_v12  ;;  %v8523_v62 = vld [vmem:[#allocation30_spill] sm:$0xff] }
0x134d   : > { %v3341_v52 = vadd.f32 %v3330_v47, %v7292_v59  ;;  %v2988_v13 = vsel %vm2985_vm9, %v7174_v15, %v2980_v23  ;;  %v2989_v34 = vsel %vm2985_vm9, %v2980_v23, %v7228_v22  ;;  %v3309_v59 = vmul.f32 0.0, %v8427_v4 }
0x134e   : > { %v3000_v2 = vadd.f32 %v2988_v13, %v2951_v19  ;;  %v3001_v29 = vadd.f32 %v2989_v34, %v2952_v46  ;;  %v2904_v15 = vadd.f32 %v2892_v21, %v2856_v7  ;;  %v3705_v13 = vmul.f32 %v8523_v62, %v6021_v56 }
0x134f   : > { %v3706_v34 = vmul.f32 %v8523_v62, %v6087_v58 }
0x1350   : > { %v3049_v36 = vadd.f32 %v3037_v17, %v3000_v2  ;;  %v2953_v28 = vadd.f32 %v7128_v44, %v2904_v15  ;;  %v3662_v44 = vmul.f32 %v8522_v6, %v6021_v56  ;;  %v3406_v15 = vmul.f32 0.0, %v8499_v8 }
0x1351   : > { %3460 = vrot.lane.b32.xlu2 %v3448_v24, %s4649_s6  ;;  %3324 = vrot.lane.b32.xlu0 %v3308_v60, %s4646_s13 }
0x1352   : > { %3326 = vrot.lane.b32.xlu1 %v3309_v59, %s4646_s13  ;;  %v3536_v59 = vmul.f32 %v8441_v31, %v6188_v32  ;;  %s4386_s13 = smul.u32 40, %s4709_s22 }
0x1353   : > { %v2984_v55 = vpop.permute.xlu0 %2983  ;;  %v7404_v33 = vpop.permute.xlu2 %3077 }
0x1354   : > { %v2990_v1 = vsel %vm2985_vm9, %v7228_v22, %v2984_v55  ;;  %v3125_v18 = vpop.permute.xlu1 %3124  ;;  %v3086_v4 = vsel %vm3083_vm12, %v3076_v30, %v7404_v33  ;;  %vm3377_vm9 = vcmask 277504  }
0x1355   : > { %v3002_v17 = vadd.f32 %v2990_v1, %v2953_v28  ;;  %v3134_v57 = vsel %vm3132_vm0, %v6948_v43, %v3125_v18  ;;  %v3098_v63 = vadd.f32 %v3086_v4, %v3049_v36  ;;  %v3405_v36 = vmul.f32 %v8499_v8, %v6408_v12 }
0x1356   : > { %v3146_v41 = vadd.f32 %v3134_v57, %v3097_v54 }
0x1358   : > { %v3195_v22 = vadd.f32 %v3183_v20, %v3146_v41 }
0x1359   : > { %3676 = vrot.lane.b32.xlu2 %v3664_v39, %s4652_s15  ;;  %3672 = vrot.lane.b32.xlu0 %v3662_v44, %s4652_s15 }
0x135a   : > { %3674 = vrot.lane.b32.xlu1 %v3663_v26, %s4652_s15 }
0x135b   : > { %v3368_v43 = vpop.permute.xlu0 %3367  ;;  %v7421_v30 = vpop.permute.xlu2 %3222 }
0x135c   : > { %v3378_v54 = vsel %vm3377_vm9, %v7280_v38, %v3368_v43  ;;  %v7425_v5 = vpop.permute.xlu1 %3369  ;;  %v3232_v3 = vsel %vm3230_vm14, %v7032_v53, %v7421_v30  ;;  %v3358_v38 = vmul.f32 0.0, %v6754_v42 }
0x135d   : > { %v3389_v37 = vadd.f32 %v3378_v54, %v7351_v27  ;;  %v3379_v10 = vsel %vm3377_vm9, %v3368_v43, %v7425_v5  ;;  %v3244_v0 = vadd.f32 %v3232_v3, %v3195_v22 }
0x135e   : > { %v3390_v51 = vadd.f32 %v3379_v10, %v3341_v52  ;;  %v3707_v52 = vmul.f32 %v8523_v62, %v6188_v32  ;;  %v3581_v10 = vmul.f32 %v6889_v14, %v6408_v12 }
0x1361   : > { %3504 = vrot.lane.b32.xlu2 %v3492_v11, %s4650_s9  ;;  %3373 = vrot.lane.b32.xlu0 %v3357_v50, %s4647_s12 }
0x1362   : > { %3375 = vrot.lane.b32.xlu1 %v3358_v38, %s4647_s12 }
0x1363   : > { %v3031_v53 = vpop.permute.xlu0 %3030  ;;  %v7441_v27 = vpop.permute.xlu2 %3126 }
0x1364   : > { %v3038_v35 = vsel %vm3034_vm13, %v7331_v48, %v3031_v53  ;;  %v3033_v19 = vpop.permute.xlu1 %3032  ;;  %v3135_v46 = vsel %vm3132_vm0, %v3125_v18, %v7441_v27 }
0x1365   : > { %v3050_v47 = vadd.f32 %v3038_v35, %v3001_v29  ;;  %v3039_v23 = vsel %vm3034_vm13, %v3031_v53, %v3033_v19  ;;  %v3147_v42 = vadd.f32 %v3135_v46, %v3098_v63  ;;  %v8524_v63 = vld [vmem:[#allocation26_spill] sm:$0xff]  ;;  %vm3466_vm13 = vcmask 228352  }
0x1366   : > { %v3051_v20 = vadd.f32 %v3039_v23, %v3002_v17  ;;  %v3750_v41 = vmul.f32 %v8524_v63, %v6188_v32  ;;  %v3748_v39 = vmul.f32 %v8524_v63, %v6021_v56  ;;  %v3749_v44 = vmul.f32 %v8524_v63, %v6087_v58 }
0x1369   : > { %3719 = vrot.lane.b32.xlu2 %v3707_v52, %s4653_s26  ;;  %3715 = vrot.lane.b32.xlu0 %v3705_v13, %s4653_s26 }
0x136a   : > { %3717 = vrot.lane.b32.xlu1 %v3706_v34, %s4653_s26 }
0x136b   : > { %v3413_v48 = vpop.permute.xlu0 %3412  ;;  %v7457_v49 = vpop.permute.xlu2 %3273 }
0x136c   : > { %v7459_v21 = vpop.permute.xlu1 %3414  ;;  %v3433_v2 = vadd.f32 %v3413_v48, %v3389_v37  ;;  %v3282_v29 = vsel %vm3279_vm6, %v7278_v40, %v7457_v49 }
0x136d   : > { %v3423_v7 = vsel %vm3422_vm10, %v3413_v48, %v7459_v21  ;;  %v3293_v24 = vadd.f32 %v3282_v29, %v3244_v0  ;;  %v3449_v0 = vmul.f32 %v6849_v16, %v6408_v12  ;;  %v3623_v29 = vmul.f32 %v8516_v61, %v6408_v12 }
0x136e   : > { %v3434_v60 = vadd.f32 %v3423_v7, %v3390_v51  ;;  %v3450_v51 = vmul.f32 0.0, %v6849_v16  ;;  %v3493_v7 = vmul.f32 %v6790_v45, %v6408_v12 }
0x1371   : > { %3548 = vrot.lane.b32.xlu2 %v3536_v59, %s4651_s25  ;;  %3418 = vrot.lane.b32.xlu0 %v3405_v36, %s4648_s10 }
0x1372   : > { %3420 = vrot.lane.b32.xlu1 %v3406_v15, %s4648_s10 }
0x1373   : > { %v3080_v40 = vpop.permute.xlu0 %3079  ;;  %v7474_v28 = vpop.permute.xlu2 %3175 }
0x1374   : > { %v3082_v55 = vpop.permute.xlu1 %3081  ;;  %v3087_v1 = vsel %vm3083_vm12, %v7404_v33, %v3080_v40  ;;  %v3184_v18 = vsel %vm3181_vm5, %v7379_v25, %v7474_v28 }
0x1375   : > { %v3088_v4 = vsel %vm3083_vm12, %v3080_v40, %v3082_v55  ;;  %v3099_v8 = vadd.f32 %v3087_v1, %v3050_v47  ;;  %v3196_v17 = vadd.f32 %v3184_v18, %v3147_v42  ;;  %v8525_v47 = vld [vmem:[#allocation120_spill] sm:$0xff]  ;;  %vm3510_vm12 = vcmask 203776   ;;  %v8526_v1 = vld [vmem:[#allocation94_spill] sm:$0xff] }
0x1376   : > { %v3100_v57 = vadd.f32 %v3088_v4, %v3051_v20  ;;  %v3793_v23 = vmul.f32 %v8525_v47, %v6188_v32  ;;  %v3791_v42 = vmul.f32 %v8525_v47, %v6021_v56  ;;  %v3792_v20 = vmul.f32 %v8525_v47, %v6087_v58 }
0x1377   : > { %v3537_v18 = vmul.f32 %v8441_v31, %v6408_v12  ;;  %v3835_v4 = vmul.f32 %v8526_v1, %v6188_v32 }
0x1379   : > { %3762 = vrot.lane.b32.xlu2 %v3750_v41, %s4654_s16  ;;  %3758 = vrot.lane.b32.xlu0 %v3748_v39, %s4654_s16 }
0x137a   : > { %3760 = vrot.lane.b32.xlu1 %v3749_v44, %s4654_s16  ;;  %v239_v44 = vld [vmem:[%s7847_s4 + $0x10] sm:$0xff] }
0x137b   : > { %v3457_v25 = vpop.permute.xlu0 %3456  ;;  %v7491_v33 = vpop.permute.xlu2 %3322 }
0x137c   : > { %v7493_v26 = vpop.permute.xlu1 %3458  ;;  %v3477_v22 = vadd.f32 %v3457_v25, %v3433_v2  ;;  %v3331_v43 = vsel %vm3328_vm4, %v7377_v9, %v7491_v33 }
0x137d   : > { %v3467_v54 = vsel %vm3466_vm13, %v3457_v25, %v7493_v26  ;;  %v3342_v3 = vadd.f32 %v3331_v43, %v3293_v24  ;;  %v3494_v24 = vmul.f32 0.0, %v6790_v45  ;;  %v3834_v45 = vmul.f32 %v8526_v1, %v6087_v58 }
0x137e   : > { %v3478_v37 = vadd.f32 %v3467_v54, %v3434_v60  ;;  %v3538_v25 = vmul.f32 0.0, %v8441_v31  ;;  %v3624_v31 = vmul.f32 0.0, %v8516_v61 }
0x1381   : > { %3594 = vrot.lane.b32.xlu2 %v3581_v10, %s8482_s8  ;;  %3462 = vrot.lane.b32.xlu0 %v3449_v0, %s4649_s6 }
0x1382   : > { %3464 = vrot.lane.b32.xlu1 %v3450_v51, %s4649_s6  ;;  %v3582_v51 = vmul.f32 0.0, %v6889_v14  ;;  %s4219_s6 = scalar_lea.hbm %s7848_s5, %s4386_s13 }
0x1383   : > { %v3129_v9 = vpop.permute.xlu0 %3128  ;;  %v7508_v11 = vpop.permute.xlu2 %3224 }
0x1384   : > { %v3131_v50 = vpop.permute.xlu1 %3130  ;;  %v3136_v38 = vsel %vm3132_vm0, %v7441_v27, %v3129_v9  ;;  %v3233_v53 = vsel %vm3230_vm14, %v7421_v30, %v7508_v11 }
0x1385   : > { %v3137_v35 = vsel %vm3132_vm0, %v3129_v9, %v3131_v50  ;;  %v3148_v16 = vadd.f32 %v3136_v38, %v3099_v8  ;;  %v7516_v19 = vadd.f32 %v3233_v53, %v3196_v17  ;;  %vm3554_vm0 = vcmask 179200  }
0x1386   : > { %v3149_v46 = vadd.f32 %v3137_v35, %v3100_v57  ;;  %v3708_v9 = vmul.f32 %v8523_v62, %v6408_v12 }
0x1389   : > { %3805 = vrot.lane.b32.xlu2 %v3793_v23, %s4655_s7  ;;  %3801 = vrot.lane.b32.xlu0 %v3791_v42, %s4655_s7  ;;  %v3794_v23 = vmul.f32 %v8525_v47, %v6408_v12  ;;  %v3751_v42 = vmul.f32 %v8524_v63, %v6408_v12 }
0x138a   : > { %3803 = vrot.lane.b32.xlu1 %v3792_v20, %s4655_s7  ;;  %v3666_v20 = vmul.f32 0.0, %v8522_v6 }
0x138b   : > { %v3501_v30 = vpop.permute.xlu0 %3500  ;;  %v7527_v27 = vpop.permute.xlu2 %3371 }
0x138c   : > { %v7529_v52 = vpop.permute.xlu1 %3502  ;;  %v3521_v13 = vadd.f32 %v3501_v30, %v3477_v22  ;;  %v3380_v56 = vsel %vm3377_vm9, %v7425_v5, %v7527_v27  ;;  %v3665_v22 = vmul.f32 %v8522_v6, %v6408_v12  ;;  %v3752_v6 = vmul.f32 0.0, %v8524_v63 }
0x138d   : > { %v3511_v34 = vsel %vm3510_vm12, %v3501_v30, %v7529_v52  ;;  %v3391_v48 = vadd.f32 %v3380_v56, %v3342_v3 }
0x138e   : > { %v3522_v2 = vadd.f32 %v3511_v34, %v3478_v37 }
0x1391   : > { %3636 = vrot.lane.b32.xlu2 %v3623_v29, %s8063_s11  ;;  %3506 = vrot.lane.b32.xlu0 %v3493_v7, %s4650_s9  ;;  %v3709_v7 = vmul.f32 0.0, %v8523_v62 }
0x1392   : > { %3508 = vrot.lane.b32.xlu1 %v3494_v24, %s4650_s9  ;;  %v3836_v24 = vmul.f32 %v8526_v1, %v6408_v12  ;;  %s4223_s9 = sshll.u32 %s4219_s6, 4  ;;  %s4224_s9 = int_to_ptr.hbm [resolvable:$true] %s4223_s9 }
0x1393   : > { %v3178_v5 = vpop.permute.xlu0 %3177  ;;  %v7544_v60 = vpop.permute.xlu2 %3592 }
0x1394   : > { %v3180_v59 = vpop.permute.xlu1 %3179  ;;  %v3185_v36 = vsel %vm3181_vm5, %v7474_v28, %v3178_v5 }
0x1395   : > { %v3186_v15 = vsel %vm3181_vm5, %v3178_v5, %v3180_v59  ;;  %v3197_v40 = vadd.f32 %v3185_v36, %v3148_v16  ;;  %vm8527_vm5 = vcmask 392192  }
0x1396   : > { %v3198_v55 = vadd.f32 %v3186_v15, %v3149_v46  ;;  %vm8531_vm11 = vmmov %vm8527_vm5 }
0x1399   : > { %3550 = vrot.lane.b32.xlu2 %v3537_v18, %s4651_s25  ;;  %3842 = vrot.lane.b32.xlu0 %v3834_v45, %s4656_s14 }
0x139a   : > { %3844 = vrot.lane.b32.xlu1 %v3835_v4, %s4656_s14 }
0x139b   : > { %v3545_v28 = vpop.permute.xlu0 %3544  ;;  %v7558_v8 = vpop.permute.xlu2 %3416 }
0x139c   : > { %v7560_v17 = vpop.permute.xlu1 %3546  ;;  %v3565_v58 = vadd.f32 %v3545_v28, %v3521_v13  ;;  %v3424_v57 = vsel %vm3422_vm10, %v7459_v21, %v7558_v8 }
0x139d   : > { %v3555_v32 = vsel %vm3554_vm0, %v3545_v28, %v7560_v17  ;;  %v3435_v41 = vadd.f32 %v3424_v57, %v3391_v48 }
0x139e   : > { %v3566_v39 = vadd.f32 %v3555_v32, %v3522_v2 }
0x13a1   : > { %3867 = vperm.xlu2 %4493, %v239_v44   ;;  %3552 = vrot.lane.b32.xlu0 %v3538_v25, %s4651_s25  ;;  %s4208_s25 = scalar_lea.sflag [#allocation3], %s215_s23 }
0x13a2   : > { %3678 = vrot.lane.b32.xlu1 %v3665_v22, %s4652_s15 }
0x13a3   : > { %v3227_v21 = vpop.permute.xlu0 %3226  ;;  %v7575_v43 = vpop.permute.xlu2 %3634 }
0x13a4   : > { %v3229_v54 = vpop.permute.xlu1 %3228  ;;  %v3234_v3 = vsel %vm3230_vm14, %v7508_v11, %v3227_v21 }
0x13a5   : > { %v3235_v37 = vsel %vm3230_vm14, %v3227_v21, %v3229_v54  ;;  %v3246_v10 = vadd.f32 %v3234_v3, %v3197_v40  ;;  %vm8528_vm14 = vmmov %vm8527_vm5  ;;  %v3795_v40 = vmul.f32 0.0, %v8525_v47 }
0x13a6   : > { %v3247_v0 = vadd.f32 %v3235_v37, %v3198_v55  ;;  %v3837_v55 = vmul.f32 0.0, %v8526_v1 }
0x13a9   : > { %3638 = vrot.lane.b32.xlu2 %v3624_v31, %s8063_s11  ;;  %3596 = vrot.lane.b32.xlu0 %v3582_v51, %s8482_s8  ;;  %s4657_s11 = smov 97   ;;  %s4543_s8 = sshra.s32 %s4224_s9, 4  ;;  %s4544_s8 = int_to_ptr.hbm [resolvable:$true] %s4543_s8 }
0x13aa   : > { %3721 = vrot.lane.b32.xlu1 %v3708_v9, %s4653_s26  ;;  %p4550_p0 = scmp.lt.s32.totalorder %s4544_s8, %s7848_s5 }
0x13ab   : > { %v3589_v50 = vpop.permute.xlu0 %3588  ;;  %v7587_v38 = vpop.permute.xlu2 %3460 }
0x13ac   : > { %v3591_v11 = vpop.permute.xlu1 %3590  ;;  %v3468_v53 = vsel %vm3466_vm13, %v7493_v26, %v7587_v38 }
0x13ad   : > { %v3599_v14 = vsel %vm8527_vm5, %v3591_v11, %v7544_v60  ;;  %v3598_v61 = vsel %vm8528_vm14, %v3589_v50, %v3591_v11  ;;  %v3479_v35 = vadd.f32 %v3468_v53, %v3435_v41 }
0x13ae   : > { %v3608_v16 = vadd.f32 %v3599_v14, %v3566_v39  ;;  %v3607_v46 = vadd.f32 %v3598_v61, %v3565_v58 }
0x13b1   : > { %3807 = vrot.lane.b32.xlu2 %v3794_v23, %s4655_s7  ;;  %3764 = vrot.lane.b32.xlu0 %v3751_v42, %s4654_s16 }
0x13b2   : > { %3680 = vrot.lane.b32.xlu1 %v3666_v20, %s4652_s15  ;;  %s4545_s15 = scalar_lea.hbm %s4544_s8, 40 }
0x13b3   : > { %v3276_v26 = vpop.permute.xlu0 %3275  ;;  %v7603_v30 = vpop.permute.xlu2 %3676  ;;  %p4546_p11 = scmp.ne.s32.totalorder %s4544_s8, %s4545_s15 }
0x13b4   : > { %v3278_v13 = vpop.permute.xlu1 %3277  ;;  %v3283_v56 = vsel %vm3279_vm6, %v7457_v49, %v3276_v26 }
0x13b5   : > { %v3296_v34 = vadd.f32 %v3278_v13, %v3247_v0  ;;  %v3284_v48 = vsel %vm3279_vm6, %v3276_v26, %v3278_v13  ;;  %v3294_v2 = vadd.f32 %v3283_v56, %v7516_v19  ;;  %vm8529_vm6 = vcmask 367616   ;;  %p4547_p12 = pnand %p4546_p11, %p4726_p5 }
0x13b6   : > { %v3295_v29 = vadd.f32 %v3284_v48, %v3246_v10  ;;  %vm8530_vm15 = vmmov %vm8529_vm6 }
0x13b7   : > { %p4548_p13 = pneg %p4547_p12 }
0x13b9   : > { %3766 = vrot.lane.b32.xlu2 %v3752_v6, %s4654_s16  ;;  %3723 = vrot.lane.b32.xlu0 %v3709_v7, %s4653_s26 }
0x13ba   : > { %3846 = vrot.lane.b32.xlu1 %v3836_v24, %s4656_s14 }
0x13bb   : > { %v3631_v49 = vpop.permute.xlu0 %3630  ;;  %v3505_v5 = vpop.permute.xlu2 %3504 }
0x13bc   : > { %v3633_v59 = vpop.permute.xlu1 %3632  ;;  %v3512_v19 = vsel %vm3510_vm12, %v7529_v52, %v3505_v5 }
0x13bd   : > { %v3641_v63 = vsel %vm8529_vm6, %v3633_v59, %v7575_v43  ;;  %v3640_v62 = vsel %vm8530_vm15, %v3631_v49, %v3633_v59  ;;  %v3523_v36 = vadd.f32 %v3512_v19, %v3479_v35 }
0x13be   : > { %v3650_v15 = vadd.f32 %v3641_v63, %v3608_v16  ;;  %v3649_v12 = vadd.f32 %v3640_v62, %v3607_v46 }
0x13c1   : > { %3809 = vrot.lane.b32.xlu0 %v3795_v40, %s4655_s7  ;;  %s4549_s7 = scalar_lea.hbm %s7848_s5, 80 }
0x13c2   : > { %3848 = vrot.lane.b32.xlu1 %v3837_v55, %s4656_s14  ;;  %p4551_p1 = scmp.lt.s32.totalorder %s4549_s7, %s4545_s15 }
0x13c3   : > { %v3325_v45 = vpop.permute.xlu0 %3324  ;;  %v7625_v18 = vpop.permute.xlu2 %3719 }
0x13c4   : > { %v3327_v52 = vpop.permute.xlu1 %3326  ;;  %v3332_v4 = vsel %vm3328_vm4, %v7491_v33, %v3325_v45  ;;  %p4552_p2 = por %p4551_p1, %p4550_p0 }
0x13c5   : > { %v3345_v28 = vadd.f32 %v3327_v52, %v3296_v34  ;;  %v3333_v58 = vsel %vm3328_vm4, %v3325_v45, %v3327_v52  ;;  %v3343_v57 = vadd.f32 %v3332_v4, %v3294_v2  ;;  %vm3682_vm4 = vcmask 343040  }
0x13c6   : > { %v3344_v32 = vadd.f32 %v3333_v58, %v3295_v29  ;;  %p4553_p3 = pnand %p4552_p2, %p4548_p13 }
0x13cb   : > { %v3673_v41 = vpop.permute.xlu0 %3672  ;;  %v3549_v47 = vpop.permute.xlu2 %3548 }
0x13cc   : > { %v3675_v39 = vpop.permute.xlu1 %3674  ;;  %v3556_v1 = vsel %vm3554_vm0, %v7560_v17, %v3549_v47 }
0x13cd   : > { %v7632_v44 = vadd.f32 %v3556_v1, %v3523_v36  ;;  %v3683_v42 = vsel %vm3682_vm4, %v3673_v41, %v3675_v39  ;;  %v3684_v26 = vsel %vm3682_vm4, %v3675_v39, %v7603_v30 }
0x13ce   : > { %v3692_v2 = vadd.f32 %v3683_v42, %v3649_v12  ;;  %v3693_v24 = vadd.f32 %v3684_v26, %v3650_v15 }
0x13d3   : > { %v3374_v25 = vpop.permute.xlu0 %3373  ;;  %v7641_v10 = vpop.permute.xlu2 %3762 }
0x13d4   : > { %v3376_v22 = vpop.permute.xlu1 %3375  ;;  %v3381_v21 = vsel %vm3377_vm9, %v7527_v27, %v3374_v25 }
0x13d5   : > { %v7636_v54 = vadd.f32 %v3376_v22, %v3345_v28  ;;  %v3382_v33 = vsel %vm3377_vm9, %v3374_v25, %v3376_v22  ;;  %v3392_v3 = vadd.f32 %v3381_v21, %v3343_v57  ;;  %vm8532_vm9 = vmmov %vm8529_vm6 }
0x13d6   : > { %v7639_v37 = vadd.f32 %v3382_v33, %v3344_v32 }
0x13db   : > { %v3716_v0 = vpop.permute.xlu0 %3715  ;;  %v7645_v9 = vpop.permute.xlu2 %3594 }
0x13dc   : > { %v3718_v31 = vpop.permute.xlu1 %3717  ;;  %v3600_v22 = vsel %vm8531_vm11, %v7544_v60, %v7645_v9 }
0x13dd   : > { %v3726_v13 = vsel %vm3725_vm3, %v3716_v0, %v3718_v31 }
0x13de   : > { %v3735_v49 = vadd.f32 %v3726_v13, %v3692_v2 }
0x13e3   : > { %v3419_v51 = vpop.permute.xlu0 %3418  ;;  %v7647_v53 = vpop.permute.xlu2 %3805 }
0x13e4   : > { %v7643_v17 = vpop.permute.xlu1 %3420  ;;  %v3425_v46 = vsel %vm3422_vm10, %v7558_v8, %v3419_v51 }
0x13e5   : > { %v3436_v20 = vadd.f32 %v3425_v46, %v3392_v3  ;;  %v3426_v21 = vsel %vm3422_vm10, %v3419_v51, %v7643_v17  ;;  %vm8533_vm10 = vmmov %vm8527_vm5 }
0x13e6   : > { %v3437_v60 = vadd.f32 %v3426_v21, %v7639_v37 }
0x13eb   : > { %v3759_v50 = vpop.permute.xlu0 %3758  ;;  %v7651_v61 = vpop.permute.xlu2 %3636 }
0x13ec   : > { %v3761_v11 = vpop.permute.xlu1 %3760  ;;  %v3642_v3 = vsel %vm8532_vm9, %v7575_v43, %v7651_v61 }
0x13ed   : > { %v3769_v6 = vsel %vm3768_vm8, %v3759_v50, %v3761_v11  ;;  %v3770_v19 = vsel %vm3768_vm8, %v3761_v11, %v7641_v10 }
0x13ee   : > { %v3778_v12 = vadd.f32 %v3769_v6, %v3735_v49 }
0x13f3   : > { %v3463_v27 = vpop.permute.xlu0 %3462  ;;  %v3551_v34 = vpop.permute.xlu2 %3550 }
0x13f4   : > { %v7649_v14 = vpop.permute.xlu1 %3464  ;;  %v3469_v23 = vsel %vm3466_vm13, %v7587_v38, %v3463_v27  ;;  %v3727_v38 = vsel %vm3725_vm3, %v3718_v31, %v7625_v18  ;;  %v3557_v59 = vsel %vm3554_vm0, %v3549_v47, %v3551_v34  ;;  %v3609_v31 = vadd.f32 %v3600_v22, %v7632_v44 }
0x13f5   : > { %v3480_v56 = vadd.f32 %v3469_v23, %v3436_v20  ;;  %v3736_v36 = vadd.f32 %v3727_v38, %v3693_v24  ;;  %v3470_v50 = vsel %vm3466_vm13, %v3463_v27, %v7649_v14  ;;  %vm8534_vm13 = vmmov %vm8529_vm6 }
0x13f6   : > { %v3481_v23 = vadd.f32 %v3470_v50, %v3437_v60 }
0x13f7   : > { %v3779_v40 = vadd.f32 %v3770_v19, %v3736_v36 }
0x13fb   : > { %v3802_v35 = vpop.permute.xlu0 %3801  ;;  %v7671_v28 = vpop.permute.xlu2 %3867 }
0x13fc   : > { %v3804_v16 = vpop.permute.xlu1 %3803 }
0x13fd   : > { %v3812_v63 = vsel %vm3811_vm7, %v3802_v35, %v3804_v16  ;;  %v3438_v35 = vadd.f32 %v7643_v17, %v7636_v54 }
0x13fe   : > { %v3821_v55 = vadd.f32 %v3812_v63, %v3778_v12 }
0x13ff   : > { %v3482_v43 = vadd.f32 %v7649_v14, %v3438_v35 }
0x1403   : > { %v3507_v48 = vpop.permute.xlu0 %3506  ;;  %v3639_v11 = vpop.permute.xlu2 %3638 }
0x1404   : > { %v3509_v29 = vpop.permute.xlu1 %3508  ;;  %v3513_v8 = vsel %vm3510_vm12, %v3505_v5, %v3507_v48  ;;  %v3813_v5 = vsel %vm3811_vm7, %v3804_v16, %v7647_v53  ;;  %v3651_v16 = vadd.f32 %v3642_v3, %v3609_v31 }
0x1405   : > { %v3524_v7 = vadd.f32 %v3513_v8, %v3480_v56  ;;  %v3822_v52 = vadd.f32 %v3813_v5, %v3779_v40  ;;  %v3514_v46 = vsel %vm3510_vm12, %v3507_v48, %v3509_v29  ;;  %v3526_v20 = vadd.f32 %v3509_v29, %v3482_v43  ;;  %v233_v43 = vld [vmem:[%s7845_s2 + $0x10] sm:$0xff] }
0x1406   : > { %v3525_v26 = vadd.f32 %v3514_v46, %v3481_v23  ;;  %vm3910_vm12 = vcmask 793600   ;;  %v232_v46 = vld [vmem:[%s7845_s2 + $0x8] sm:$0xff] }
0x1407   : > { %v3568_v62 = vadd.f32 %v3557_v59, %v3524_v7 }
0x140b   : > { %v3843_v45 = vpop.permute.xlu0 %3842 }
0x140c   : > { %v3845_v15 = vpop.permute.xlu1 %3844  ;;  %v3859_v4 = vadd.f32 %v3843_v45, %v3821_v55 }
0x140d   : > { %v3851_v58 = vsel %vm3850_vm2, %v3843_v45, %v3845_v15 }
0x140e   : > { %v3860_v57 = vadd.f32 %v3851_v58, %v3822_v52  ;;  %v3870_v32 = vadd.f32 %v7671_v28, %v3859_v4 }
0x1410   : > { %v3871_v41 = vadd.f32 %v7671_v28, %v3860_v57  ;;  %v3876_v47 = vpack.c.bf16 %v3870_v32, %v3870_v32 }
0x1412   : > { %v3877_v39 = vpack.c.bf16 %v3871_v41, %v3871_v41  ;;  %3898 = vrot.lane.b32.xlu2 %v3876_v47, %s4657_s11 }
0x1413   : > { %v3553_v1 = vpop.permute.xlu0 %3552 }
0x1414   : > { %v3679_v25 = vpop.permute.xlu1 %3678  ;;  %3900 = vrot.lane.b32.xlu0 %v3877_v39, %s4657_s11  ;;  %v3558_v27 = vsel %vm3554_vm0, %v3551_v34, %v3553_v1  ;;  %v3570_v13 = vadd.f32 %v3553_v1, %v3526_v20  ;;  %v3643_v34 = vsel %vm8534_vm13, %v7651_v61, %v3639_v11  ;;  %vm8535_vm0 = vcmask 1043456  }
0x1415   : > { %v3685_v51 = vsel %vm3682_vm4, %v7603_v30, %v3679_v25  ;;  %v3569_v37 = vadd.f32 %v3558_v27, %v3525_v26  ;;  %v234_v20 = vpack.c.bf16 %v233_v43, %v232_v46  ;;  %vm8536_vm5 = vmmov %vm8535_vm0 }
0x1416   : > { %v3694_v42 = vadd.f32 %v3685_v51, %v3651_v16  ;;  %v242_v51 = vld [vmem:[%s7847_s4 + $0x28] sm:$0xff]  ;;  %v240_v16 = vld [vmem:[%s7847_s4 + $0x18] sm:$0xff]  ;;  %vm8537_vm14 = vmmov %vm8535_vm0 }
0x1417   : > { %vm8538_vm6 = vmmov %vm8535_vm0 }
0x1418   : > { %vm8539_vm15 = vmmov %vm8535_vm0 }
0x141b   : > { %v3597_v33 = vpop.permute.xlu0 %3596 }
0x141c   : > { %v3722_v0 = vpop.permute.xlu1 %3721  ;;  %v3601_v30 = vsel %vm8533_vm10, %v7645_v9, %v3597_v33  ;;  %v3611_v2 = vadd.f32 %v3597_v33, %v3569_v37  ;;  %v3612_v8 = vadd.f32 %v3597_v33, %v3570_v13 }
0x141d   : > { %v3728_v44 = vsel %vm3725_vm3, %v7625_v18, %v3722_v0  ;;  %v3808_v18 = vpop.permute.xlu2 %3807  ;;  %v3610_v38 = vadd.f32 %v3601_v30, %v3568_v62 }
0x141e   : > { %v3737_v54 = vadd.f32 %v3728_v44, %v3694_v42  ;;  %v3653_v29 = vadd.f32 %v3639_v11, %v3611_v2  ;;  %v3654_v6 = vadd.f32 %v3639_v11, %v3612_v8  ;;  %v3814_v24 = vsel %vm3811_vm7, %v7647_v53, %v3808_v18 }
0x141f   : > { %v3652_v9 = vadd.f32 %v3643_v34, %v3610_v38 }
0x1423   : > { %v3765_v17 = vpop.permute.xlu0 %3764 }
0x1424   : > { %v3681_v56 = vpop.permute.xlu1 %3680  ;;  %v3771_v14 = vsel %vm3768_vm8, %v7641_v10, %v3765_v17 }
0x1425   : > { %v3780_v48 = vadd.f32 %v3771_v14, %v3737_v54  ;;  %v3686_v7 = vsel %vm3682_vm4, %v3679_v25, %v3681_v56  ;;  %v3696_v59 = vadd.f32 %v3681_v56, %v3653_v29  ;;  %v3697_v19 = vadd.f32 %v3681_v56, %v3654_v6  ;;  %v3767_v52 = vpop.permute.xlu2 %3766 }
0x1426   : > { %v3695_v12 = vadd.f32 %v3686_v7, %v3652_v9  ;;  %v3772_v53 = vsel %vm3768_vm8, %v3765_v17, %v3767_v52 }
0x1427   : > { %v3823_v63 = vadd.f32 %v3814_v24, %v3780_v48 }
0x142b   : > { %v3724_v49 = vpop.permute.xlu0 %3723 }
0x142c   : > { %v3847_v10 = vpop.permute.xlu1 %3846  ;;  %v3729_v36 = vsel %vm3725_vm3, %v3722_v0, %v3724_v49  ;;  %v3739_v61 = vadd.f32 %v3724_v49, %v3696_v59  ;;  %v3740_v40 = vadd.f32 %v3724_v49, %v3697_v19 }
0x142d   : > { %v3852_v62 = vsel %vm3850_vm2, %v3845_v15, %v3847_v10  ;;  %v3738_v55 = vadd.f32 %v3729_v36, %v3695_v12 }
0x142e   : > { %v3861_v5 = vadd.f32 %v3852_v62, %v3823_v63  ;;  %v3782_v58 = vadd.f32 %v3767_v52, %v3739_v61  ;;  %v3783_v57 = vadd.f32 %v3767_v52, %v3740_v40 }
0x142f   : > { %v3781_v41 = vadd.f32 %v3772_v53, %v3738_v55 }
0x1430   : > { %v3872_v45 = vadd.f32 %v7671_v28, %v3861_v5 }
0x1432   : > { %v3878_v4 = vpack.c.bf16 %v3872_v45, %v3872_v45 }
0x1433   : > { %v3810_v32 = vpop.permute.xlu0 %3809 }
0x1434   : > { %v3849_v47 = vpop.permute.xlu1 %3848  ;;  %v3815_v39 = vsel %vm3811_vm7, %v3808_v18, %v3810_v32  ;;  %v3825_v1 = vadd.f32 %v3810_v32, %v3782_v58  ;;  %v3826_v25 = vadd.f32 %v3810_v32, %v3783_v57  ;;  %3902 = vrot.lane.b32.xlu1 %v3878_v4, %s4657_s11  ;;  %v235_v57 = vld [vmem:[%s7845_s2 + $0x18] sm:$0xff] }
0x1435   : > { %v3824_v15 = vadd.f32 %v3815_v39, %v3781_v41  ;;  %v3853_v22 = vsel %vm3850_vm2, %v3847_v10, %v3849_v47  ;;  %vm8540_vm2 = vmmov %vm8535_vm0 }
0x1436   : > { %v3863_v21 = vadd.f32 %v3849_v47, %v3825_v1  ;;  %v3864_v33 = vadd.f32 %v3849_v47, %v3826_v25  ;;  %v7755_v47 = vpack.c.bf16 %v235_v57, %v235_v57 }
0x1437   : > { %v3862_v3 = vadd.f32 %v3853_v22, %v3824_v15 }
0x1438   : > { %v3874_v0 = vadd.f32 %v7671_v28, %v3863_v21  ;;  %v3875_v31 = vadd.f32 %v7671_v28, %v3864_v33 }
0x1439   : > { %v3873_v50 = vadd.f32 %v7671_v28, %v3862_v3  ;;  %v241_v28 = vld [vmem:[%s7847_s4 + $0x20] sm:$0xff] }
0x143a   : > { %v3881_v11 = vpack.c.bf16 %v3875_v31, %v3875_v31  ;;  %v3880_v35 = vpack.c.bf16 %v3874_v0, %v3874_v0 }
0x143b   : > { %v3879_v60 = vpack.c.bf16 %v3873_v50, %v3873_v50 }
0x143c   : > { %3908 = vrot.lane.b32.xlu1 %v3881_v11, %s4657_s11  ;;  %3906 = vrot.lane.b32.xlu0 %v3880_v35, %s4657_s11 }
0x143d   : > { %3904 = vrot.lane.b32.xlu2 %v3879_v60, %s4657_s11  ;;  %s7798_s11 = scalar_lea.vmem [#allocation2], %s4384_s30 }
0x143e   : > { %s4221_s22 = sshll.u32 %s7798_s11, 4  ;;  %s4222_s22 = int_to_ptr.vmem [resolvable:$true] %s4221_s22 }
0x1444   : > { %4111 = vperm.xlu1 %4492, %v242_v51   ;;  %3884 = vperm.xlu0 %4491, %v240_v16  }
0x1445   : > { %3889 = vperm.xlu2 %4493, %v241_v28  }
0x146c   : > { %v3899_v23 = vpop.permute.xlu2 %3898 }
0x1486   : > { %v3901_v44 = vpop.permute.xlu0 %3900 }
0x1487   : > { %v3911_v42 = vsel %vm3910_vm12, %v3899_v23, %v3901_v44 }
0x1488   : > { %v3920_v27 = vsel %vm8535_vm0, %v3911_v42, 0 }
0x1489   : > { %3941 = vmatpush.bf16.msrb.mxu1 %v3920_v27 }
0x148c   : > { %4366 = vmatmul.msk.bf16.vlgmr.msrb.gmra.mxu1 %vm253_vm1, %v234_v20 }
0x1497   : > { %v3905_v26 = vpop.permute.xlu2 %3904 }
0x149f   : > { %v3890_v34 = vpop.permute.xlu2 %3889 }
0x14a6   : > { %v3903_v54 = vpop.permute.xlu1 %3902 }
0x14a7   : > { %v3912_v17 = vsel %vm3910_vm12, %v3901_v44, %v3903_v54  ;;  %v3913_v37 = vsel %vm3910_vm12, %v3903_v54, %v3905_v26 }
0x14a8   : > { %v3923_v13 = vsel %vm8536_vm5, %v3912_v17, 0  ;;  %v3926_v30 = vsel %vm8537_vm14, %v3913_v37, 0 }
0x14a9   : > { %3955 = vmatpush.bf16.msrb.mxu2 %v3923_v13  ;;  %3969 = vmatpush.bf16.msrb.mxu3 %v3926_v30 }
0x14ac   : > { %4367 = vmatmul.msk.bf16.vlgmr.msrb.gmra.mxu2 %vm253_vm1, %v234_v20  ;;  %4368 = vmatmul.msk.bf16.vlgmr.msrb.gmra.mxu3 %vm253_vm1, %v234_v20 }
0x14ae   : > { %v3909_v56 = vpop.permute.xlu1 %3908  ;;  %v3907_v14 = vpop.permute.xlu0 %3906 }
0x14af   : > { %v3914_v48 = vsel %vm3910_vm12, %v3905_v26, %v3907_v14  ;;  %v3915_v2 = vsel %vm3910_vm12, %v3907_v14, %v3909_v56 }
0x14b0   : > { %v3929_v8 = vsel %vm8538_vm6, %v3914_v48, 0  ;;  %v3932_v18 = vsel %vm8539_vm15, %v3915_v2, 0 }
0x14b1   : > { %3983 = vmatpush.bf16.msra.mxu0 %v3929_v8  ;;  %3997 = vmatpush.bf16.msra.mxu1 %v3932_v18 }
0x14b4   : > { %4369 = vmatmul.msk.bf16.vlgmr.msra.gmra.mxu0 %vm253_vm1, %v234_v20  ;;  %4370 = vmatmul.msk.bf16.vlgmr.msra.gmra.mxu1 %vm253_vm1, %v234_v20 }
0x14b6   : > { %v3885_v62 = vpop.permute.xlu0 %3884 }
0x1509   : > { %v3943_v38 = vpop.f32.mrf.mxu1 }
0x150a   : > { %v3944_v61 = vadd.f32 %v3943_v38, %v3885_v62 }
0x1511   : > { %v3945_v29 = vpop.f32.mrf.mxu1 }
0x1512   : > { %v3946_v6 = vadd.f32 %v3945_v29, %v3890_v34 }
0x1514   : > { %v4371_v7 = vmul.f32 -1.442695, %v3946_v6 }
0x1516   : > { %4504 = vpow2.f32 %v4371_v7 }
0x151c   : > { %v4505_v24 = vpop.eup %4504 }
0x151d   : > { %v4019_v9 = vadd.f32 1.0, %v4505_v24 }
0x151f   : > { %4506 = vrcp.f32 %v4019_v9  ;;  %v4035_v10 = vand.u32 2147483648, %v4019_v9  ;;  %v4033_v36 = vand.u32 2147483647, %v4019_v9  ;;  %vm4029_vm3 = vweird.f32 %v4019_v9 }
0x1521   : > { %v4036_v5 = vor.u32 1.1754944e-38, %v4035_v10  ;;  %vm4034_vm7 = vcmp.eq.f32.partialorder %v4033_v36, 8.507059e+37 }
0x1525   : > { %v4507_v49 = vpop.eup %4506 }
0x1526   : > { %v4025_v59 = vmul.f32 %v4507_v49, %v4019_v9  ;;  %vm4030_vm4 = vweird.f32 %v4507_v49 }
0x1527   : > { %vm4031_vm8 = vmor %vm4029_vm3, %vm4030_vm4 }
0x1528   : > { %v4026_v19 = vsub.f32 1.0, %v4025_v59 }
0x152a   : > { %v4027_v63 = vmul.f32 %v4507_v49, %v4026_v19 }
0x152c   : > { %v4028_v12 = vadd.f32 %v4507_v49, %v4027_v63 }
0x152e   : > { %v4032_v40 = vsel %vm4031_vm8, %v4507_v49, %v4028_v12 }
0x152f   : > { %v3957_v55 = vpop.f32.mrf.mxu2  ;;  %v3971_v45 = vpop.f32.mrf.mxu3  ;;  %v4037_v52 = vsel %vm4034_vm7, %v4036_v5, %v4032_v40 }
0x1530   : > { %v4099_v53 = vmul.f32 %v4037_v52, %v3944_v61  ;;  %v3958_v20 = vadd.f32 %v3957_v55, %v3885_v62  ;;  %v3972_v26 = vadd.f32 %v3971_v45, %v3885_v62 }
0x1531   : > { %v3985_v4 = vpop.f32.mrf.mxu0  ;;  %v3999_v58 = vpop.f32.mrf.mxu1 }
0x1532   : > { %v4104_v32 = vpack.c.bf16 %v4099_v53, %v4099_v53  ;;  %v3986_v37 = vadd.f32 %v3985_v4, %v3885_v62  ;;  %v4000_v13 = vadd.f32 %v3999_v58, %v3885_v62 }
0x1534   : > { %v4118_v41 = vsel %vm8540_vm2, %v4104_v32, 0 }
0x1535   : > { %4139 = vmatpush.bf16.msra.mxu2 %v4118_v41 }
0x1537   : > { %v3959_v39 = vpop.f32.mrf.mxu2  ;;  %v3973_v1 = vpop.f32.mrf.mxu3 }
0x1538   : > { %v3960_v25 = vadd.f32 %v3959_v39, %v3890_v34  ;;  %v3974_v15 = vadd.f32 %v3973_v1, %v3890_v34  ;;  %4376 = vmatmul.msk.bf16.vlgmr.msra.gmra.mxu2 %vm253_vm1, %v7755_v47 }
0x1539   : > { %v3987_v22 = vpop.f32.mrf.mxu0  ;;  %v4001_v21 = vpop.f32.mrf.mxu1 }
0x153a   : > { %v4372_v33 = vmul.f32 -1.442695, %v3960_v25  ;;  %v4373_v3 = vmul.f32 -1.442695, %v3974_v15  ;;  %v3988_v0 = vadd.f32 %v3987_v22, %v3890_v34  ;;  %v4002_v31 = vadd.f32 %v4001_v21, %v3890_v34 }
0x153c   : > { %4508 = vpow2.f32 %v4372_v33  ;;  %v4374_v50 = vmul.f32 -1.442695, %v3988_v0  ;;  %v4375_v11 = vmul.f32 -1.442695, %v4002_v31 }
0x153d   : > { %4510 = vpow2.f32 %v4373_v3 }
0x153e   : > { %4512 = vpow2.f32 %v4374_v50 }
0x153f   : > { %4514 = vpow2.f32 %v4375_v11 }
0x1542   : > { %v4509_v35 = vpop.eup %4508 }
0x1543   : > { %v4511_v60 = vpop.eup %4510  ;;  %v4020_v51 = vadd.f32 1.0, %v4509_v35 }
0x1544   : > { %v4513_v16 = vpop.eup %4512  ;;  %v4021_v28 = vadd.f32 1.0, %v4511_v60 }
0x1545   : > { %v4515_v46 = vpop.eup %4514  ;;  %4516 = vrcp.f32 %v4020_v51  ;;  %v4022_v43 = vadd.f32 1.0, %v4513_v16  ;;  %v4048_v44 = vand.u32 2147483647, %v4020_v51  ;;  %v4050_v42 = vand.u32 2147483648, %v4020_v51  ;;  %v4112_v16 = vpop.permute.xlu1 %4111 }
0x1546   : > { %4518 = vrcp.f32 %v4021_v28  ;;  %v7759_v23 = vadd.f32 1.0, %v4515_v46  ;;  %v4063_v54 = vand.u32 2147483647, %v4021_v28  ;;  %v4065_v56 = vand.u32 2147483648, %v4021_v28 }
0x1547   : > { %4520 = vrcp.f32 %v4022_v43  ;;  %vm4044_vm11 = vweird.f32 %v4020_v51  ;;  %vm7762_vm9 = vcmp.eq.f32.partialorder %v4048_v44, 8.507059e+37  ;;  %vm4059_vm10 = vweird.f32 %v4021_v28 }
0x1548   : > { %4522 = vrcp.f32 %v7759_v23  ;;  %v4051_v34 = vor.u32 1.1754944e-38, %v4050_v42  ;;  %vm4074_vm13 = vweird.f32 %v4022_v43  ;;  %vm7767_vm12 = vcmp.eq.f32.partialorder %v4063_v54, 8.507059e+37 }
0x1549   : > { %v4078_v24 = vand.u32 2147483647, %v4022_v43  ;;  %v4066_v59 = vor.u32 1.1754944e-38, %v4065_v56  ;;  %v4080_v63 = vand.u32 2147483648, %v4022_v43  ;;  %v4095_v62 = vand.u32 2147483648, %v7759_v23  ;;  %v4527_v56 = vld [vmem:[%s4753_s17 + $0x8] sm:$0xff] }
0x154a   : > { %v4093_v40 = vand.u32 2147483647, %v7759_v23  ;;  %vm4089_vm8 = vweird.f32 %v7759_v23 }
0x154b   : > { %v4517_v27 = vpop.eup %4516  ;;  %vm4079_vm3 = vcmp.eq.f32.partialorder %v4078_v24, 8.507059e+37  ;;  %v4081_v4 = vor.u32 1.1754944e-38, %v4080_v63  ;;  %v4096_v39 = vor.u32 1.1754944e-38, %v4095_v62 }
0x154c   : > { %v4519_v17 = vpop.eup %4518  ;;  %v4040_v30 = vmul.f32 %v4517_v27, %v4020_v51  ;;  %vm4045_vm0 = vweird.f32 %v4517_v27 }
0x154d   : > { %v4521_v14 = vpop.eup %4520  ;;  %v4055_v48 = vmul.f32 %v4519_v17, %v4021_v28  ;;  %vm4060_vm5 = vweird.f32 %v4519_v17  ;;  %vm4046_vm6 = vmor %vm4044_vm11, %vm4045_vm0  ;;  %vm4094_vm11 = vcmp.eq.f32.partialorder %v4093_v40, 8.507059e+37 }
0x154e   : > { %v4523_v8 = vpop.eup %4522  ;;  %v4041_v18 = vsub.f32 1.0, %v4040_v30  ;;  %v4070_v38 = vmul.f32 %v4521_v14, %v4022_v43  ;;  %vm4075_vm14 = vweird.f32 %v4521_v14  ;;  %vm4061_vm4 = vmor %vm4059_vm10, %vm4060_vm5  ;;  %v4524_v43 = vld [vmem:[%s4753_s17] sm:$0xff] }
0x154f   : > { %v4056_v29 = vsub.f32 1.0, %v4055_v48  ;;  %v4085_v6 = vmul.f32 %v4523_v8, %v7759_v23  ;;  %vm4090_vm15 = vweird.f32 %v4523_v8  ;;  %vm4076_vm7 = vmor %vm4074_vm13, %vm4075_vm14 }
0x1550   : > { %v4071_v9 = vsub.f32 1.0, %v4070_v38  ;;  %v4042_v49 = vmul.f32 %v4517_v27, %v4041_v18  ;;  %vm4091_vm2 = vmor %vm4089_vm8, %vm4090_vm15  ;;  %v4528_v38 = vld [vmem:[%s4753_s17 + $0x20] sm:$0xff] }
0x1551   : > { %v4086_v19 = vsub.f32 1.0, %v4085_v6  ;;  %v4057_v10 = vmul.f32 %v4519_v17, %v4056_v29 }
0x1552   : > { %v4043_v36 = vadd.f32 %v4517_v27, %v4042_v49  ;;  %v4072_v12 = vmul.f32 %v4521_v14, %v4071_v9 }
0x1553   : > { %v4058_v5 = vadd.f32 %v4519_v17, %v4057_v10  ;;  %v4087_v61 = vmul.f32 %v4523_v8, %v4086_v19 }
0x1554   : > { %v4047_v55 = vsel %vm4046_vm6, %v4517_v27, %v4043_v36  ;;  %v4073_v45 = vadd.f32 %v4521_v14, %v4072_v12 }
0x1555   : > { %v4052_v52 = vsel %vm7762_vm9, %v4051_v34, %v4047_v55  ;;  %v4062_v53 = vsel %vm4061_vm4, %v4519_v17, %v4058_v5  ;;  %v4088_v58 = vadd.f32 %v4523_v8, %v4087_v61  ;;  %vm8545_vm9 = vcmask 1043456   ;;  %v4526_v17 = vld [vmem:[%s4753_s17 + $0x18] sm:$0xff] }
0x1556   : > { %v4100_v57 = vmul.f32 %v4052_v52, %v3958_v20  ;;  %v4067_v32 = vsel %vm7767_vm12, %v4066_v59, %v4062_v53  ;;  %v4077_v41 = vsel %vm4076_vm7, %v4521_v14, %v4073_v45  ;;  %vm8546_vm10 = vmmov %vm8545_vm9 }
0x1557   : > { %v4101_v1 = vmul.f32 %v4067_v32, %v3972_v26  ;;  %v4082_v25 = vsel %vm4079_vm3, %v4081_v4, %v4077_v41  ;;  %v4092_v15 = vsel %vm4091_vm2, %v4523_v8, %v4088_v58  ;;  %vm8547_vm13 = vmmov %vm8545_vm9  ;;  %v4525_v26 = vld [vmem:[%s4753_s17 + $0x10] sm:$0xff] }
0x1558   : > { %v4105_v22 = vpack.c.bf16 %v4100_v57, %v4100_v57  ;;  %v4102_v21 = vmul.f32 %v4082_v25, %v3986_v37  ;;  %v4097_v33 = vsel %vm4094_vm11, %v4096_v39, %v4092_v15  ;;  %vm8548_vm12 = vmmov %vm8545_vm9 }
0x1559   : > { %v4106_v3 = vpack.c.bf16 %v4101_v1, %v4101_v1  ;;  %v4103_v0 = vmul.f32 %v4097_v33, %v4000_v13 }
0x155a   : > { %v4121_v31 = vsel %vm8545_vm9, %v4105_v22, 0  ;;  %v4107_v50 = vpack.c.bf16 %v4102_v21, %v4102_v21 }
0x155b   : > { %4152 = vmatpush.bf16.msra.mxu3 %v4121_v31  ;;  %v4124_v11 = vsel %vm8546_vm10, %v4106_v3, 0  ;;  %v4108_v35 = vpack.c.bf16 %v4103_v0, %v4103_v0 }
0x155c   : > { %4165 = vmatpush.bf16.msrb.mxu0 %v4124_v11  ;;  %v4127_v60 = vsel %vm8547_vm13, %v4107_v50, 0 }
0x155d   : > { %4178 = vmatpush.bf16.msrb.mxu1 %v4127_v60  ;;  %v4130_v51 = vsel %vm8548_vm12, %v4108_v35, 0 }
0x155e   : > { %4377 = vmatmul.msk.bf16.vlgmr.msra.gmra.mxu3 %vm253_vm1, %v7755_v47  ;;  %4191 = vmatpush.bf16.msrb.mxu2 %v4130_v51 }
0x155f   : > { %4378 = vmatmul.msk.bf16.vlgmr.msrb.gmra.mxu0 %vm253_vm1, %v7755_v47 }
0x1560   : > { %4379 = vmatmul.msk.bf16.vlgmr.msrb.gmra.mxu1 %vm253_vm1, %v7755_v47 }
0x1561   : > { %4380 = vmatmul.msk.bf16.vlgmr.msrb.gmra.mxu2 %vm253_vm1, %v7755_v47 }
0x15bb   : > { %v4141_v28 = vpop.f32.mrf.mxu2 }
0x15bc   : > { %v4142_v46 = vadd.f32 %v4141_v28, %v4112_v16 }
0x15be   : > { %v4197_v23 = vadd.f32 %v4524_v43, %v4142_v46 }
0x15c0   : > { %4202 = vst [vmem:[%s7798_s11] sm:$0xff] %v4197_v23 }
0x15c3   : > { %v4143_v44 = vpop.f32.mrf.mxu2 }
0x15dc   : > { %v4167_v42 = vpop.f32.mrf.mxu0 }
0x15dd   : > { %v4168_v47 = vadd.f32 %v4167_v42, %v4112_v16  ;;  %v4180_v27 = vpop.f32.mrf.mxu1 }
0x15de   : > { %v4181_v20 = vadd.f32 %v4180_v27, %v4112_v16 }
0x15df   : > { %v4199_v54 = vadd.f32 %v4525_v26, %v4168_v47 }
0x15e0   : > { %v4200_v37 = vadd.f32 %v4526_v17, %v4181_v20 }
0x15e1   : > { %4204 = vst [vmem:[%s7798_s11 + $0x10] sm:$0xff] %v4199_v54  ;;  %v4154_v13 = vpop.f32.mrf.mxu3 }
0x15e2   : > { %4205 = vst [vmem:[%s7798_s11 + $0x18] sm:$0xff] %v4200_v37  ;;  %v4155_v30 = vadd.f32 %v4154_v13, %v4112_v16 }
0x15e4   : > { %v4198_v14 = vadd.f32 %v4527_v56, %v4155_v30  ;;  %v4193_v48 = vpop.f32.mrf.mxu2  ;;  %v4169_v2 = vpop.f32.mrf.mxu0 }
0x15e5   : > { %v4194_v8 = vadd.f32 %v4193_v48, %v4112_v16  ;;  %v4182_v18 = vpop.f32.mrf.mxu1 }
0x15e6   : > { %4203 = vst [vmem:[%s7798_s11 + $0x8] sm:$0xff] %v4198_v14 }
0x15e7   : > { %v4201_v34 = vadd.f32 %v4528_v38, %v4194_v8 }
0x15e9   : > { %4206 = vst [vmem:[%s7798_s11 + $0x20] sm:$0xff] %v4201_v34  ;;  %v4156_v29 = vpop.f32.mrf.mxu3 }
0x15ea   : > { %4556 = shalt.err (!%p4553_p3)
}
0x15eb   : > { %4387 = dma.vmem_to_hbm [thread:$0]  (%p4726_p5), %s4222_s22, 640, %s4224_s9, %s4208_s25  }
0x15ec   : > { %v4195_v6 = vpop.f32.mrf.mxu2 }
0x15ed PF: > { %p4393_p4 = scmp.ge.s32.totalorder %s4591_s21, 2  ;;  %s4235_s23 = sand.u32 1, %s4579_s18  }
0x15ee   : > { %s4236_s30 = scalar_lea.sflag [#allocation3], %s4235_s23 }
0x15ef   : > { %p4390_p7 = pnand %p4393_p4, %p4730_p6 }
0x15f1   : > { %p4391_p8 = pneg %p4390_p7 }
0x15f3   : > { %4574 = dma.done.wait (%p4391_p8), %s4236_s30, 640  }
0x15f4   : > { %4576 = vsyncadd (%p4391_p8), %s4236_s30, 4294966656  ;;  %p15_p9 = scmp.ge.s32.totalorder %s4713_s24, 4   ;;  %s8549_s18 = smov %s4583_s19 }
0x15f5   : > { %s8550_s19 = smov %s4587_s20  ;;  %s8551_s20 = smov %s4724_s27 }
0x15f6   : > { %s8552_s21 = smov %s4713_s24  ;;  %17 = sbr.rel (!%p15_p9) target bundleno = 3 (0x3), region = 148 }
0x15fb   :  { %4242 = vsyncpa [#allocation3], 1 }
0x15fc   :  { %4244 = vsyncpa [#allocation3 + $0x1], 1 }

</bundles_post_ra>
